<compile_context>
chip_gen: v5e
topology: v5e:2x2
jax: 0.10.0
libtpu: 0.0.40
codegen_flags: <defaults>
</compile_context>

<pallas_src>
import functools
import math

import jax
import jax.numpy as jnp
import numpy as np
from jax import lax
from jax.experimental import pallas as pl
from jax.experimental.pallas import tpu as pltpu


def _lstm_head_kernel(num_layers, hidden_size, batch_tile, *refs):
    """One batch tile per grid step (time-major inside the tile).

    refs = (x, [w_ih, w_hh, b] * L, head_w, head_b, out, seq_scr, gates_scr)
      x         : (T*Bt, Din)   bf16
      w_ih      : (Din_l, 4H)   bf16   gate order [i, f, o, g]
      w_hh      : (H, 4H)       bf16   gate order [i, f, o, g]
      b         : (1, 4H)       f32    (= b_ih + b_hh, reordered)
      head_w    : (H, Opad)     bf16
      head_b    : (1, Opad)     f32
      out       : (T*Bt, Opad)  f32
      seq_scr   : (T*Bt, H)     bf16   hidden sequence of the current layer
      gates_scr : (T*Bt, 4H)    f32    hoisted input projection + bias
    """
    H = hidden_size
    Bt = batch_tile

    x_ref = refs[0]
    idx = 1
    layer_refs = []
    for _ in range(num_layers):
        layer_refs.append((refs[idx], refs[idx + 1], refs[idx + 2]))
        idx += 3
    head_w_ref, head_b_ref, out_ref, seq_ref, gates_ref = refs[idx:idx + 5]

    T = x_ref.shape[0] // Bt

    for l in range(num_layers):
        w_hh = layer_refs[l][1][...]          # (H, 4H) bf16, hoisted load
        b = layer_refs[l][2][...]             # (1, 4H) f32
        x_in = x_ref[...] if l == 0 else seq_ref[...]

        # Hoisted input projection for ALL time steps of this layer: one big
        # MXU matmul with the bias folded in.  Reads seq_ref in full *before*
        # the time loop below overwrites it with this layer's own sequence.
        gates_ref[...] = (
            jnp.dot(x_in, layer_refs[l][0][...],
                    preferred_element_type=jnp.float32) + b)

        def step(t, carry):
            # The recurrence carries only the unavoidable h @ W_hh matmul.
            # TODO(synk): hold W_hh resident in the MXU weight registers across
            # steps (pltpu.matmul_push_rhs / matmul_acc_lhs / matmul_pop) if
            # the bundle dump shows the RHS being re-pushed every step.
            h, c = carry                                   # h: bf16, c: f32
            row = pl.multiple_of(t * Bt, Bt)
            g = gates_ref[pl.ds(row, Bt), :] + jnp.dot(
                h, w_hh, preferred_element_type=jnp.float32)   # (Bt, 4H) f32
            # Gates pre-ordered [i, f, o, g]: one contiguous sigmoid + one tanh.
            # TODO(synk): for production shapes make H a multiple of 128 so the
            # per-gate column slices land on 128-lane boundaries.
            sig = jax.nn.sigmoid(g[:, :3 * H])
            i_g = sig[:, 0:H]
            f_g = sig[:, H:2 * H]
            o_g = sig[:, 2 * H:3 * H]
            g_g = jnp.tanh(g[:, 3 * H:])
            c_new = f_g * c + i_g * g_g                    # f32 cell state
            h_new = (o_g * jnp.tanh(c_new)).astype(jnp.bfloat16)
            seq_ref[pl.ds(row, Bt), :] = h_new
            return (h_new, c_new)

        h0 = jnp.zeros((Bt, H), jnp.bfloat16)
        c0 = jnp.zeros((Bt, H), jnp.float32)
        # Bounded unroll: cross-step bundle overlap without vreg spills at
        # large T.
        lax.fori_loop(0, T, step, (h0, c0), unroll=min(T, 8))

    # De-fused Linear head + sigmoid: ONE (T*Bt, H) @ (H, Opad) matmul over the
    # whole tile instead of T tiny per-step matmuls on the serial chain.
    logits = jnp.dot(seq_ref[...], head_w_ref[...],
                     preferred_element_type=jnp.float32) + head_b_ref[...]
    out_ref[...] = jax.nn.sigmoid(logits)


def _vmem_capacity_bytes():
    try:
        cap = getattr(pltpu.get_tpu_info(), "vmem_capacity_bytes", None)
        if cap:
            return int(cap)
    except Exception:
        pass
    return 64 << 20                      # conservative (v7x-sized) fallback


def _forward_impl(x, weights, *, num_layers, hidden_size, output_size):
    """x: (B, T, Din) f32 -> (B, T, O) f32 (batch_first, like the PyTorch module)."""
    B, T, D = x.shape
    H, O, L = hidden_size, output_size, num_layers
    Opad = ((O + 127) // 128) * 128          # lane-dense head output

    # Batch tiling: pad to a multiple of 16 (bf16 sublane tile -> no masked
    # partial stores) and shard batch tiles across a parallel grid axis
    # (uses both TensorCores on v7x).  Up to 256 rows per tile so the per-step
    # recurrent matmul LHS is as tall as B allows.
    Bt = min(256, ((B + 15) // 16) * 16)
    Bp = ((B + Bt - 1) // Bt) * Bt
    nB = Bp // Bt

    # Time-major inside each batch tile, flattened to 2-D (no in-kernel reshapes).
    x_tm = jnp.transpose(x, (1, 0, 2)).astype(jnp.float32)           # (T, B, D)
    if Bp != B:
        x_tm = jnp.pad(x_tm, ((0, 0), (0, Bp - B), (0, 0)))
    x3d = (x_tm.reshape(T, nB, Bt, D).transpose(1, 0, 2, 3)
           .reshape(nB, T * Bt, D).astype(jnp.bfloat16))

    flat_inputs = [x3d] + list(weights)
    in_specs = [pl.BlockSpec((None, T * Bt, D), lambda b: (b, 0, 0))]
    # Weights: full-array blocks, same block every grid step (stay resident).
    in_specs += [pl.BlockSpec(tuple(w.shape), lambda b: (0, 0)) for w in weights]

    # Generation-aware VMEM budget from the actual resident footprint
    # (x / out tiles double-buffered by the pipeline, weights + scratch once).
    weight_bytes = sum(int(np.prod(w.shape)) * jnp.dtype(w.dtype).itemsize
                       for w in weights)
    tile_bytes = T * Bt * D * 2 + T * Bt * Opad * 4
    scratch_bytes = T * Bt * H * 2 + T * Bt * 4 * H * 4
    needed = 2 * (tile_bytes + weight_bytes) + scratch_bytes + (2 << 20)
    cap = _vmem_capacity_bytes() - (12 << 20)            # headroom
    vmem_limit = int(max(16 << 20, min(needed, cap)))
    # TODO(synk): if per-tile scratch (gates_scr is 16*H bytes/row) exceeds the
    # cap at production T (esp. v7x's 64 MiB), add a T-chunked "arbitrary" grid
    # axis carrying (h, c) in scratch instead of keeping the full sequence
    # resident.

    kernel = functools.partial(_lstm_head_kernel, L, H, Bt)
    out3d = pl.pallas_call(
        kernel,
        out_shape=jax.ShapeDtypeStruct((nB, T * Bt, Opad), jnp.float32),
        grid_spec=pltpu.PrefetchScalarGridSpec(
            num_scalar_prefetch=0,
            grid=(nB,),
            in_specs=in_specs,
            out_specs=pl.BlockSpec((None, T * Bt, Opad), lambda b: (b, 0, 0)),
            scratch_shapes=[pltpu.VMEM((T * Bt, H), jnp.bfloat16),
                            pltpu.VMEM((T * Bt, 4 * H), jnp.float32)]),
        compiler_params=pltpu.CompilerParams(
            dimension_semantics=("parallel",),
            vmem_limit_bytes=vmem_limit),
    )(*flat_inputs)

    out = (out3d.reshape(nB, T, Bt, Opad).transpose(1, 0, 2, 3)
           .reshape(T, Bp, Opad)[:, :B, :O])
    return jnp.transpose(out, (1, 0, 2))                              # (B, T, O)


class StatelessLSTMPallas:
    """Pallas TPU implementation of the PyTorch StatelessLSTM forward pass."""

    def __init__(self, input_size, hidden_size, output_size, num_layers, key):
        self.input_size = input_size
        self.hidden_size = hidden_size
        self.output_size = output_size
        self.num_layers = num_layers

        H, O = hidden_size, output_size
        k = 1.0 / math.sqrt(H)
        keys = jax.random.split(key, 4 * num_layers + 2)
        self.layers = []
        ki = 0
        for l in range(num_layers):
            din = input_size if l == 0 else H
            w_ih = jax.random.uniform(keys[ki], (4 * H, din),
                                      jnp.float32, -k, k); ki += 1
            w_hh = jax.random.uniform(keys[ki], (4 * H, H),
                                      jnp.float32, -k, k); ki += 1
            b_ih = jax.random.uniform(keys[ki], (4 * H,),
                                      jnp.float32, -k, k); ki += 1
            b_hh = jax.random.uniform(keys[ki], (4 * H,),
                                      jnp.float32, -k, k); ki += 1
            self.layers.append((w_ih, w_hh, b_ih, b_hh))
        self.head_w = jax.random.uniform(keys[ki], (O, H),
                                         jnp.float32, -k, k); ki += 1
        self.head_b = jax.random.uniform(keys[ki], (O,), jnp.float32, -k, k)

        # Kernel-ready weights prepared ONCE (hoisted out of forward):
        # gate reorder [i,f,g,o] -> [i,f,o,g], transpose, bias fold, bf16 cast,
        # head transpose + 128-lane pad.
        Opad = ((O + 127) // 128) * 128

        def reorder(w):
            return jnp.concatenate([w[:2 * H], w[3 * H:], w[2 * H:3 * H]],
                                   axis=0)

        kw = []
        for (w_ih, w_hh, b_ih, b_hh) in self.layers:
            kw.append(jnp.transpose(reorder(w_ih)).astype(jnp.bfloat16))
            kw.append(jnp.transpose(reorder(w_hh)).astype(jnp.bfloat16))
            kw.append(reorder(b_ih + b_hh).reshape(1, 4 * H).astype(jnp.float32))
        head_w_pad = jnp.pad(jnp.transpose(self.head_w), ((0, 0), (0, Opad - O)))
        kw.append(head_w_pad.astype(jnp.bfloat16))
        kw.append(jnp.pad(self.head_b, (0, Opad - O)).reshape(1, Opad)
                  .astype(jnp.float32))
        self._kernel_weights = tuple(jax.block_until_ready(w) for w in kw)

        self._call = jax.jit(functools.partial(
            _forward_impl, num_layers=num_layers, hidden_size=hidden_size,
            output_size=output_size))

    def forward(self, x):
        """x: (B, T, input_size) -> (B, T, output_size)."""
        return self._call(x, self._kernel_weights)


def _reference_forward(model, x):
    """Pure-JAX f32 reference reproducing PyTorch nn.LSTM + Linear + sigmoid."""
    B = x.shape[0]
    H = model.hidden_size
    h_in = x.astype(jnp.float32)
    for (w_ih, w_hh, b_ih, b_hh) in model.layers:
        def step(carry, xt):
            h, c = carry
            gates = xt @ w_ih.T + b_ih + h @ w_hh.T + b_hh
            i, f, g, o = jnp.split(gates, 4, axis=-1)
            i = jax.nn.sigmoid(i); f = jax.nn.sigmoid(f)
            g = jnp.tanh(g); o = jax.nn.sigmoid(o)
            c = f * c + i * g
            h = o * jnp.tanh(c)
            return (h, c), h
        init = (jnp.zeros((B, H), jnp.float32), jnp.zeros((B, H), jnp.float32))
        _, hs = lax.scan(step, init, jnp.swapaxes(h_in, 0, 1))   # (T, B, H)
        h_in = jnp.swapaxes(hs, 0, 1)
    logits = h_in @ model.head_w.T + model.head_b
    return jax.nn.sigmoid(logits)


if __name__ == "__main__":
    # Small shapes consistent with the module's forward:
    # x: (batch=2, seq=8, input_size=16), hidden=32, output=8, num_layers=2.
    batch, seq, input_size = 2, 8, 16
    hidden_size, output_size, num_layers = 32, 8, 2

    key = jax.random.PRNGKey(0)
    pkey, xkey = jax.random.split(key)

    model = StatelessLSTMPallas(input_size, hidden_size, output_size,
                                num_layers, pkey)
    x = jax.random.normal(xkey, (batch, seq, input_size), jnp.float32)

    out = jax.block_until_ready(model.forward(x))
    ref = jax.block_until_ready(_reference_forward(model, x))

    assert out.shape == (batch, seq, output_size)
    # bf16 matmul operands (f32 accumulation / f32 cell state) -> 2e-2 tol.
    np.testing.assert_allclose(np.asarray(out), np.asarray(ref),
                               rtol=2e-2, atol=2e-2)
    print("KERNEL_OK")
</pallas_src>

<mosaic_0001>
module attributes {stable_mosaic.version = 11 : i64} {
  func.func @_lstm_head_kernel(%arg0: i32, %arg1: memref<1x128x16xbf16, #tpu.memory_space<vmem>>, %arg2: memref<16x128xbf16, #tpu.memory_space<vmem>>, %arg3: memref<32x128xbf16, #tpu.memory_space<vmem>>, %arg4: memref<1x128xf32, #tpu.memory_space<vmem>>, %arg5: memref<32x128xbf16, #tpu.memory_space<vmem>>, %arg6: memref<32x128xbf16, #tpu.memory_space<vmem>>, %arg7: memref<1x128xf32, #tpu.memory_space<vmem>>, %arg8: memref<32x128xbf16, #tpu.memory_space<vmem>>, %arg9: memref<1x128xf32, #tpu.memory_space<vmem>>, %arg10: memref<1x128x128xf32, #tpu.memory_space<vmem>>, %arg11: memref<128x32xbf16, #tpu.memory_space<vmem>>, %arg12: memref<128x128xf32, #tpu.memory_space<vmem>>) attributes {dimension_semantics = [#tpu.dimension_semantics<parallel>], iteration_bounds = array<i64: 1>, scalar_prefetch = 0 : i64, scratch_operands = 2 : i64, tpu.core_type = #tpu.core_type<tc>, window_params = [{transform_indices = @transform_0, window_bounds = array<i64: 1, 128, 16>}, {pipeline_mode = #tpu.pipeline_mode<synchronous>, transform_indices = @transform_1, window_bounds = array<i64: 16, 128>}, {pipeline_mode = #tpu.pipeline_mode<synchronous>, transform_indices = @transform_2, window_bounds = array<i64: 32, 128>}, {pipeline_mode = #tpu.pipeline_mode<synchronous>, transform_indices = @transform_3, window_bounds = array<i64: 1, 128>}, {pipeline_mode = #tpu.pipeline_mode<synchronous>, transform_indices = @transform_4, window_bounds = array<i64: 32, 128>}, {pipeline_mode = #tpu.pipeline_mode<synchronous>, transform_indices = @transform_5, window_bounds = array<i64: 32, 128>}, {pipeline_mode = #tpu.pipeline_mode<synchronous>, transform_indices = @transform_6, window_bounds = array<i64: 1, 128>}, {pipeline_mode = #tpu.pipeline_mode<synchronous>, transform_indices = @transform_7, window_bounds = array<i64: 32, 128>}, {pipeline_mode = #tpu.pipeline_mode<synchronous>, transform_indices = @transform_8, window_bounds = array<i64: 1, 128>}, {transform_indices = @transform_9, window_bounds = array<i64: 1, 128, 128>}]} {
    %c0 = arith.constant 0 : index
    %c0_0 = arith.constant 0 : index
    %0 = vector.load %arg3[%c0, %c0_0] : memref<32x128xbf16, #tpu.memory_space<vmem>>, vector<32x128xbf16>
    %c0_1 = arith.constant 0 : index
    %c0_2 = arith.constant 0 : index
    %1 = vector.load %arg4[%c0_1, %c0_2] : memref<1x128xf32, #tpu.memory_space<vmem>>, vector<1x128xf32>
    %c0_3 = arith.constant 0 : index
    %c0_4 = arith.constant 0 : index
    %c0_5 = arith.constant 0 : index
    %2 = vector.load %arg1[%c0_3, %c0_4, %c0_5] : memref<1x128x16xbf16, #tpu.memory_space<vmem>>, vector<1x128x16xbf16>
    %3 = vector.shape_cast %2 : vector<1x128x16xbf16> to vector<128x16xbf16>
    %c0_6 = arith.constant 0 : index
    %c0_7 = arith.constant 0 : index
    %4 = vector.load %arg2[%c0_6, %c0_7] : memref<16x128xbf16, #tpu.memory_space<vmem>>, vector<16x128xbf16>
    %cst = arith.constant dense<0.000000e+00> : vector<128x128xf32>
    %5 = tpu.matmul %3, %4, %cst {dimension_numbers = #tpu.dot_dimension_numbers<[1], [0], [0], [1], [0, 0, 1, 1], [], []>} : vector<128x16xbf16>, vector<16x128xbf16>, vector<128x128xf32> -> vector<128x128xf32>
    %6 = vector.broadcast %1 : vector<1x128xf32> to vector<128x128xf32>
    %7 = arith.addf %5, %6 : vector<128x128xf32>
    %c0_8 = arith.constant 0 : index
    %c0_9 = arith.constant 0 : index
    %8 = vector.load %arg12[%c0_8, %c0_9] : memref<128x128xf32, #tpu.memory_space<vmem>>, vector<128x128xf32>
    tpu.vector_store %arg12[%c0_8, %c0_9], %7 {strides = array<i32>} : memref<128x128xf32, #tpu.memory_space<vmem>>, vector<128x128xf32>,
    %cst_10 = arith.constant 0.000000e+00 : bf16
    %9 = vector.broadcast %cst_10 : bf16 to vector<16x32xbf16>
    %cst_11 = arith.constant 0.000000e+00 : f32
    %10 = vector.broadcast %cst_11 : f32 to vector<16x32xf32>
    %c0_i32 = arith.constant 0 : i32
    %c16_i32 = arith.constant 16 : i32
    %11 = arith.muli %c0_i32, %c16_i32 : i32
    %12 = tpu.assume_multiple %11, 16 : i32
    %13 = arith.index_cast %12 : i32 to index
    %c0_12 = arith.constant 0 : index
    %14 = vector.load %arg12[%13, %c0_12] : memref<128x128xf32, #tpu.memory_space<vmem>>, vector<16x128xf32>
    %cst_13 = arith.constant dense<0.000000e+00> : vector<16x128xf32>
    %15 = tpu.matmul %9, %0, %cst_13 {dimension_numbers = #tpu.dot_dimension_numbers<[1], [0], [0], [1], [0, 0, 1, 1], [], []>} : vector<16x32xbf16>, vector<32x128xbf16>, vector<16x128xf32> -> vector<16x128xf32>
    %16 = arith.addf %14, %15 : vector<16x128xf32>
    %17 = vector.extract_strided_slice %16 {offsets = [0, 0], sizes = [16, 96], strides = [1, 1]} : vector<16x128xf32> to vector<16x96xf32>
    %18 = arith.negf %17 : vector<16x96xf32>
    %19 = math.exp %18 : vector<16x96xf32>
    %cst_14 = arith.constant 1.000000e+00 : f32
    %20 = vector.broadcast %cst_14 : f32 to vector<16x96xf32>
    %21 = arith.addf %20, %19 : vector<16x96xf32>
    %22 = arith.divf %20, %21 : vector<16x96xf32>
    %23 = vector.extract_strided_slice %22 {offsets = [0, 0], sizes = [16, 32], strides = [1, 1]} : vector<16x96xf32> to vector<16x32xf32>
    %24 = vector.extract_strided_slice %22 {offsets = [0, 32], sizes = [16, 32], strides = [1, 1]} : vector<16x96xf32> to vector<16x32xf32>
    %25 = vector.extract_strided_slice %22 {offsets = [0, 64], sizes = [16, 32], strides = [1, 1]} : vector<16x96xf32> to vector<16x32xf32>
    %26 = vector.extract_strided_slice %16 {offsets = [0, 96], sizes = [16, 32], strides = [1, 1]} : vector<16x128xf32> to vector<16x32xf32>
    %27 = math.tanh %26 : vector<16x32xf32>
    %28 = arith.mulf %24, %10 : vector<16x32xf32>
    %29 = arith.mulf %23, %27 : vector<16x32xf32>
    %30 = arith.addf %28, %29 : vector<16x32xf32>
    %31 = math.tanh %30 : vector<16x32xf32>
    %32 = arith.mulf %25, %31 : vector<16x32xf32>
    %33 = arith.truncf %32 : vector<16x32xf32> to vector<16x32xbf16>
    %34 = arith.index_cast %12 : i32 to index
    %c0_15 = arith.constant 0 : index
    %35 = vector.load %arg11[%34, %c0_15] : memref<128x32xbf16, #tpu.memory_space<vmem>>, vector<16x32xbf16>
    tpu.vector_store %arg11[%34, %c0_15], %33 {strides = array<i32>} : memref<128x32xbf16, #tpu.memory_space<vmem>>, vector<16x32xbf16>,
    %c1_i32 = arith.constant 1 : i32
    %c16_i32_16 = arith.constant 16 : i32
    %36 = arith.muli %c1_i32, %c16_i32_16 : i32
    %37 = tpu.assume_multiple %36, 16 : i32
    %38 = arith.index_cast %37 : i32 to index
    %c0_17 = arith.constant 0 : index
    %39 = vector.load %arg12[%38, %c0_17] : memref<128x128xf32, #tpu.memory_space<vmem>>, vector<16x128xf32>
    %cst_18 = arith.constant dense<0.000000e+00> : vector<16x128xf32>
    %40 = tpu.matmul %33, %0, %cst_18 {dimension_numbers = #tpu.dot_dimension_numbers<[1], [0], [0], [1], [0, 0, 1, 1], [], []>} : vector<16x32xbf16>, vector<32x128xbf16>, vector<16x128xf32> -> vector<16x128xf32>
    %41 = arith.addf %39, %40 : vector<16x128xf32>
    %42 = vector.extract_strided_slice %41 {offsets = [0, 0], sizes = [16, 96], strides = [1, 1]} : vector<16x128xf32> to vector<16x96xf32>
    %43 = arith.negf %42 : vector<16x96xf32>
    %44 = math.exp %43 : vector<16x96xf32>
    %cst_19 = arith.constant 1.000000e+00 : f32
    %45 = vector.broadcast %cst_19 : f32 to vector<16x96xf32>
    %46 = arith.addf %45, %44 : vector<16x96xf32>
    %47 = arith.divf %45, %46 : vector<16x96xf32>
    %48 = vector.extract_strided_slice %47 {offsets = [0, 0], sizes = [16, 32], strides = [1, 1]} : vector<16x96xf32> to vector<16x32xf32>
    %49 = vector.extract_strided_slice %47 {offsets = [0, 32], sizes = [16, 32], strides = [1, 1]} : vector<16x96xf32> to vector<16x32xf32>
    %50 = vector.extract_strided_slice %47 {offsets = [0, 64], sizes = [16, 32], strides = [1, 1]} : vector<16x96xf32> to vector<16x32xf32>
    %51 = vector.extract_strided_slice %41 {offsets = [0, 96], sizes = [16, 32], strides = [1, 1]} : vector<16x128xf32> to vector<16x32xf32>
    %52 = math.tanh %51 : vector<16x32xf32>
    %53 = arith.mulf %49, %30 : vector<16x32xf32>
    %54 = arith.mulf %48, %52 : vector<16x32xf32>
    %55 = arith.addf %53, %54 : vector<16x32xf32>
    %56 = math.tanh %55 : vector<16x32xf32>
    %57 = arith.mulf %50, %56 : vector<16x32xf32>
    %58 = arith.truncf %57 : vector<16x32xf32> to vector<16x32xbf16>
    %59 = arith.index_cast %37 : i32 to index
    %c0_20 = arith.constant 0 : index
    %60 = vector.load %arg11[%59, %c0_20] : memref<128x32xbf16, #tpu.memory_space<vmem>>, vector<16x32xbf16>
    tpu.vector_store %arg11[%59, %c0_20], %58 {strides = array<i32>} : memref<128x32xbf16, #tpu.memory_space<vmem>>, vector<16x32xbf16>,
    %c2_i32 = arith.constant 2 : i32
    %c16_i32_21 = arith.constant 16 : i32
    %61 = arith.muli %c2_i32, %c16_i32_21 : i32
    %62 = tpu.assume_multiple %61, 16 : i32
    %63 = arith.index_cast %62 : i32 to index
    %c0_22 = arith.constant 0 : index
    %64 = vector.load %arg12[%63, %c0_22] : memref<128x128xf32, #tpu.memory_space<vmem>>, vector<16x128xf32>
    %cst_23 = arith.constant dense<0.000000e+00> : vector<16x128xf32>
    %65 = tpu.matmul %58, %0, %cst_23 {dimension_numbers = #tpu.dot_dimension_numbers<[1], [0], [0], [1], [0, 0, 1, 1], [], []>} : vector<16x32xbf16>, vector<32x128xbf16>, vector<16x128xf32> -> vector<16x128xf32>
    %66 = arith.addf %64, %65 : vector<16x128xf32>
    %67 = vector.extract_strided_slice %66 {offsets = [0, 0], sizes = [16, 96], strides = [1, 1]} : vector<16x128xf32> to vector<16x96xf32>
    %68 = arith.negf %67 : vector<16x96xf32>
    %69 = math.exp %68 : vector<16x96xf32>
    %cst_24 = arith.constant 1.000000e+00 : f32
    %70 = vector.broadcast %cst_24 : f32 to vector<16x96xf32>
    %71 = arith.addf %70, %69 : vector<16x96xf32>
    %72 = arith.divf %70, %71 : vector<16x96xf32>
    %73 = vector.extract_strided_slice %72 {offsets = [0, 0], sizes = [16, 32], strides = [1, 1]} : vector<16x96xf32> to vector<16x32xf32>
    %74 = vector.extract_strided_slice %72 {offsets = [0, 32], sizes = [16, 32], strides = [1, 1]} : vector<16x96xf32> to vector<16x32xf32>
    %75 = vector.extract_strided_slice %72 {offsets = [0, 64], sizes = [16, 32], strides = [1, 1]} : vector<16x96xf32> to vector<16x32xf32>
    %76 = vector.extract_strided_slice %66 {offsets = [0, 96], sizes = [16, 32], strides = [1, 1]} : vector<16x128xf32> to vector<16x32xf32>
    %77 = math.tanh %76 : vector<16x32xf32>
    %78 = arith.mulf %74, %55 : vector<16x32xf32>
    %79 = arith.mulf %73, %77 : vector<16x32xf32>
    %80 = arith.addf %78, %79 : vector<16x32xf32>
    %81 = math.tanh %80 : vector<16x32xf32>
    %82 = arith.mulf %75, %81 : vector<16x32xf32>
    %83 = arith.truncf %82 : vector<16x32xf32> to vector<16x32xbf16>
    %84 = arith.index_cast %62 : i32 to index
    %c0_25 = arith.constant 0 : index
    %85 = vector.load %arg11[%84, %c0_25] : memref<128x32xbf16, #tpu.memory_space<vmem>>, vector<16x32xbf16>
    tpu.vector_store %arg11[%84, %c0_25], %83 {strides = array<i32>} : memref<128x32xbf16, #tpu.memory_space<vmem>>, vector<16x32xbf16>,
    %c3_i32 = arith.constant 3 : i32
    %c16_i32_26 = arith.constant 16 : i32
    %86 = arith.muli %c3_i32, %c16_i32_26 : i32
    %87 = tpu.assume_multiple %86, 16 : i32
    %88 = arith.index_cast %87 : i32 to index
    %c0_27 = arith.constant 0 : index
    %89 = vector.load %arg12[%88, %c0_27] : memref<128x128xf32, #tpu.memory_space<vmem>>, vector<16x128xf32>
    %cst_28 = arith.constant dense<0.000000e+00> : vector<16x128xf32>
    %90 = tpu.matmul %83, %0, %cst_28 {dimension_numbers = #tpu.dot_dimension_numbers<[1], [0], [0], [1], [0, 0, 1, 1], [], []>} : vector<16x32xbf16>, vector<32x128xbf16>, vector<16x128xf32> -> vector<16x128xf32>
    %91 = arith.addf %89, %90 : vector<16x128xf32>
    %92 = vector.extract_strided_slice %91 {offsets = [0, 0], sizes = [16, 96], strides = [1, 1]} : vector<16x128xf32> to vector<16x96xf32>
    %93 = arith.negf %92 : vector<16x96xf32>
    %94 = math.exp %93 : vector<16x96xf32>
    %cst_29 = arith.constant 1.000000e+00 : f32
    %95 = vector.broadcast %cst_29 : f32 to vector<16x96xf32>
    %96 = arith.addf %95, %94 : vector<16x96xf32>
    %97 = arith.divf %95, %96 : vector<16x96xf32>
    %98 = vector.extract_strided_slice %97 {offsets = [0, 0], sizes = [16, 32], strides = [1, 1]} : vector<16x96xf32> to vector<16x32xf32>
    %99 = vector.extract_strided_slice %97 {offsets = [0, 32], sizes = [16, 32], strides = [1, 1]} : vector<16x96xf32> to vector<16x32xf32>
    %100 = vector.extract_strided_slice %97 {offsets = [0, 64], sizes = [16, 32], strides = [1, 1]} : vector<16x96xf32> to vector<16x32xf32>
    %101 = vector.extract_strided_slice %91 {offsets = [0, 96], sizes = [16, 32], strides = [1, 1]} : vector<16x128xf32> to vector<16x32xf32>
    %102 = math.tanh %101 : vector<16x32xf32>
    %103 = arith.mulf %99, %80 : vector<16x32xf32>
    %104 = arith.mulf %98, %102 : vector<16x32xf32>
    %105 = arith.addf %103, %104 : vector<16x32xf32>
    %106 = math.tanh %105 : vector<16x32xf32>
    %107 = arith.mulf %100, %106 : vector<16x32xf32>
    %108 = arith.truncf %107 : vector<16x32xf32> to vector<16x32xbf16>
    %109 = arith.index_cast %87 : i32 to index
    %c0_30 = arith.constant 0 : index
    %110 = vector.load %arg11[%109, %c0_30] : memref<128x32xbf16, #tpu.memory_space<vmem>>, vector<16x32xbf16>
    tpu.vector_store %arg11[%109, %c0_30], %108 {strides = array<i32>} : memref<128x32xbf16, #tpu.memory_space<vmem>>, vector<16x32xbf16>,
    %c4_i32 = arith.constant 4 : i32
    %c16_i32_31 = arith.constant 16 : i32
    %111 = arith.muli %c4_i32, %c16_i32_31 : i32
    %112 = tpu.assume_multiple %111, 16 : i32
    %113 = arith.index_cast %112 : i32 to index
    %c0_32 = arith.constant 0 : index
    %114 = vector.load %arg12[%113, %c0_32] : memref<128x128xf32, #tpu.memory_space<vmem>>, vector<16x128xf32>
    %cst_33 = arith.constant dense<0.000000e+00> : vector<16x128xf32>
    %115 = tpu.matmul %108, %0, %cst_33 {dimension_numbers = #tpu.dot_dimension_numbers<[1], [0], [0], [1], [0, 0, 1, 1], [], []>} : vector<16x32xbf16>, vector<32x128xbf16>, vector<16x128xf32> -> vector<16x128xf32>
    %116 = arith.addf %114, %115 : vector<16x128xf32>
    %117 = vector.extract_strided_slice %116 {offsets = [0, 0], sizes = [16, 96], strides = [1, 1]} : vector<16x128xf32> to vector<16x96xf32>
    %118 = arith.negf %117 : vector<16x96xf32>
    %119 = math.exp %118 : vector<16x96xf32>
    %cst_34 = arith.constant 1.000000e+00 : f32
    %120 = vector.broadcast %cst_34 : f32 to vector<16x96xf32>
    %121 = arith.addf %120, %119 : vector<16x96xf32>
    %122 = arith.divf %120, %121 : vector<16x96xf32>
    %123 = vector.extract_strided_slice %122 {offsets = [0, 0], sizes = [16, 32], strides = [1, 1]} : vector<16x96xf32> to vector<16x32xf32>
    %124 = vector.extract_strided_slice %122 {offsets = [0, 32], sizes = [16, 32], strides = [1, 1]} : vector<16x96xf32> to vector<16x32xf32>
    %125 = vector.extract_strided_slice %122 {offsets = [0, 64], sizes = [16, 32], strides = [1, 1]} : vector<16x96xf32> to vector<16x32xf32>
    %126 = vector.extract_strided_slice %116 {offsets = [0, 96], sizes = [16, 32], strides = [1, 1]} : vector<16x128xf32> to vector<16x32xf32>
    %127 = math.tanh %126 : vector<16x32xf32>
    %128 = arith.mulf %124, %105 : vector<16x32xf32>
    %129 = arith.mulf %123, %127 : vector<16x32xf32>
    %130 = arith.addf %128, %129 : vector<16x32xf32>
    %131 = math.tanh %130 : vector<16x32xf32>
    %132 = arith.mulf %125, %131 : vector<16x32xf32>
    %133 = arith.truncf %132 : vector<16x32xf32> to vector<16x32xbf16>
    %134 = arith.index_cast %112 : i32 to index
    %c0_35 = arith.constant 0 : index
    %135 = vector.load %arg11[%134, %c0_35] : memref<128x32xbf16, #tpu.memory_space<vmem>>, vector<16x32xbf16>
    tpu.vector_store %arg11[%134, %c0_35], %133 {strides = array<i32>} : memref<128x32xbf16, #tpu.memory_space<vmem>>, vector<16x32xbf16>,
    %c5_i32 = arith.constant 5 : i32
    %c16_i32_36 = arith.constant 16 : i32
    %136 = arith.muli %c5_i32, %c16_i32_36 : i32
    %137 = tpu.assume_multiple %136, 16 : i32
    %138 = arith.index_cast %137 : i32 to index
    %c0_37 = arith.constant 0 : index
    %139 = vector.load %arg12[%138, %c0_37] : memref<128x128xf32, #tpu.memory_space<vmem>>, vector<16x128xf32>
    %cst_38 = arith.constant dense<0.000000e+00> : vector<16x128xf32>
    %140 = tpu.matmul %133, %0, %cst_38 {dimension_numbers = #tpu.dot_dimension_numbers<[1], [0], [0], [1], [0, 0, 1, 1], [], []>} : vector<16x32xbf16>, vector<32x128xbf16>, vector<16x128xf32> -> vector<16x128xf32>
    %141 = arith.addf %139, %140 : vector<16x128xf32>
    %142 = vector.extract_strided_slice %141 {offsets = [0, 0], sizes = [16, 96], strides = [1, 1]} : vector<16x128xf32> to vector<16x96xf32>
    %143 = arith.negf %142 : vector<16x96xf32>
    %144 = math.exp %143 : vector<16x96xf32>
    %cst_39 = arith.constant 1.000000e+00 : f32
    %145 = vector.broadcast %cst_39 : f32 to vector<16x96xf32>
    %146 = arith.addf %145, %144 : vector<16x96xf32>
    %147 = arith.divf %145, %146 : vector<16x96xf32>
    %148 = vector.extract_strided_slice %147 {offsets = [0, 0], sizes = [16, 32], strides = [1, 1]} : vector<16x96xf32> to vector<16x32xf32>
    %149 = vector.extract_strided_slice %147 {offsets = [0, 32], sizes = [16, 32], strides = [1, 1]} : vector<16x96xf32> to vector<16x32xf32>
    %150 = vector.extract_strided_slice %147 {offsets = [0, 64], sizes = [16, 32], strides = [1, 1]} : vector<16x96xf32> to vector<16x32xf32>
    %151 = vector.extract_strided_slice %141 {offsets = [0, 96], sizes = [16, 32], strides = [1, 1]} : vector<16x128xf32> to vector<16x32xf32>
    %152 = math.tanh %151 : vector<16x32xf32>
    %153 = arith.mulf %149, %130 : vector<16x32xf32>
    %154 = arith.mulf %148, %152 : vector<16x32xf32>
    %155 = arith.addf %153, %154 : vector<16x32xf32>
    %156 = math.tanh %155 : vector<16x32xf32>
    %157 = arith.mulf %150, %156 : vector<16x32xf32>
    %158 = arith.truncf %157 : vector<16x32xf32> to vector<16x32xbf16>
    %159 = arith.index_cast %137 : i32 to index
    %c0_40 = arith.constant 0 : index
    %160 = vector.load %arg11[%159, %c0_40] : memref<128x32xbf16, #tpu.memory_space<vmem>>, vector<16x32xbf16>
    tpu.vector_store %arg11[%159, %c0_40], %158 {strides = array<i32>} : memref<128x32xbf16, #tpu.memory_space<vmem>>, vector<16x32xbf16>,
    %c6_i32 = arith.constant 6 : i32
    %c16_i32_41 = arith.constant 16 : i32
    %161 = arith.muli %c6_i32, %c16_i32_41 : i32
    %162 = tpu.assume_multiple %161, 16 : i32
    %163 = arith.index_cast %162 : i32 to index
    %c0_42 = arith.constant 0 : index
    %164 = vector.load %arg12[%163, %c0_42] : memref<128x128xf32, #tpu.memory_space<vmem>>, vector<16x128xf32>
    %cst_43 = arith.constant dense<0.000000e+00> : vector<16x128xf32>
    %165 = tpu.matmul %158, %0, %cst_43 {dimension_numbers = #tpu.dot_dimension_numbers<[1], [0], [0], [1], [0, 0, 1, 1], [], []>} : vector<16x32xbf16>, vector<32x128xbf16>, vector<16x128xf32> -> vector<16x128xf32>
    %166 = arith.addf %164, %165 : vector<16x128xf32>
    %167 = vector.extract_strided_slice %166 {offsets = [0, 0], sizes = [16, 96], strides = [1, 1]} : vector<16x128xf32> to vector<16x96xf32>
    %168 = arith.negf %167 : vector<16x96xf32>
    %169 = math.exp %168 : vector<16x96xf32>
    %cst_44 = arith.constant 1.000000e+00 : f32
    %170 = vector.broadcast %cst_44 : f32 to vector<16x96xf32>
    %171 = arith.addf %170, %169 : vector<16x96xf32>
    %172 = arith.divf %170, %171 : vector<16x96xf32>
    %173 = vector.extract_strided_slice %172 {offsets = [0, 0], sizes = [16, 32], strides = [1, 1]} : vector<16x96xf32> to vector<16x32xf32>
    %174 = vector.extract_strided_slice %172 {offsets = [0, 32], sizes = [16, 32], strides = [1, 1]} : vector<16x96xf32> to vector<16x32xf32>
    %175 = vector.extract_strided_slice %172 {offsets = [0, 64], sizes = [16, 32], strides = [1, 1]} : vector<16x96xf32> to vector<16x32xf32>
    %176 = vector.extract_strided_slice %166 {offsets = [0, 96], sizes = [16, 32], strides = [1, 1]} : vector<16x128xf32> to vector<16x32xf32>
    %177 = math.tanh %176 : vector<16x32xf32>
    %178 = arith.mulf %174, %155 : vector<16x32xf32>
    %179 = arith.mulf %173, %177 : vector<16x32xf32>
    %180 = arith.addf %178, %179 : vector<16x32xf32>
    %181 = math.tanh %180 : vector<16x32xf32>
    %182 = arith.mulf %175, %181 : vector<16x32xf32>
    %183 = arith.truncf %182 : vector<16x32xf32> to vector<16x32xbf16>
    %184 = arith.index_cast %162 : i32 to index
    %c0_45 = arith.constant 0 : index
    %185 = vector.load %arg11[%184, %c0_45] : memref<128x32xbf16, #tpu.memory_space<vmem>>, vector<16x32xbf16>
    tpu.vector_store %arg11[%184, %c0_45], %183 {strides = array<i32>} : memref<128x32xbf16, #tpu.memory_space<vmem>>, vector<16x32xbf16>,
    %c7_i32 = arith.constant 7 : i32
    %c16_i32_46 = arith.constant 16 : i32
    %186 = arith.muli %c7_i32, %c16_i32_46 : i32
    %187 = tpu.assume_multiple %186, 16 : i32
    %188 = arith.index_cast %187 : i32 to index
    %c0_47 = arith.constant 0 : index
    %189 = vector.load %arg12[%188, %c0_47] : memref<128x128xf32, #tpu.memory_space<vmem>>, vector<16x128xf32>
    %cst_48 = arith.constant dense<0.000000e+00> : vector<16x128xf32>
    %190 = tpu.matmul %183, %0, %cst_48 {dimension_numbers = #tpu.dot_dimension_numbers<[1], [0], [0], [1], [0, 0, 1, 1], [], []>} : vector<16x32xbf16>, vector<32x128xbf16>, vector<16x128xf32> -> vector<16x128xf32>
    %191 = arith.addf %189, %190 : vector<16x128xf32>
    %192 = vector.extract_strided_slice %191 {offsets = [0, 0], sizes = [16, 96], strides = [1, 1]} : vector<16x128xf32> to vector<16x96xf32>
    %193 = arith.negf %192 : vector<16x96xf32>
    %194 = math.exp %193 : vector<16x96xf32>
    %cst_49 = arith.constant 1.000000e+00 : f32
    %195 = vector.broadcast %cst_49 : f32 to vector<16x96xf32>
    %196 = arith.addf %195, %194 : vector<16x96xf32>
    %197 = arith.divf %195, %196 : vector<16x96xf32>
    %198 = vector.extract_strided_slice %197 {offsets = [0, 0], sizes = [16, 32], strides = [1, 1]} : vector<16x96xf32> to vector<16x32xf32>
    %199 = vector.extract_strided_slice %197 {offsets = [0, 32], sizes = [16, 32], strides = [1, 1]} : vector<16x96xf32> to vector<16x32xf32>
    %200 = vector.extract_strided_slice %197 {offsets = [0, 64], sizes = [16, 32], strides = [1, 1]} : vector<16x96xf32> to vector<16x32xf32>
    %201 = vector.extract_strided_slice %191 {offsets = [0, 96], sizes = [16, 32], strides = [1, 1]} : vector<16x128xf32> to vector<16x32xf32>
    %202 = math.tanh %201 : vector<16x32xf32>
    %203 = arith.mulf %199, %180 : vector<16x32xf32>
    %204 = arith.mulf %198, %202 : vector<16x32xf32>
    %205 = arith.addf %203, %204 : vector<16x32xf32>
    %206 = math.tanh %205 : vector<16x32xf32>
    %207 = arith.mulf %200, %206 : vector<16x32xf32>
    %208 = arith.truncf %207 : vector<16x32xf32> to vector<16x32xbf16>
    %209 = arith.index_cast %187 : i32 to index
    %c0_50 = arith.constant 0 : index
    %210 = vector.load %arg11[%209, %c0_50] : memref<128x32xbf16, #tpu.memory_space<vmem>>, vector<16x32xbf16>
    tpu.vector_store %arg11[%209, %c0_50], %208 {strides = array<i32>} : memref<128x32xbf16, #tpu.memory_space<vmem>>, vector<16x32xbf16>,
    %c8_i32 = arith.constant 8 : i32
    %c0_51 = arith.constant 0 : index
    %c0_52 = arith.constant 0 : index
    %211 = vector.load %arg6[%c0_51, %c0_52] : memref<32x128xbf16, #tpu.memory_space<vmem>>, vector<32x128xbf16>
    %c0_53 = arith.constant 0 : index
    %c0_54 = arith.constant 0 : index
    %212 = vector.load %arg7[%c0_53, %c0_54] : memref<1x128xf32, #tpu.memory_space<vmem>>, vector<1x128xf32>
    %c0_55 = arith.constant 0 : index
    %c0_56 = arith.constant 0 : index
    %213 = vector.load %arg11[%c0_55, %c0_56] : memref<128x32xbf16, #tpu.memory_space<vmem>>, vector<128x32xbf16>
    %c0_57 = arith.constant 0 : index
    %c0_58 = arith.constant 0 : index
    %214 = vector.load %arg5[%c0_57, %c0_58] : memref<32x128xbf16, #tpu.memory_space<vmem>>, vector<32x128xbf16>
    %cst_59 = arith.constant dense<0.000000e+00> : vector<128x128xf32>
    %215 = tpu.matmul %213, %214, %cst_59 {dimension_numbers = #tpu.dot_dimension_numbers<[1], [0], [0], [1], [0, 0, 1, 1], [], []>} : vector<128x32xbf16>, vector<32x128xbf16>, vector<128x128xf32> -> vector<128x128xf32>
    %216 = vector.broadcast %212 : vector<1x128xf32> to vector<128x128xf32>
    %217 = arith.addf %215, %216 : vector<128x128xf32>
    %c0_60 = arith.constant 0 : index
    %c0_61 = arith.constant 0 : index
    %218 = vector.load %arg12[%c0_60, %c0_61] : memref<128x128xf32, #tpu.memory_space<vmem>>, vector<128x128xf32>
    tpu.vector_store %arg12[%c0_60, %c0_61], %217 {strides = array<i32>} : memref<128x128xf32, #tpu.memory_space<vmem>>, vector<128x128xf32>,
    %cst_62 = arith.constant 0.000000e+00 : bf16
    %219 = vector.broadcast %cst_62 : bf16 to vector<16x32xbf16>
    %cst_63 = arith.constant 0.000000e+00 : f32
    %220 = vector.broadcast %cst_63 : f32 to vector<16x32xf32>
    %c0_i32_64 = arith.constant 0 : i32
    %c16_i32_65 = arith.constant 16 : i32
    %221 = arith.muli %c0_i32_64, %c16_i32_65 : i32
    %222 = tpu.assume_multiple %221, 16 : i32
    %223 = arith.index_cast %222 : i32 to index
    %c0_66 = arith.constant 0 : index
    %224 = vector.load %arg12[%223, %c0_66] : memref<128x128xf32, #tpu.memory_space<vmem>>, vector<16x128xf32>
    %cst_67 = arith.constant dense<0.000000e+00> : vector<16x128xf32>
    %225 = tpu.matmul %219, %211, %cst_67 {dimension_numbers = #tpu.dot_dimension_numbers<[1], [0], [0], [1], [0, 0, 1, 1], [], []>} : vector<16x32xbf16>, vector<32x128xbf16>, vector<16x128xf32> -> vector<16x128xf32>
    %226 = arith.addf %224, %225 : vector<16x128xf32>
    %227 = vector.extract_strided_slice %226 {offsets = [0, 0], sizes = [16, 96], strides = [1, 1]} : vector<16x128xf32> to vector<16x96xf32>
    %228 = arith.negf %227 : vector<16x96xf32>
    %229 = math.exp %228 : vector<16x96xf32>
    %cst_68 = arith.constant 1.000000e+00 : f32
    %230 = vector.broadcast %cst_68 : f32 to vector<16x96xf32>
    %231 = arith.addf %230, %229 : vector<16x96xf32>
    %232 = arith.divf %230, %231 : vector<16x96xf32>
    %233 = vector.extract_strided_slice %232 {offsets = [0, 0], sizes = [16, 32], strides = [1, 1]} : vector<16x96xf32> to vector<16x32xf32>
    %234 = vector.extract_strided_slice %232 {offsets = [0, 32], sizes = [16, 32], strides = [1, 1]} : vector<16x96xf32> to vector<16x32xf32>
    %235 = vector.extract_strided_slice %232 {offsets = [0, 64], sizes = [16, 32], strides = [1, 1]} : vector<16x96xf32> to vector<16x32xf32>
    %236 = vector.extract_strided_slice %226 {offsets = [0, 96], sizes = [16, 32], strides = [1, 1]} : vector<16x128xf32> to vector<16x32xf32>
    %237 = math.tanh %236 : vector<16x32xf32>
    %238 = arith.mulf %234, %220 : vector<16x32xf32>
    %239 = arith.mulf %233, %237 : vector<16x32xf32>
    %240 = arith.addf %238, %239 : vector<16x32xf32>
    %241 = math.tanh %240 : vector<16x32xf32>
    %242 = arith.mulf %235, %241 : vector<16x32xf32>
    %243 = arith.truncf %242 : vector<16x32xf32> to vector<16x32xbf16>
    %244 = arith.index_cast %222 : i32 to index
    %c0_69 = arith.constant 0 : index
    %245 = vector.load %arg11[%244, %c0_69] : memref<128x32xbf16, #tpu.memory_space<vmem>>, vector<16x32xbf16>
    tpu.vector_store %arg11[%244, %c0_69], %243 {strides = array<i32>} : memref<128x32xbf16, #tpu.memory_space<vmem>>, vector<16x32xbf16>,
    %c1_i32_70 = arith.constant 1 : i32
    %c16_i32_71 = arith.constant 16 : i32
    %246 = arith.muli %c1_i32_70, %c16_i32_71 : i32
    %247 = tpu.assume_multiple %246, 16 : i32
    %248 = arith.index_cast %247 : i32 to index
    %c0_72 = arith.constant 0 : index
    %249 = vector.load %arg12[%248, %c0_72] : memref<128x128xf32, #tpu.memory_space<vmem>>, vector<16x128xf32>
    %cst_73 = arith.constant dense<0.000000e+00> : vector<16x128xf32>
    %250 = tpu.matmul %243, %211, %cst_73 {dimension_numbers = #tpu.dot_dimension_numbers<[1], [0], [0], [1], [0, 0, 1, 1], [], []>} : vector<16x32xbf16>, vector<32x128xbf16>, vector<16x128xf32> -> vector<16x128xf32>
    %251 = arith.addf %249, %250 : vector<16x128xf32>
    %252 = vector.extract_strided_slice %251 {offsets = [0, 0], sizes = [16, 96], strides = [1, 1]} : vector<16x128xf32> to vector<16x96xf32>
    %253 = arith.negf %252 : vector<16x96xf32>
    %254 = math.exp %253 : vector<16x96xf32>
    %cst_74 = arith.constant 1.000000e+00 : f32
    %255 = vector.broadcast %cst_74 : f32 to vector<16x96xf32>
    %256 = arith.addf %255, %254 : vector<16x96xf32>
    %257 = arith.divf %255, %256 : vector<16x96xf32>
    %258 = vector.extract_strided_slice %257 {offsets = [0, 0], sizes = [16, 32], strides = [1, 1]} : vector<16x96xf32> to vector<16x32xf32>
    %259 = vector.extract_strided_slice %257 {offsets = [0, 32], sizes = [16, 32], strides = [1, 1]} : vector<16x96xf32> to vector<16x32xf32>
    %260 = vector.extract_strided_slice %257 {offsets = [0, 64], sizes = [16, 32], strides = [1, 1]} : vector<16x96xf32> to vector<16x32xf32>
    %261 = vector.extract_strided_slice %251 {offsets = [0, 96], sizes = [16, 32], strides = [1, 1]} : vector<16x128xf32> to vector<16x32xf32>
    %262 = math.tanh %261 : vector<16x32xf32>
    %263 = arith.mulf %259, %240 : vector<16x32xf32>
    %264 = arith.mulf %258, %262 : vector<16x32xf32>
    %265 = arith.addf %263, %264 : vector<16x32xf32>
    %266 = math.tanh %265 : vector<16x32xf32>
    %267 = arith.mulf %260, %266 : vector<16x32xf32>
    %268 = arith.truncf %267 : vector<16x32xf32> to vector<16x32xbf16>
    %269 = arith.index_cast %247 : i32 to index
    %c0_75 = arith.constant 0 : index
    %270 = vector.load %arg11[%269, %c0_75] : memref<128x32xbf16, #tpu.memory_space<vmem>>, vector<16x32xbf16>
    tpu.vector_store %arg11[%269, %c0_75], %268 {strides = array<i32>} : memref<128x32xbf16, #tpu.memory_space<vmem>>, vector<16x32xbf16>,
    %c2_i32_76 = arith.constant 2 : i32
    %c16_i32_77 = arith.constant 16 : i32
    %271 = arith.muli %c2_i32_76, %c16_i32_77 : i32
    %272 = tpu.assume_multiple %271, 16 : i32
    %273 = arith.index_cast %272 : i32 to index
    %c0_78 = arith.constant 0 : index
    %274 = vector.load %arg12[%273, %c0_78] : memref<128x128xf32, #tpu.memory_space<vmem>>, vector<16x128xf32>
    %cst_79 = arith.constant dense<0.000000e+00> : vector<16x128xf32>
    %275 = tpu.matmul %268, %211, %cst_79 {dimension_numbers = #tpu.dot_dimension_numbers<[1], [0], [0], [1], [0, 0, 1, 1], [], []>} : vector<16x32xbf16>, vector<32x128xbf16>, vector<16x128xf32> -> vector<16x128xf32>
    %276 = arith.addf %274, %275 : vector<16x128xf32>
    %277 = vector.extract_strided_slice %276 {offsets = [0, 0], sizes = [16, 96], strides = [1, 1]} : vector<16x128xf32> to vector<16x96xf32>
    %278 = arith.negf %277 : vector<16x96xf32>
    %279 = math.exp %278 : vector<16x96xf32>
    %cst_80 = arith.constant 1.000000e+00 : f32
    %280 = vector.broadcast %cst_80 : f32 to vector<16x96xf32>
    %281 = arith.addf %280, %279 : vector<16x96xf32>
    %282 = arith.divf %280, %281 : vector<16x96xf32>
    %283 = vector.extract_strided_slice %282 {offsets = [0, 0], sizes = [16, 32], strides = [1, 1]} : vector<16x96xf32> to vector<16x32xf32>
    %284 = vector.extract_strided_slice %282 {offsets = [0, 32], sizes = [16, 32], strides = [1, 1]} : vector<16x96xf32> to vector<16x32xf32>
    %285 = vector.extract_strided_slice %282 {offsets = [0, 64], sizes = [16, 32], strides = [1, 1]} : vector<16x96xf32> to vector<16x32xf32>
    %286 = vector.extract_strided_slice %276 {offsets = [0, 96], sizes = [16, 32], strides = [1, 1]} : vector<16x128xf32> to vector<16x32xf32>
    %287 = math.tanh %286 : vector<16x32xf32>
    %288 = arith.mulf %284, %265 : vector<16x32xf32>
    %289 = arith.mulf %283, %287 : vector<16x32xf32>
    %290 = arith.addf %288, %289 : vector<16x32xf32>
    %291 = math.tanh %290 : vector<16x32xf32>
    %292 = arith.mulf %285, %291 : vector<16x32xf32>
    %293 = arith.truncf %292 : vector<16x32xf32> to vector<16x32xbf16>
    %294 = arith.index_cast %272 : i32 to index
    %c0_81 = arith.constant 0 : index
    %295 = vector.load %arg11[%294, %c0_81] : memref<128x32xbf16, #tpu.memory_space<vmem>>, vector<16x32xbf16>
    tpu.vector_store %arg11[%294, %c0_81], %293 {strides = array<i32>} : memref<128x32xbf16, #tpu.memory_space<vmem>>, vector<16x32xbf16>,
    %c3_i32_82 = arith.constant 3 : i32
    %c16_i32_83 = arith.constant 16 : i32
    %296 = arith.muli %c3_i32_82, %c16_i32_83 : i32
    %297 = tpu.assume_multiple %296, 16 : i32
    %298 = arith.index_cast %297 : i32 to index
    %c0_84 = arith.constant 0 : index
    %299 = vector.load %arg12[%298, %c0_84] : memref<128x128xf32, #tpu.memory_space<vmem>>, vector<16x128xf32>
    %cst_85 = arith.constant dense<0.000000e+00> : vector<16x128xf32>
    %300 = tpu.matmul %293, %211, %cst_85 {dimension_numbers = #tpu.dot_dimension_numbers<[1], [0], [0], [1], [0, 0, 1, 1], [], []>} : vector<16x32xbf16>, vector<32x128xbf16>, vector<16x128xf32> -> vector<16x128xf32>
    %301 = arith.addf %299, %300 : vector<16x128xf32>
    %302 = vector.extract_strided_slice %301 {offsets = [0, 0], sizes = [16, 96], strides = [1, 1]} : vector<16x128xf32> to vector<16x96xf32>
    %303 = arith.negf %302 : vector<16x96xf32>
    %304 = math.exp %303 : vector<16x96xf32>
    %cst_86 = arith.constant 1.000000e+00 : f32
    %305 = vector.broadcast %cst_86 : f32 to vector<16x96xf32>
    %306 = arith.addf %305, %304 : vector<16x96xf32>
    %307 = arith.divf %305, %306 : vector<16x96xf32>
    %308 = vector.extract_strided_slice %307 {offsets = [0, 0], sizes = [16, 32], strides = [1, 1]} : vector<16x96xf32> to vector<16x32xf32>
    %309 = vector.extract_strided_slice %307 {offsets = [0, 32], sizes = [16, 32], strides = [1, 1]} : vector<16x96xf32> to vector<16x32xf32>
    %310 = vector.extract_strided_slice %307 {offsets = [0, 64], sizes = [16, 32], strides = [1, 1]} : vector<16x96xf32> to vector<16x32xf32>
    %311 = vector.extract_strided_slice %301 {offsets = [0, 96], sizes = [16, 32], strides = [1, 1]} : vector<16x128xf32> to vector<16x32xf32>
    %312 = math.tanh %311 : vector<16x32xf32>
    %313 = arith.mulf %309, %290 : vector<16x32xf32>
    %314 = arith.mulf %308, %312 : vector<16x32xf32>
    %315 = arith.addf %313, %314 : vector<16x32xf32>
    %316 = math.tanh %315 : vector<16x32xf32>
    %317 = arith.mulf %310, %316 : vector<16x32xf32>
    %318 = arith.truncf %317 : vector<16x32xf32> to vector<16x32xbf16>
    %319 = arith.index_cast %297 : i32 to index
    %c0_87 = arith.constant 0 : index
    %320 = vector.load %arg11[%319, %c0_87] : memref<128x32xbf16, #tpu.memory_space<vmem>>, vector<16x32xbf16>
    tpu.vector_store %arg11[%319, %c0_87], %318 {strides = array<i32>} : memref<128x32xbf16, #tpu.memory_space<vmem>>, vector<16x32xbf16>,
    %c4_i32_88 = arith.constant 4 : i32
    %c16_i32_89 = arith.constant 16 : i32
    %321 = arith.muli %c4_i32_88, %c16_i32_89 : i32
    %322 = tpu.assume_multiple %321, 16 : i32
    %323 = arith.index_cast %322 : i32 to index
    %c0_90 = arith.constant 0 : index
    %324 = vector.load %arg12[%323, %c0_90] : memref<128x128xf32, #tpu.memory_space<vmem>>, vector<16x128xf32>
    %cst_91 = arith.constant dense<0.000000e+00> : vector<16x128xf32>
    %325 = tpu.matmul %318, %211, %cst_91 {dimension_numbers = #tpu.dot_dimension_numbers<[1], [0], [0], [1], [0, 0, 1, 1], [], []>} : vector<16x32xbf16>, vector<32x128xbf16>, vector<16x128xf32> -> vector<16x128xf32>
    %326 = arith.addf %324, %325 : vector<16x128xf32>
    %327 = vector.extract_strided_slice %326 {offsets = [0, 0], sizes = [16, 96], strides = [1, 1]} : vector<16x128xf32> to vector<16x96xf32>
    %328 = arith.negf %327 : vector<16x96xf32>
    %329 = math.exp %328 : vector<16x96xf32>
    %cst_92 = arith.constant 1.000000e+00 : f32
    %330 = vector.broadcast %cst_92 : f32 to vector<16x96xf32>
    %331 = arith.addf %330, %329 : vector<16x96xf32>
    %332 = arith.divf %330, %331 : vector<16x96xf32>
    %333 = vector.extract_strided_slice %332 {offsets = [0, 0], sizes = [16, 32], strides = [1, 1]} : vector<16x96xf32> to vector<16x32xf32>
    %334 = vector.extract_strided_slice %332 {offsets = [0, 32], sizes = [16, 32], strides = [1, 1]} : vector<16x96xf32> to vector<16x32xf32>
    %335 = vector.extract_strided_slice %332 {offsets = [0, 64], sizes = [16, 32], strides = [1, 1]} : vector<16x96xf32> to vector<16x32xf32>
    %336 = vector.extract_strided_slice %326 {offsets = [0, 96], sizes = [16, 32], strides = [1, 1]} : vector<16x128xf32> to vector<16x32xf32>
    %337 = math.tanh %336 : vector<16x32xf32>
    %338 = arith.mulf %334, %315 : vector<16x32xf32>
    %339 = arith.mulf %333, %337 : vector<16x32xf32>
    %340 = arith.addf %338, %339 : vector<16x32xf32>
    %341 = math.tanh %340 : vector<16x32xf32>
    %342 = arith.mulf %335, %341 : vector<16x32xf32>
    %343 = arith.truncf %342 : vector<16x32xf32> to vector<16x32xbf16>
    %344 = arith.index_cast %322 : i32 to index
    %c0_93 = arith.constant 0 : index
    %345 = vector.load %arg11[%344, %c0_93] : memref<128x32xbf16, #tpu.memory_space<vmem>>, vector<16x32xbf16>
    tpu.vector_store %arg11[%344, %c0_93], %343 {strides = array<i32>} : memref<128x32xbf16, #tpu.memory_space<vmem>>, vector<16x32xbf16>,
    %c5_i32_94 = arith.constant 5 : i32
    %c16_i32_95 = arith.constant 16 : i32
    %346 = arith.muli %c5_i32_94, %c16_i32_95 : i32
    %347 = tpu.assume_multiple %346, 16 : i32
    %348 = arith.index_cast %347 : i32 to index
    %c0_96 = arith.constant 0 : index
    %349 = vector.load %arg12[%348, %c0_96] : memref<128x128xf32, #tpu.memory_space<vmem>>, vector<16x128xf32>
    %cst_97 = arith.constant dense<0.000000e+00> : vector<16x128xf32>
    %350 = tpu.matmul %343, %211, %cst_97 {dimension_numbers = #tpu.dot_dimension_numbers<[1], [0], [0], [1], [0, 0, 1, 1], [], []>} : vector<16x32xbf16>, vector<32x128xbf16>, vector<16x128xf32> -> vector<16x128xf32>
    %351 = arith.addf %349, %350 : vector<16x128xf32>
    %352 = vector.extract_strided_slice %351 {offsets = [0, 0], sizes = [16, 96], strides = [1, 1]} : vector<16x128xf32> to vector<16x96xf32>
    %353 = arith.negf %352 : vector<16x96xf32>
    %354 = math.exp %353 : vector<16x96xf32>
    %cst_98 = arith.constant 1.000000e+00 : f32
    %355 = vector.broadcast %cst_98 : f32 to vector<16x96xf32>
    %356 = arith.addf %355, %354 : vector<16x96xf32>
    %357 = arith.divf %355, %356 : vector<16x96xf32>
    %358 = vector.extract_strided_slice %357 {offsets = [0, 0], sizes = [16, 32], strides = [1, 1]} : vector<16x96xf32> to vector<16x32xf32>
    %359 = vector.extract_strided_slice %357 {offsets = [0, 32], sizes = [16, 32], strides = [1, 1]} : vector<16x96xf32> to vector<16x32xf32>
    %360 = vector.extract_strided_slice %357 {offsets = [0, 64], sizes = [16, 32], strides = [1, 1]} : vector<16x96xf32> to vector<16x32xf32>
    %361 = vector.extract_strided_slice %351 {offsets = [0, 96], sizes = [16, 32], strides = [1, 1]} : vector<16x128xf32> to vector<16x32xf32>
    %362 = math.tanh %361 : vector<16x32xf32>
    %363 = arith.mulf %359, %340 : vector<16x32xf32>
    %364 = arith.mulf %358, %362 : vector<16x32xf32>
    %365 = arith.addf %363, %364 : vector<16x32xf32>
    %366 = math.tanh %365 : vector<16x32xf32>
    %367 = arith.mulf %360, %366 : vector<16x32xf32>
    %368 = arith.truncf %367 : vector<16x32xf32> to vector<16x32xbf16>
    %369 = arith.index_cast %347 : i32 to index
    %c0_99 = arith.constant 0 : index
    %370 = vector.load %arg11[%369, %c0_99] : memref<128x32xbf16, #tpu.memory_space<vmem>>, vector<16x32xbf16>
    tpu.vector_store %arg11[%369, %c0_99], %368 {strides = array<i32>} : memref<128x32xbf16, #tpu.memory_space<vmem>>, vector<16x32xbf16>,
    %c6_i32_100 = arith.constant 6 : i32
    %c16_i32_101 = arith.constant 16 : i32
    %371 = arith.muli %c6_i32_100, %c16_i32_101 : i32
    %372 = tpu.assume_multiple %371, 16 : i32
    %373 = arith.index_cast %372 : i32 to index
    %c0_102 = arith.constant 0 : index
    %374 = vector.load %arg12[%373, %c0_102] : memref<128x128xf32, #tpu.memory_space<vmem>>, vector<16x128xf32>
    %cst_103 = arith.constant dense<0.000000e+00> : vector<16x128xf32>
    %375 = tpu.matmul %368, %211, %cst_103 {dimension_numbers = #tpu.dot_dimension_numbers<[1], [0], [0], [1], [0, 0, 1, 1], [], []>} : vector<16x32xbf16>, vector<32x128xbf16>, vector<16x128xf32> -> vector<16x128xf32>
    %376 = arith.addf %374, %375 : vector<16x128xf32>
    %377 = vector.extract_strided_slice %376 {offsets = [0, 0], sizes = [16, 96], strides = [1, 1]} : vector<16x128xf32> to vector<16x96xf32>
    %378 = arith.negf %377 : vector<16x96xf32>
    %379 = math.exp %378 : vector<16x96xf32>
    %cst_104 = arith.constant 1.000000e+00 : f32
    %380 = vector.broadcast %cst_104 : f32 to vector<16x96xf32>
    %381 = arith.addf %380, %379 : vector<16x96xf32>
    %382 = arith.divf %380, %381 : vector<16x96xf32>
    %383 = vector.extract_strided_slice %382 {offsets = [0, 0], sizes = [16, 32], strides = [1, 1]} : vector<16x96xf32> to vector<16x32xf32>
    %384 = vector.extract_strided_slice %382 {offsets = [0, 32], sizes = [16, 32], strides = [1, 1]} : vector<16x96xf32> to vector<16x32xf32>
    %385 = vector.extract_strided_slice %382 {offsets = [0, 64], sizes = [16, 32], strides = [1, 1]} : vector<16x96xf32> to vector<16x32xf32>
    %386 = vector.extract_strided_slice %376 {offsets = [0, 96], sizes = [16, 32], strides = [1, 1]} : vector<16x128xf32> to vector<16x32xf32>
    %387 = math.tanh %386 : vector<16x32xf32>
    %388 = arith.mulf %384, %365 : vector<16x32xf32>
    %389 = arith.mulf %383, %387 : vector<16x32xf32>
    %390 = arith.addf %388, %389 : vector<16x32xf32>
    %391 = math.tanh %390 : vector<16x32xf32>
    %392 = arith.mulf %385, %391 : vector<16x32xf32>
    %393 = arith.truncf %392 : vector<16x32xf32> to vector<16x32xbf16>
    %394 = arith.index_cast %372 : i32 to index
    %c0_105 = arith.constant 0 : index
    %395 = vector.load %arg11[%394, %c0_105] : memref<128x32xbf16, #tpu.memory_space<vmem>>, vector<16x32xbf16>
    tpu.vector_store %arg11[%394, %c0_105], %393 {strides = array<i32>} : memref<128x32xbf16, #tpu.memory_space<vmem>>, vector<16x32xbf16>,
    %c7_i32_106 = arith.constant 7 : i32
    %c16_i32_107 = arith.constant 16 : i32
    %396 = arith.muli %c7_i32_106, %c16_i32_107 : i32
    %397 = tpu.assume_multiple %396, 16 : i32
    %398 = arith.index_cast %397 : i32 to index
    %c0_108 = arith.constant 0 : index
    %399 = vector.load %arg12[%398, %c0_108] : memref<128x128xf32, #tpu.memory_space<vmem>>, vector<16x128xf32>
    %cst_109 = arith.constant dense<0.000000e+00> : vector<16x128xf32>
    %400 = tpu.matmul %393, %211, %cst_109 {dimension_numbers = #tpu.dot_dimension_numbers<[1], [0], [0], [1], [0, 0, 1, 1], [], []>} : vector<16x32xbf16>, vector<32x128xbf16>, vector<16x128xf32> -> vector<16x128xf32>
    %401 = arith.addf %399, %400 : vector<16x128xf32>
    %402 = vector.extract_strided_slice %401 {offsets = [0, 0], sizes = [16, 96], strides = [1, 1]} : vector<16x128xf32> to vector<16x96xf32>
    %403 = arith.negf %402 : vector<16x96xf32>
    %404 = math.exp %403 : vector<16x96xf32>
    %cst_110 = arith.constant 1.000000e+00 : f32
    %405 = vector.broadcast %cst_110 : f32 to vector<16x96xf32>
    %406 = arith.addf %405, %404 : vector<16x96xf32>
    %407 = arith.divf %405, %406 : vector<16x96xf32>
    %408 = vector.extract_strided_slice %407 {offsets = [0, 0], sizes = [16, 32], strides = [1, 1]} : vector<16x96xf32> to vector<16x32xf32>
    %409 = vector.extract_strided_slice %407 {offsets = [0, 32], sizes = [16, 32], strides = [1, 1]} : vector<16x96xf32> to vector<16x32xf32>
    %410 = vector.extract_strided_slice %407 {offsets = [0, 64], sizes = [16, 32], strides = [1, 1]} : vector<16x96xf32> to vector<16x32xf32>
    %411 = vector.extract_strided_slice %401 {offsets = [0, 96], sizes = [16, 32], strides = [1, 1]} : vector<16x128xf32> to vector<16x32xf32>
    %412 = math.tanh %411 : vector<16x32xf32>
    %413 = arith.mulf %409, %390 : vector<16x32xf32>
    %414 = arith.mulf %408, %412 : vector<16x32xf32>
    %415 = arith.addf %413, %414 : vector<16x32xf32>
    %416 = math.tanh %415 : vector<16x32xf32>
    %417 = arith.mulf %410, %416 : vector<16x32xf32>
    %418 = arith.truncf %417 : vector<16x32xf32> to vector<16x32xbf16>
    %419 = arith.index_cast %397 : i32 to index
    %c0_111 = arith.constant 0 : index
    %420 = vector.load %arg11[%419, %c0_111] : memref<128x32xbf16, #tpu.memory_space<vmem>>, vector<16x32xbf16>
    tpu.vector_store %arg11[%419, %c0_111], %418 {strides = array<i32>} : memref<128x32xbf16, #tpu.memory_space<vmem>>, vector<16x32xbf16>,
    %c8_i32_112 = arith.constant 8 : i32
    %c0_113 = arith.constant 0 : index
    %c0_114 = arith.constant 0 : index
    %421 = vector.load %arg11[%c0_113, %c0_114] : memref<128x32xbf16, #tpu.memory_space<vmem>>, vector<128x32xbf16>
    %c0_115 = arith.constant 0 : index
    %c0_116 = arith.constant 0 : index
    %422 = vector.load %arg8[%c0_115, %c0_116] : memref<32x128xbf16, #tpu.memory_space<vmem>>, vector<32x128xbf16>
    %cst_117 = arith.constant dense<0.000000e+00> : vector<128x128xf32>
    %423 = tpu.matmul %421, %422, %cst_117 {dimension_numbers = #tpu.dot_dimension_numbers<[1], [0], [0], [1], [0, 0, 1, 1], [], []>} : vector<128x32xbf16>, vector<32x128xbf16>, vector<128x128xf32> -> vector<128x128xf32>
    %c0_118 = arith.constant 0 : index
    %c0_119 = arith.constant 0 : index
    %424 = vector.load %arg9[%c0_118, %c0_119] : memref<1x128xf32, #tpu.memory_space<vmem>>, vector<1x128xf32>
    %425 = vector.broadcast %424 : vector<1x128xf32> to vector<128x128xf32>
    %426 = arith.addf %423, %425 : vector<128x128xf32>
    %427 = arith.negf %426 : vector<128x128xf32>
    %428 = math.exp %427 : vector<128x128xf32>
    %cst_120 = arith.constant 1.000000e+00 : f32
    %429 = vector.broadcast %cst_120 : f32 to vector<128x128xf32>
    %430 = arith.addf %429, %428 : vector<128x128xf32>
    %431 = arith.divf %429, %430 : vector<128x128xf32>
    %c0_121 = arith.constant 0 : index
    %c0_122 = arith.constant 0 : index
    %c0_123 = arith.constant 0 : index
    %432 = vector.load %arg10[%c0_121, %c0_122, %c0_123] : memref<1x128x128xf32, #tpu.memory_space<vmem>>, vector<1x128x128xf32>
    %433 = vector.shape_cast %432 : vector<1x128x128xf32> to vector<128x128xf32>
    %434 = vector.shape_cast %431 : vector<128x128xf32> to vector<1x128x128xf32>
    tpu.vector_store %arg10[%c0_121, %c0_122, %c0_123], %434 {strides = array<i32>} : memref<1x128x128xf32, #tpu.memory_space<vmem>>, vector<1x128x128xf32>,
    return
  }
  func.func @transform_0(%arg0: i32) -> (i32, i32, i32) {
    %c0_i32 = arith.constant 0 : i32
    %c0_i32_0 = arith.constant 0 : i32
    %c0_i32_1 = arith.constant 0 : i32
    return %arg0, %c0_i32, %c0_i32_0 : i32, i32, i32
  }
  func.func @transform_1(%arg0: i32) -> (i32, i32) {
    %c0_i32 = arith.constant 0 : i32
    %c0_i32_0 = arith.constant 0 : i32
    %c0_i32_1 = arith.constant 0 : i32
    return %c0_i32, %c0_i32_0 : i32, i32
  }
  func.func @transform_2(%arg0: i32) -> (i32, i32) {
    %c0_i32 = arith.constant 0 : i32
    %c0_i32_0 = arith.constant 0 : i32
    %c0_i32_1 = arith.constant 0 : i32
    return %c0_i32, %c0_i32_0 : i32, i32
  }
  func.func @transform_3(%arg0: i32) -> (i32, i32) {
    %c0_i32 = arith.constant 0 : i32
    %c0_i32_0 = arith.constant 0 : i32
    %c0_i32_1 = arith.constant 0 : i32
    return %c0_i32, %c0_i32_0 : i32, i32
  }
  func.func @transform_4(%arg0: i32) -> (i32, i32) {
    %c0_i32 = arith.constant 0 : i32
    %c0_i32_0 = arith.constant 0 : i32
    %c0_i32_1 = arith.constant 0 : i32
    return %c0_i32, %c0_i32_0 : i32, i32
  }
  func.func @transform_5(%arg0: i32) -> (i32, i32) {
    %c0_i32 = arith.constant 0 : i32
    %c0_i32_0 = arith.constant 0 : i32
    %c0_i32_1 = arith.constant 0 : i32
    return %c0_i32, %c0_i32_0 : i32, i32
  }
  func.func @transform_6(%arg0: i32) -> (i32, i32) {
    %c0_i32 = arith.constant 0 : i32
    %c0_i32_0 = arith.constant 0 : i32
    %c0_i32_1 = arith.constant 0 : i32
    return %c0_i32, %c0_i32_0 : i32, i32
  }
  func.func @transform_7(%arg0: i32) -> (i32, i32) {
    %c0_i32 = arith.constant 0 : i32
    %c0_i32_0 = arith.constant 0 : i32
    %c0_i32_1 = arith.constant 0 : i32
    return %c0_i32, %c0_i32_0 : i32, i32
  }
  func.func @transform_8(%arg0: i32) -> (i32, i32) {
    %c0_i32 = arith.constant 0 : i32
    %c0_i32_0 = arith.constant 0 : i32
    %c0_i32_1 = arith.constant 0 : i32
    return %c0_i32, %c0_i32_0 : i32, i32
  }
  func.func @transform_9(%arg0: i32) -> (i32, i32, i32) {
    %c0_i32 = arith.constant 0 : i32
    %c0_i32_0 = arith.constant 0 : i32
    %c0_i32_1 = arith.constant 0 : i32
    return %arg0, %c0_i32, %c0_i32_0 : i32, i32, i32
  }
}

</mosaic_0001>

<bundles_post_ra>
// kernel: _forward_impl.1
= control target key start
LH: loop header
LB: loop body
LE: loop exit
PB: predicated region body
PF: predicated region fallthrough
CT: control target
= control target key end

     0   :  { %vm105_vm0 = vcmask 130048   ;;  %v3240_v4 = vmov 0   ;;  %s3241_s17 = smov 32   ;;  %s3242_s20 = smov 64   ;;  %vm209_vm9 = vcmask 261120   ;;  %s4032_s1 = inlined_call_operand.vmem [shape: bf16[16,128], index: 1, kind: input, shape index: {}]   ;;  %s4033_s2 = inlined_call_operand.vmem [shape: bf16[32,128], index: 2, kind: input, shape index: {}]   ;;  %s4034_s0 = inlined_call_operand.vmem [shape: bf16[1,128,16], index: 0, kind: input, shape index: {}]   ;;  %s4035_s3 = inlined_call_operand.vmem [shape: f32[1,128], index: 3, kind: input, shape index: {}]   ;;  %s4036_s4 = inlined_call_operand.vmem [shape: bf16[32,128], index: 4, kind: input, shape index: {}]   ;;  %s4037_s6 = inlined_call_operand.vmem [shape: f32[1,128], index: 6, kind: input, shape index: {}]   ;;  %s4038_s5 = inlined_call_operand.vmem [shape: bf16[32,128], index: 5, kind: input, shape index: {}]   ;;  %s4039_s7 = inlined_call_operand.vmem [shape: bf16[32,128], index: 7, kind: input, shape index: {}]   ;;  %s4040_s8 = inlined_call_operand.vmem [shape: f32[1,128], index: 8, kind: input, shape index: {}]   ;;  %s4041_s9 = inlined_call_operand.vmem [shape: f32[1,128,128], index: 9, kind: output, shape index: {}]  }
   0x1   :  { %v2884_v0 = vld [vmem:[%s4032_s1] sm:$0xff]  ;;  %v3299_v1 = vld [vmem:[%s4033_s2 + $0x8] sm:$0xff] }
   0x2   :  { %v2876_v2 = vld [vmem:[%s4034_s0] sm:$0xff]  ;;  %137 = vmatpush.bf16.msra.mxu0 %v2884_v0  ;;  %219 = vmatpush.bf16.msra.mxu1 %v3299_v1  ;;  %v2877_v54 = vld [vmem:[%s4034_s0 + $0x8] sm:$0xff] }
   0x3   :  { %v3308_v3 = vld [vmem:[%s4033_s2] sm:$0xff]  ;;  %333 = vmatpush.bf16.msra.mxu2 %v3299_v1  ;;  %447 = vmatpush.bf16.msra.mxu3 %v3299_v1 }
   0x4   :  { %v3328_v5 = vld [vmem:[%s4035_s3] ss:$0 sm:$0xff] }
   0x5   :  { %2692 = vmatmul.msk.bf16.vlgmr.msra.gmra.mxu0 %vm105_vm0, %v2876_v2 }
   0x6   :  { %220 = vmatpush.bf16.msra.mxu1 %v3308_v3 }
   0x7   :  { %334 = vmatpush.bf16.msra.mxu2 %v3308_v3  ;;  %448 = vmatpush.bf16.msra.mxu3 %v3308_v3 }
   0x9   :  { %221 = vmatmul.bf16.vlgmr.msra.gmra.mxu1 %v3240_v4 }
   0xa   :  { %561 = vmatpush.bf16.msrb.mxu1 %v3299_v1 }
   0xb   :  { %675 = vmatpush.bf16.msrb.mxu2 %v3299_v1  ;;  %789 = vmatpush.bf16.msrb.mxu3 %v3299_v1 }
   0xe   :  { %562 = vmatpush.bf16.msrb.mxu1 %v3308_v3 }
   0xf   :  { %676 = vmatpush.bf16.msrb.mxu2 %v3308_v3  ;;  %790 = vmatpush.bf16.msrb.mxu3 %v3308_v3 }
  0x12   :  { %903 = vmatpush.bf16.msra.mxu1 %v3299_v1 }
  0x15   :  { %2693 = vmatmul.msk.bf16.gmra.mxu0 %vm105_vm0, %v2877_v54 }
  0x16   :  { %904 = vmatpush.bf16.msra.mxu1 %v3308_v3 }
  0x82   :  { %v139_v6 = vpop.f32.mrf.mxu0 }
  0x83   :  { %v140_v7 = vadd.f32 %v3328_v5, %v139_v6 }
  0x86   :  { %v222_v8 = vpop.f32.mrf.mxu1 }
  0x87   :  { %v227_v9 = vadd.f32 %v222_v8, %v140_v7 }
  0x89   :  { %2917 = vtanh.f32 %v227_v9  ;;  %v2708_v16 = vmul.f32 -1.442695, %v227_v9 }
  0x8a   :  { %v141_v10 = vpop.f32.mrf.mxu0 }
  0x8b   :  { %v142_v11 = vadd.f32 %v3328_v5, %v141_v10 }
  0x8e   :  { %v224_v12 = vpop.f32.mrf.mxu1 }
  0x8f   :  { %v2918_v13 = vpop.eup %2917  ;;  %v228_v14 = vadd.f32 %v224_v12, %v142_v11 }
  0x90   :  { %273 = vrot.lane.b32.xlu0 %v2918_v13, %s3241_s17 }
  0x91   :  { %2919 = vtanh.f32 %v228_v14  ;;  %v2709_v17 = vmul.f32 -1.442695, %v228_v14 }
  0x92   :  { %2921 = vpow2.f32 %v2708_v16  ;;  %v144_v2 = vpop.f32.mrf.mxu0 }
  0x93   :  { %2923 = vpow2.f32 %v2709_v17  ;;  %v145_v6 = vadd.f32 %v3328_v5, %v144_v2 }
  0x97   :  { %v2920_v15 = vpop.eup %2919 }
  0x98   :  { %275 = vrot.lane.b32.xlu0 %v2920_v15, %s3241_s17  ;;  %v2922_v18 = vpop.eup %2921 }
  0x99   :  { %v235_v19 = vadd.f32 1.0, %v2922_v18  ;;  %v2924_v20 = vpop.eup %2923 }
  0x9a   :  { %v236_v21 = vadd.f32 1.0, %v2924_v20  ;;  %v146_v9 = vpop.f32.mrf.mxu0 }
  0x9b   :  { %2925 = vrcp.f32 %v235_v19  ;;  %v248_v30 = vand.u32 2147483648, %v235_v19  ;;  %vm242_vm2 = vweird.f32 %v235_v19  ;;  %v246_v31 = vand.u32 2147483647, %v235_v19 }
  0x9c   :  { %2927 = vrcp.f32 %v236_v21  ;;  %v263_v39 = vand.u32 2147483648, %v236_v21  ;;  %vm257_vm6 = vweird.f32 %v236_v21  ;;  %v261_v40 = vand.u32 2147483647, %v236_v21 }
  0x9d   :  { %v249_v34 = vor.u32 1.1754944e-38, %v248_v30  ;;  %vm247_vm4 = vcmp.eq.f32.partialorder %v246_v31, 8.507059e+37  ;;  %v147_v10 = vadd.f32 %v3328_v5, %v146_v9 }
  0x9e   :  { %v264_v42 = vor.u32 1.1754944e-38, %v263_v39  ;;  %vm262_vm8 = vcmp.eq.f32.partialorder %v261_v40, 8.507059e+37 }
  0xa1   :  { %v2926_v22 = vpop.eup %2925 }
  0xa2   :  { %v238_v23 = vmul.f32 %v2926_v22, %v235_v19  ;;  %v2928_v25 = vpop.eup %2927  ;;  %vm243_vm1 = vweird.f32 %v2926_v22 }
  0xa3   :  { %v253_v27 = vmul.f32 %v2928_v25, %v236_v21  ;;  %vm244_vm3 = vmor %vm242_vm2, %vm243_vm1  ;;  %vm258_vm5 = vweird.f32 %v2928_v25 }
  0xa4   :  { %v239_v24 = vsub.f32 1.0, %v238_v23  ;;  %vm259_vm7 = vmor %vm257_vm6, %vm258_vm5 }
  0xa5   :  { %v254_v29 = vsub.f32 1.0, %v253_v27 }
  0xa6   :  { %v240_v26 = vmul.f32 %v2926_v22, %v239_v24 }
  0xa7   :  { %v255_v33 = vmul.f32 %v2928_v25, %v254_v29 }
  0xa8   :  { %v241_v28 = vadd.f32 %v2926_v22, %v240_v26 }
  0xa9   :  { %v256_v38 = vadd.f32 %v2928_v25, %v255_v33 }
  0xaa   :  { %v245_v32 = vsel %vm244_vm3, %v2926_v22, %v241_v28 }
  0xab   :  { %v250_v36 = vsel %vm247_vm4, %v249_v34, %v245_v32  ;;  %v260_v41 = vsel %vm259_vm7, %v2928_v25, %v256_v38 }
  0xac   :  { %v265_v43 = vsel %vm262_vm8, %v264_v42, %v260_v41  ;;  %v269_v46 = vmul.f32 0.0, %v250_v36 }
  0xad   :  { %v270_v49 = vmul.f32 0.0, %v265_v43 }
 0x102   :  { %v274_v35 = vpop.permute.xlu0 %273 }
 0x103   :  { %v279_v37 = vmul.f32 %v274_v35, %v250_v36 }
 0x105   :  { %283 = vrot.lane.b32.xlu1 %v279_v37, %s3241_s17 }
 0x10a   :  { %v276_v44 = vpop.permute.xlu0 %275 }
 0x10b   :  { %v280_v45 = vmul.f32 %v276_v44, %v265_v43 }
 0x10d   :  { %285 = vrot.lane.b32.xlu1 %v280_v45, %s3241_s17 }
 0x177   :  { %v284_v47 = vpop.permute.xlu1 %283 }
 0x178   :  { %v3336_v48 = vadd.f32 %v284_v47, %v269_v46 }
 0x17a   :  { %2929 = vtanh.f32 %v3336_v48 }
 0x17f   :  { %v286_v50 = vpop.permute.xlu1 %285 }
 0x180   :  { %v2930_v51 = vpop.eup %2929  ;;  %v3339_v52 = vadd.f32 %v286_v50, %v270_v49 }
 0x181   :  { %295 = vrot.lane.b32.xlu2 %v2930_v51, %s3241_s17 }
 0x182   :  { %2931 = vtanh.f32 %v3339_v52 }
 0x188   :  { %v2932_v53 = vpop.eup %2931 }
 0x189   :  { %297 = vrot.lane.b32.xlu2 %v2932_v53, %s3241_s17 }
 0x1db   :  { %v296_v55 = vpop.permute.xlu2 %295 }
 0x1dc   :  { %v301_v56 = vmul.f32 %v296_v55, %v250_v36 }
 0x1de   :  { %v3348_v58 = vpack.c.bf16 %v301_v56, %v301_v56 }
 0x1e0   :  { %v319_v61 = vunpack.c.l.b16 %v3348_v58 }
 0x1e3   :  { %v298_v57 = vpop.permute.xlu2 %297 }
 0x1e4   :  { %v302_v59 = vmul.f32 %v298_v57, %v265_v43 }
 0x1e6   :  { %v3350_v60 = vpack.c.bf16 %v302_v59, %v302_v59 }
 0x1e8   :  { %v320_v62 = vunpack.c.l.b16 %v3350_v60 }
 0x1ea   :  { %v321_v63 = vpack.c.b16 %v320_v62, %v319_v61 }
 0x1ec   :  { %322 = vrot.lane.b32.xlu0 %v321_v63, %s3242_s20 }
 0x25e   :  { %v323_v0 = vpop.permute.xlu0 %322 }
 0x25f   :  { %2710 = vmatmul.msk.bf16.vlgmr.msra.gmra.mxu2 %vm209_vm9, %v323_v0 }
 0x260   :  { %1017 = vmatpush.bf16.msra.mxu2 %v3299_v1 }
 0x264   :  { %1018 = vmatpush.bf16.msra.mxu2 %v3308_v3 }
 0x2e2   :  { %v336_v7 = vpop.f32.mrf.mxu2 }
 0x2e3   :  { %v341_v8 = vadd.f32 %v336_v7, %v145_v6 }
 0x2e5   :  { %2933 = vtanh.f32 %v341_v8  ;;  %v2711_v16 = vmul.f32 -1.442695, %v341_v8 }
 0x2ea   :  { %v338_v11 = vpop.f32.mrf.mxu2 }
 0x2eb   :  { %v2934_v12 = vpop.eup %2933  ;;  %v342_v13 = vadd.f32 %v338_v11, %v147_v10 }
 0x2ec   :  { %387 = vrot.lane.b32.xlu1 %v2934_v12, %s3241_s17 }
 0x2ed   :  { %2935 = vtanh.f32 %v342_v13  ;;  %v2712_v1 = vmul.f32 -1.442695, %v342_v13 }
 0x2ef   :  { %2937 = vpow2.f32 %v2712_v1 }
 0x2f3   :  { %v2936_v14 = vpop.eup %2935 }
 0x2f4   :  { %389 = vrot.lane.b32.xlu2 %v2936_v14, %s3241_s17 }
 0x2f5   :  { %v2938_v3 = vpop.eup %2937 }
 0x2f6   :  { %v350_v15 = vadd.f32 1.0, %v2938_v3 }
 0x2f8   :  { %2939 = vrcp.f32 %v350_v15  ;;  %v377_v25 = vand.u32 2147483648, %v350_v15  ;;  %vm371_vm11 = vweird.f32 %v350_v15  ;;  %v375_v26 = vand.u32 2147483647, %v350_v15 }
 0x2f9   :  { %2941 = vpow2.f32 %v2711_v16 }
 0x2fa   :  { %v378_v29 = vor.u32 1.1754944e-38, %v377_v25  ;;  %vm376_vm13 = vcmp.eq.f32.partialorder %v375_v26, 8.507059e+37 }
 0x2fe   :  { %v2940_v17 = vpop.eup %2939 }
 0x2ff   :  { %v2942_v18 = vpop.eup %2941  ;;  %v367_v19 = vmul.f32 %v2940_v17, %v350_v15  ;;  %vm372_vm10 = vweird.f32 %v2940_v17 }
 0x300   :  { %v349_v20 = vadd.f32 1.0, %v2942_v18  ;;  %vm373_vm12 = vmor %vm371_vm11, %vm372_vm10 }
 0x301   :  { %v368_v21 = vsub.f32 1.0, %v367_v19 }
 0x302   :  { %2943 = vrcp.f32 %v349_v20  ;;  %v362_v36 = vand.u32 2147483648, %v349_v20  ;;  %vm356_vm15 = vweird.f32 %v349_v20  ;;  %v360_v37 = vand.u32 2147483647, %v349_v20 }
 0x303   :  { %v369_v22 = vmul.f32 %v2940_v17, %v368_v21 }
 0x304   :  { %v363_v39 = vor.u32 1.1754944e-38, %v362_v36  ;;  %vm361_vm2 = vcmp.eq.f32.partialorder %v360_v37, 8.507059e+37 }
 0x305   :  { %v370_v23 = vadd.f32 %v2940_v17, %v369_v22 }
 0x307   :  { %v374_v27 = vsel %vm373_vm12, %v2940_v17, %v370_v23 }
 0x308   :  { %v2944_v24 = vpop.eup %2943  ;;  %v379_v31 = vsel %vm376_vm13, %v378_v29, %v374_v27 }
 0x309   :  { %v352_v28 = vmul.f32 %v2944_v24, %v349_v20  ;;  %vm357_vm14 = vweird.f32 %v2944_v24  ;;  %v384_v43 = vmul.f32 %v379_v31, %v3339_v52  ;;  %v2878_v52 = vld [vmem:[%s4034_s0 + $0x10] sm:$0xff] }
 0x30a   :  { %vm358_vm1 = vmor %vm356_vm15, %vm357_vm14  ;;  %2694 = vmatmul.msk.bf16.gmra.mxu0 %vm105_vm0, %v2878_v52 }
 0x30b   :  { %v353_v33 = vsub.f32 1.0, %v352_v28 }
 0x30d   :  { %v354_v34 = vmul.f32 %v2944_v24, %v353_v33 }
 0x30f   :  { %v355_v35 = vadd.f32 %v2944_v24, %v354_v34 }
 0x311   :  { %v359_v38 = vsel %vm358_vm1, %v2944_v24, %v355_v35 }
 0x312   :  { %v364_v41 = vsel %vm361_vm2, %v363_v39, %v359_v38 }
 0x313   :  { %v383_v47 = vmul.f32 %v364_v41, %v3336_v48 }
 0x34e   :  { %v390_v30 = vpop.permute.xlu2 %389 }
 0x34f   :  { %v394_v32 = vmul.f32 %v390_v30, %v379_v31 }
 0x351   :  { %399 = vrot.lane.b32.xlu1 %v394_v32, %s3241_s17 }
 0x35e   :  { %v388_v40 = vpop.permute.xlu1 %387 }
 0x35f   :  { %v393_v42 = vmul.f32 %v388_v40, %v364_v41 }
 0x361   :  { %397 = vrot.lane.b32.xlu0 %v393_v42, %s3241_s17 }
 0x387   :  { %v149_v0 = vpop.f32.mrf.mxu0 }
 0x388   :  { %v150_v2 = vadd.f32 %v3328_v5, %v149_v0 }
 0x38f   :  { %v151_v8 = vpop.f32.mrf.mxu0 }
 0x390   :  { %v152_v9 = vadd.f32 %v3328_v5, %v151_v8 }
 0x3c3   :  { %v400_v44 = vpop.permute.xlu1 %399 }
 0x3c4   :  { %v3365_v45 = vadd.f32 %v400_v44, %v384_v43 }
 0x3c6   :  { %2945 = vtanh.f32 %v3365_v45 }
 0x3cc   :  { %v2946_v46 = vpop.eup %2945 }
 0x3cd   :  { %411 = vrot.lane.b32.xlu0 %v2946_v46, %s3241_s17 }
 0x3d3   :  { %v398_v49 = vpop.permute.xlu0 %397 }
 0x3d4   :  { %v3370_v50 = vadd.f32 %v398_v49, %v383_v47 }
 0x3d6   :  { %2947 = vtanh.f32 %v3370_v50 }
 0x3dc   :  { %v2948_v51 = vpop.eup %2947 }
 0x3dd   :  { %409 = vrot.lane.b32.xlu2 %v2948_v51, %s3241_s17 }
 0x437   :  { %v410_v53 = vpop.permute.xlu2 %409 }
 0x438   :  { %v415_v54 = vmul.f32 %v410_v53, %v364_v41 }
 0x43a   :  { %v3378_v56 = vpack.c.bf16 %v415_v54, %v415_v54 }
 0x43c   :  { %v433_v59 = vunpack.c.l.b16 %v3378_v56 }
 0x43f   :  { %v412_v55 = vpop.permute.xlu0 %411 }
 0x440   :  { %v416_v48 = vmul.f32 %v412_v55, %v379_v31 }
 0x442   :  { %v3380_v57 = vpack.c.bf16 %v416_v48, %v416_v48 }
 0x444   :  { %v434_v61 = vunpack.c.l.b16 %v3380_v57 }
 0x446   :  { %v435_v62 = vpack.c.b16 %v434_v61, %v433_v59 }
 0x448   :  { %436 = vrot.lane.b32.xlu1 %v435_v62, %s3242_s20 }
 0x4ba   :  { %v437_v63 = vpop.permute.xlu1 %436 }
 0x4bb   :  { %2713 = vmatmul.msk.bf16.vlgmr.msra.gmra.mxu3 %vm209_vm9, %v437_v63 }
 0x53e   :  { %v450_v6 = vpop.f32.mrf.mxu3 }
 0x53f   :  { %v455_v7 = vadd.f32 %v450_v6, %v150_v2 }
 0x541   :  { %2949 = vtanh.f32 %v455_v7  ;;  %v2714_v14 = vmul.f32 -1.442695, %v455_v7 }
 0x546   :  { %v452_v10 = vpop.f32.mrf.mxu3 }
 0x547   :  { %v2950_v11 = vpop.eup %2949  ;;  %v456_v12 = vadd.f32 %v452_v10, %v152_v9 }
 0x548   :  { %501 = vrot.lane.b32.xlu2 %v2950_v11, %s3241_s17 }
 0x549   :  { %2951 = vtanh.f32 %v456_v12  ;;  %v2715_v18 = vmul.f32 -1.442695, %v456_v12 }
 0x54a   :  { %2953 = vpow2.f32 %v2714_v14 }
 0x54f   :  { %v2952_v13 = vpop.eup %2951 }
 0x550   :  { %503 = vrot.lane.b32.xlu0 %v2952_v13, %s3241_s17  ;;  %v2954_v1 = vpop.eup %2953 }
 0x551   :  { %v463_v3 = vadd.f32 1.0, %v2954_v1 }
 0x553   :  { %2955 = vrcp.f32 %v463_v3  ;;  %v476_v21 = vand.u32 2147483648, %v463_v3  ;;  %vm470_vm4 = vweird.f32 %v463_v3  ;;  %v474_v22 = vand.u32 2147483647, %v463_v3 }
 0x554   :  { %2957 = vpow2.f32 %v2715_v18 }
 0x555   :  { %v477_v25 = vor.u32 1.1754944e-38, %v476_v21  ;;  %vm475_vm6 = vcmp.eq.f32.partialorder %v474_v22, 8.507059e+37 }
 0x559   :  { %v2956_v15 = vpop.eup %2955 }
 0x55a   :  { %v466_v16 = vmul.f32 %v2956_v15, %v463_v3  ;;  %vm471_vm3 = vweird.f32 %v2956_v15  ;;  %v2958_v23 = vpop.eup %2957 }
 0x55b   :  { %vm472_vm5 = vmor %vm470_vm4, %vm471_vm3  ;;  %v464_v26 = vadd.f32 1.0, %v2958_v23 }
 0x55c   :  { %v467_v17 = vsub.f32 1.0, %v466_v16 }
 0x55d   :  { %2959 = vrcp.f32 %v464_v26  ;;  %v491_v35 = vand.u32 2147483648, %v464_v26  ;;  %vm485_vm8 = vweird.f32 %v464_v26  ;;  %v489_v36 = vand.u32 2147483647, %v464_v26 }
 0x55e   :  { %v468_v19 = vmul.f32 %v2956_v15, %v467_v17 }
 0x55f   :  { %v492_v38 = vor.u32 1.1754944e-38, %v491_v35  ;;  %vm490_vm11 = vcmp.eq.f32.partialorder %v489_v36, 8.507059e+37 }
 0x560   :  { %v469_v20 = vadd.f32 %v2956_v15, %v468_v19 }
 0x562   :  { %v473_v24 = vsel %vm472_vm5, %v2956_v15, %v469_v20 }
 0x563   :  { %v478_v28 = vsel %vm475_vm6, %v477_v25, %v473_v24  ;;  %v2960_v30 = vpop.eup %2959 }
 0x564   :  { %v481_v31 = vmul.f32 %v2960_v30, %v464_v26  ;;  %vm486_vm7 = vweird.f32 %v2960_v30  ;;  %v497_v42 = vmul.f32 %v478_v28, %v3370_v50  ;;  %v2879_v50 = vld [vmem:[%s4034_s0 + $0x18] sm:$0xff] }
 0x565   :  { %vm487_vm10 = vmor %vm485_vm8, %vm486_vm7  ;;  %2695 = vmatmul.msk.bf16.gmra.mxu0 %vm105_vm0, %v2879_v50 }
 0x566   :  { %v482_v32 = vsub.f32 1.0, %v481_v31 }
 0x568   :  { %v483_v33 = vmul.f32 %v2960_v30, %v482_v32 }
 0x56a   :  { %v484_v34 = vadd.f32 %v2960_v30, %v483_v33 }
 0x56c   :  { %v488_v37 = vsel %vm487_vm10, %v2960_v30, %v484_v34 }
 0x56d   :  { %v493_v40 = vsel %vm490_vm11, %v492_v38, %v488_v37 }
 0x56e   :  { %v498_v46 = vmul.f32 %v493_v40, %v3365_v45 }
 0x5a2   :  { %v502_v27 = vpop.permute.xlu2 %501 }
 0x5a3   :  { %v507_v29 = vmul.f32 %v502_v27, %v478_v28 }
 0x5a5   :  { %511 = vrot.lane.b32.xlu1 %v507_v29, %s3241_s17 }
 0x5c2   :  { %v504_v39 = vpop.permute.xlu0 %503 }
 0x5c3   :  { %v508_v41 = vmul.f32 %v504_v39, %v493_v40 }
 0x5c5   :  { %513 = vrot.lane.b32.xlu2 %v508_v41, %s3241_s17 }
 0x5e2   :  { %v154_v2 = vpop.f32.mrf.mxu0 }
 0x5e3   :  { %v155_v6 = vadd.f32 %v3328_v5, %v154_v2 }
 0x5ea   :  { %v156_v9 = vpop.f32.mrf.mxu0 }
 0x5eb   :  { %v157_v10 = vadd.f32 %v3328_v5, %v156_v9 }
 0x617   :  { %v512_v43 = vpop.permute.xlu1 %511 }
 0x618   :  { %v3393_v44 = vadd.f32 %v512_v43, %v497_v42 }
 0x61a   :  { %2961 = vtanh.f32 %v3393_v44 }
 0x61f   :  { %v514_v47 = vpop.permute.xlu2 %513 }
 0x620   :  { %v2962_v49 = vpop.eup %2961  ;;  %v3397_v51 = vadd.f32 %v514_v47, %v498_v46 }
 0x621   :  { %523 = vrot.lane.b32.xlu0 %v2962_v49, %s3241_s17 }
 0x622   :  { %2963 = vtanh.f32 %v3397_v51 }
 0x628   :  { %v2964_v52 = vpop.eup %2963 }
 0x629   :  { %525 = vrot.lane.b32.xlu1 %v2964_v52, %s3241_s17 }
 0x693   :  { %v524_v53 = vpop.permute.xlu0 %523 }
 0x694   :  { %v529_v54 = vmul.f32 %v524_v53, %v478_v28 }
 0x696   :  { %v3406_v55 = vpack.c.bf16 %v529_v54, %v529_v54 }
 0x698   :  { %v547_v61 = vunpack.c.l.b16 %v3406_v55 }
 0x69b   :  { %v526_v45 = vpop.permute.xlu1 %525 }
 0x69c   :  { %v530_v48 = vmul.f32 %v526_v45, %v493_v40 }
 0x69e   :  { %v3408_v59 = vpack.c.bf16 %v530_v48, %v530_v48 }
 0x6a0   :  { %v548_v62 = vunpack.c.l.b16 %v3408_v59 }
 0x6a2   :  { %v549_v63 = vpack.c.b16 %v548_v62, %v547_v61 }
 0x6a4   :  { %550 = vrot.lane.b32.xlu2 %v549_v63, %s3242_s20 }
 0x6fe   :  { %v551_v0 = vpop.permute.xlu2 %550 }
 0x6ff   :  { %2716 = vmatmul.msk.bf16.vlgmr.msrb.gmra.mxu1 %vm209_vm9, %v551_v0 }
 0x77c   :  { %v564_v7 = vpop.f32.mrf.mxu1 }
 0x77d   :  { %v569_v8 = vadd.f32 %v564_v7, %v155_v6 }
 0x77f   :  { %2965 = vtanh.f32 %v569_v8  ;;  %v2717_v1 = vmul.f32 -1.442695, %v569_v8 }
 0x784   :  { %v566_v11 = vpop.f32.mrf.mxu1 }
 0x785   :  { %v2966_v12 = vpop.eup %2965  ;;  %v570_v13 = vadd.f32 %v566_v11, %v157_v10 }
 0x786   :  { %615 = vrot.lane.b32.xlu0 %v2966_v12, %s3241_s17 }
 0x787   :  { %2967 = vtanh.f32 %v570_v13  ;;  %v2718_v3 = vmul.f32 -1.442695, %v570_v13 }
 0x788   :  { %2969 = vpow2.f32 %v2717_v1 }
 0x789   :  { %2971 = vpow2.f32 %v2718_v3 }
 0x78d   :  { %v2968_v14 = vpop.eup %2967 }
 0x78e   :  { %617 = vrot.lane.b32.xlu1 %v2968_v14, %s3241_s17  ;;  %v2970_v15 = vpop.eup %2969 }
 0x78f   :  { %v577_v16 = vadd.f32 1.0, %v2970_v15  ;;  %v2972_v17 = vpop.eup %2971 }
 0x790   :  { %v578_v18 = vadd.f32 1.0, %v2972_v17 }
 0x791   :  { %2973 = vrcp.f32 %v577_v16  ;;  %v590_v27 = vand.u32 2147483648, %v577_v16  ;;  %vm584_vm13 = vweird.f32 %v577_v16  ;;  %v588_v28 = vand.u32 2147483647, %v577_v16 }
 0x792   :  { %2975 = vrcp.f32 %v578_v18  ;;  %v605_v36 = vand.u32 2147483648, %v578_v18  ;;  %vm599_vm2 = vweird.f32 %v578_v18  ;;  %v603_v37 = vand.u32 2147483647, %v578_v18 }
 0x793   :  { %v591_v31 = vor.u32 1.1754944e-38, %v590_v27  ;;  %vm589_vm15 = vcmp.eq.f32.partialorder %v588_v28, 8.507059e+37 }
 0x794   :  { %v606_v39 = vor.u32 1.1754944e-38, %v605_v36  ;;  %vm604_vm4 = vcmp.eq.f32.partialorder %v603_v37, 8.507059e+37 }
 0x797   :  { %v2974_v19 = vpop.eup %2973 }
 0x798   :  { %v580_v20 = vmul.f32 %v2974_v19, %v577_v16  ;;  %v2976_v22 = vpop.eup %2975  ;;  %vm585_vm12 = vweird.f32 %v2974_v19 }
 0x799   :  { %v595_v24 = vmul.f32 %v2976_v22, %v578_v18  ;;  %vm586_vm14 = vmor %vm584_vm13, %vm585_vm12  ;;  %vm600_vm1 = vweird.f32 %v2976_v22 }
 0x79a   :  { %v581_v21 = vsub.f32 1.0, %v580_v20  ;;  %vm601_vm3 = vmor %vm599_vm2, %vm600_vm1 }
 0x79b   :  { %v596_v26 = vsub.f32 1.0, %v595_v24 }
 0x79c   :  { %v582_v23 = vmul.f32 %v2974_v19, %v581_v21 }
 0x79d   :  { %v597_v30 = vmul.f32 %v2976_v22, %v596_v26 }
 0x79e   :  { %v583_v25 = vadd.f32 %v2974_v19, %v582_v23 }
 0x79f   :  { %v598_v35 = vadd.f32 %v2976_v22, %v597_v30 }
 0x7a0   :  { %v587_v29 = vsel %vm586_vm14, %v2974_v19, %v583_v25 }
 0x7a1   :  { %v592_v33 = vsel %vm589_vm15, %v591_v31, %v587_v29  ;;  %v602_v38 = vsel %vm601_vm3, %v2976_v22, %v598_v35 }
 0x7a2   :  { %v607_v41 = vsel %vm604_vm4, %v606_v39, %v602_v38  ;;  %v611_v43 = vmul.f32 %v592_v33, %v3393_v44  ;;  %v2880_v44 = vld [vmem:[%s4034_s0 + $0x20] sm:$0xff] }
 0x7a3   :  { %v612_v52 = vmul.f32 %v607_v41, %v3397_v51  ;;  %2696 = vmatmul.msk.bf16.gmra.mxu0 %vm105_vm0, %v2880_v44 }
 0x7f8   :  { %v616_v32 = vpop.permute.xlu0 %615 }
 0x7f9   :  { %v621_v34 = vmul.f32 %v616_v32, %v592_v33 }
 0x7fb   :  { %625 = vrot.lane.b32.xlu2 %v621_v34, %s3241_s17 }
 0x800   :  { %v618_v40 = vpop.permute.xlu1 %617 }
 0x801   :  { %v622_v42 = vmul.f32 %v618_v40, %v607_v41 }
 0x803   :  { %627 = vrot.lane.b32.xlu0 %v622_v42, %s3241_s17 }
 0x820   :  { %v159_v8 = vpop.f32.mrf.mxu0 }
 0x821   :  { %v160_v9 = vadd.f32 %v3328_v5, %v159_v8 }
 0x828   :  { %v161_v12 = vpop.f32.mrf.mxu0 }
 0x829   :  { %v162_v13 = vadd.f32 %v3328_v5, %v161_v12 }
 0x855   :  { %v626_v46 = vpop.permute.xlu2 %625 }
 0x856   :  { %v3421_v47 = vadd.f32 %v626_v46, %v611_v43 }
 0x858   :  { %2977 = vtanh.f32 %v3421_v47 }
 0x85e   :  { %v2978_v49 = vpop.eup %2977 }
 0x85f   :  { %637 = vrot.lane.b32.xlu1 %v2978_v49, %s3241_s17 }
 0x875   :  { %v628_v50 = vpop.permute.xlu0 %627 }
 0x876   :  { %v3426_v53 = vadd.f32 %v628_v50, %v612_v52 }
 0x878   :  { %2979 = vtanh.f32 %v3426_v53 }
 0x87e   :  { %v2980_v54 = vpop.eup %2979 }
 0x87f   :  { %639 = vrot.lane.b32.xlu2 %v2980_v54, %s3241_s17 }
 0x8d1   :  { %v638_v45 = vpop.permute.xlu1 %637 }
 0x8d2   :  { %v643_v48 = vmul.f32 %v638_v45, %v592_v33 }
 0x8d4   :  { %v3434_v62 = vpack.c.bf16 %v643_v48, %v643_v48 }
 0x8d6   :  { %v661_v0 = vunpack.c.l.b16 %v3434_v62 }
 0x8d9   :  { %v640_v61 = vpop.permute.xlu2 %639 }
 0x8da   :  { %v644_v51 = vmul.f32 %v640_v61, %v607_v41 }
 0x8dc   :  { %v3436_v63 = vpack.c.bf16 %v644_v51, %v644_v51 }
 0x8de   :  { %v662_v2 = vunpack.c.l.b16 %v3436_v63 }
 0x8e0   :  { %v663_v6 = vpack.c.b16 %v662_v2, %v661_v0 }
 0x8e2   :  { %664 = vrot.lane.b32.xlu0 %v663_v6, %s3242_s20 }
 0x954   :  { %v665_v7 = vpop.permute.xlu0 %664 }
 0x955   :  { %2719 = vmatmul.msk.bf16.vlgmr.msrb.gmra.mxu2 %vm209_vm9, %v665_v7 }
 0x9d8   :  { %v678_v10 = vpop.f32.mrf.mxu2 }
 0x9d9   :  { %v683_v11 = vadd.f32 %v678_v10, %v160_v9 }
 0x9db   :  { %2981 = vtanh.f32 %v683_v11  ;;  %v2720_v19 = vmul.f32 -1.442695, %v683_v11 }
 0x9e0   :  { %v680_v14 = vpop.f32.mrf.mxu2 }
 0x9e1   :  { %v2982_v1 = vpop.eup %2981  ;;  %v684_v3 = vadd.f32 %v680_v14, %v162_v13 }
 0x9e2   :  { %729 = vrot.lane.b32.xlu1 %v2982_v1, %s3241_s17 }
 0x9e3   :  { %2983 = vtanh.f32 %v684_v3  ;;  %v2721_v16 = vmul.f32 -1.442695, %v684_v3 }
 0x9e5   :  { %2985 = vpow2.f32 %v2721_v16 }
 0x9e9   :  { %v2984_v15 = vpop.eup %2983 }
 0x9ea   :  { %731 = vrot.lane.b32.xlu2 %v2984_v15, %s3241_s17 }
 0x9eb   :  { %v2986_v17 = vpop.eup %2985 }
 0x9ec   :  { %v692_v18 = vadd.f32 1.0, %v2986_v17 }
 0x9ee   :  { %2987 = vrcp.f32 %v692_v18  ;;  %v719_v28 = vand.u32 2147483648, %v692_v18  ;;  %vm713_vm6 = vweird.f32 %v692_v18  ;;  %v717_v29 = vand.u32 2147483647, %v692_v18 }
 0x9ef   :  { %2989 = vpow2.f32 %v2720_v19 }
 0x9f0   :  { %v720_v32 = vor.u32 1.1754944e-38, %v719_v28  ;;  %vm718_vm8 = vcmp.eq.f32.partialorder %v717_v29, 8.507059e+37 }
 0x9f4   :  { %v2988_v20 = vpop.eup %2987 }
 0x9f5   :  { %v2990_v21 = vpop.eup %2989  ;;  %v709_v22 = vmul.f32 %v2988_v20, %v692_v18  ;;  %vm714_vm5 = vweird.f32 %v2988_v20 }
 0x9f6   :  { %v691_v23 = vadd.f32 1.0, %v2990_v21  ;;  %vm715_vm7 = vmor %vm713_vm6, %vm714_vm5 }
 0x9f7   :  { %v710_v24 = vsub.f32 1.0, %v709_v22 }
 0x9f8   :  { %2991 = vrcp.f32 %v691_v23  ;;  %v704_v39 = vand.u32 2147483648, %v691_v23  ;;  %vm698_vm11 = vweird.f32 %v691_v23  ;;  %v702_v40 = vand.u32 2147483647, %v691_v23 }
 0x9f9   :  { %v711_v25 = vmul.f32 %v2988_v20, %v710_v24 }
 0x9fa   :  { %v705_v42 = vor.u32 1.1754944e-38, %v704_v39  ;;  %vm703_vm13 = vcmp.eq.f32.partialorder %v702_v40, 8.507059e+37 }
 0x9fb   :  { %v712_v26 = vadd.f32 %v2988_v20, %v711_v25 }
 0x9fd   :  { %v716_v30 = vsel %vm715_vm7, %v2988_v20, %v712_v26  ;;  %vm313_vm7 = vcmask 257024  }
 0x9fe   :  { %v2992_v27 = vpop.eup %2991  ;;  %v721_v34 = vsel %vm718_vm8, %v720_v32, %v716_v30 }
 0x9ff   :  { %v694_v31 = vmul.f32 %v2992_v27, %v691_v23  ;;  %vm699_vm10 = vweird.f32 %v2992_v27  ;;  %v726_v52 = vmul.f32 %v721_v34, %v3426_v53  ;;  %v2881_v53 = vld [vmem:[%s4034_s0 + $0x28] sm:$0xff] }
 0xa00   :  { %vm700_vm12 = vmor %vm698_vm11, %vm699_vm10  ;;  %2697 = vmatmul.msk.bf16.gmra.mxu0 %vm105_vm0, %v2881_v53 }
 0xa01   :  { %v695_v36 = vsub.f32 1.0, %v694_v31 }
 0xa03   :  { %v696_v37 = vmul.f32 %v2992_v27, %v695_v36 }
 0xa05   :  { %v697_v38 = vadd.f32 %v2992_v27, %v696_v37 }
 0xa07   :  { %v701_v41 = vsel %vm700_vm12, %v2992_v27, %v697_v38 }
 0xa08   :  { %v706_v46 = vsel %vm703_vm13, %v705_v42, %v701_v41 }
 0xa09   :  { %v725_v45 = vmul.f32 %v706_v46, %v3421_v47 }
 0xa44   :  { %v732_v33 = vpop.permute.xlu2 %731 }
 0xa45   :  { %v736_v35 = vmul.f32 %v732_v33, %v721_v34 }
 0xa47   :  { %741 = vrot.lane.b32.xlu1 %v736_v35, %s3241_s17 }
 0xa54   :  { %v730_v43 = vpop.permute.xlu1 %729 }
 0xa55   :  { %v735_v49 = vmul.f32 %v730_v43, %v706_v46 }
 0xa57   :  { %739 = vrot.lane.b32.xlu0 %v735_v49, %s3241_s17 }
 0xa7d   :  { %v164_v13 = vpop.f32.mrf.mxu0 }
 0xa7e   :  { %v165_v14 = vadd.f32 %v3328_v5, %v164_v13 }
 0xa85   :  { %v166_v15 = vpop.f32.mrf.mxu0 }
 0xa86   :  { %v167_v16 = vadd.f32 %v3328_v5, %v166_v15 }
 0xab9   :  { %v742_v50 = vpop.permute.xlu1 %741 }
 0xaba   :  { %v3449_v54 = vadd.f32 %v742_v50, %v726_v52 }
 0xabc   :  { %2993 = vtanh.f32 %v3449_v54 }
 0xac2   :  { %v2994_v44 = vpop.eup %2993 }
 0xac3   :  { %753 = vrot.lane.b32.xlu0 %v2994_v44, %s3241_s17 }
 0xac9   :  { %v740_v48 = vpop.permute.xlu0 %739 }
 0xaca   :  { %v3454_v61 = vadd.f32 %v740_v48, %v725_v45 }
 0xacc   :  { %2995 = vtanh.f32 %v3454_v61 }
 0xad2   :  { %v2996_v51 = vpop.eup %2995 }
 0xad3   :  { %751 = vrot.lane.b32.xlu2 %v2996_v51, %s3241_s17 }
 0xb2d   :  { %v752_v0 = vpop.permute.xlu2 %751 }
 0xb2e   :  { %v757_v2 = vmul.f32 %v752_v0, %v706_v46 }
 0xb30   :  { %v3462_v7 = vpack.c.bf16 %v757_v2, %v757_v2 }
 0xb32   :  { %v775_v9 = vunpack.c.l.b16 %v3462_v7 }
 0xb35   :  { %v754_v6 = vpop.permute.xlu0 %753 }
 0xb36   :  { %v758_v47 = vmul.f32 %v754_v6, %v721_v34 }
 0xb38   :  { %v3464_v8 = vpack.c.bf16 %v758_v47, %v758_v47 }
 0xb3a   :  { %v776_v10 = vunpack.c.l.b16 %v3464_v8 }
 0xb3c   :  { %v777_v11 = vpack.c.b16 %v776_v10, %v775_v9  ;;  %v2882_v10 = vld [vmem:[%s4034_s0 + $0x30] sm:$0xff] }
 0xb3d   :  { %2698 = vmatmul.msk.bf16.gmra.mxu0 %vm105_vm0, %v2882_v10 }
 0xb3e   :  { %778 = vrot.lane.b32.xlu1 %v777_v11, %s3242_s20 }
 0xbb0   :  { %v779_v12 = vpop.permute.xlu1 %778 }
 0xbb1   :  { %2722 = vmatmul.msk.bf16.vlgmr.msrb.gmra.mxu3 %vm209_vm9, %v779_v12 }
 0xc34   :  { %v792_v1 = vpop.f32.mrf.mxu3 }
 0xc35   :  { %v797_v3 = vadd.f32 %v792_v1, %v165_v14 }
 0xc37   :  { %2997 = vtanh.f32 %v797_v3  ;;  %v2723_v21 = vmul.f32 -1.442695, %v797_v3 }
 0xc3c   :  { %v794_v17 = vpop.f32.mrf.mxu3 }
 0xc3d   :  { %v2998_v18 = vpop.eup %2997  ;;  %v798_v19 = vadd.f32 %v794_v17, %v167_v16 }
 0xc3e   :  { %843 = vrot.lane.b32.xlu2 %v2998_v18, %s3241_s17 }
 0xc3f   :  { %2999 = vtanh.f32 %v798_v19  ;;  %v2724_v27 = vmul.f32 -1.442695, %v798_v19  ;;  %v3513_v19 = vld [vmem:[%s4038_s5 + $0x8] sm:$0xff] }
 0xc40   :  { %3001 = vpow2.f32 %v2723_v21  ;;  %1303 = vmatpush.bf16.msrb.mxu1 %v3513_v19  ;;  %1415 = vmatpush.bf16.msrb.mxu2 %v3513_v19 }
 0xc45   :  { %v3000_v20 = vpop.eup %2999 }
 0xc46   :  { %845 = vrot.lane.b32.xlu0 %v3000_v20, %s3241_s17  ;;  %v3002_v22 = vpop.eup %3001  ;;  %v3519_v20 = vld [vmem:[%s4038_s5] sm:$0xff] }
 0xc47   :  { %v805_v23 = vadd.f32 1.0, %v3002_v22  ;;  %1304 = vmatpush.bf16.msrb.mxu1 %v3519_v20  ;;  %1416 = vmatpush.bf16.msrb.mxu2 %v3519_v20  ;;  %v169_v22 = vpop.f32.mrf.mxu0 }
 0xc49   :  { %3003 = vrcp.f32 %v805_v23  ;;  %v818_v29 = vand.u32 2147483648, %v805_v23  ;;  %vm812_vm15 = vweird.f32 %v805_v23  ;;  %v816_v30 = vand.u32 2147483647, %v805_v23 }
 0xc4a   :  { %3005 = vpow2.f32 %v2724_v27 }
 0xc4b   :  { %v819_v33 = vor.u32 1.1754944e-38, %v818_v29  ;;  %vm817_vm2 = vcmp.eq.f32.partialorder %v816_v30, 8.507059e+37 }
 0xc4f   :  { %v3004_v24 = vpop.eup %3003  ;;  %v171_v27 = vpop.f32.mrf.mxu0 }
 0xc50   :  { %v808_v25 = vmul.f32 %v3004_v24, %v805_v23  ;;  %vm813_vm14 = vweird.f32 %v3004_v24  ;;  %v3006_v31 = vpop.eup %3005  ;;  %v3237_v23 = vld [vmem:[%s4035_s3] ss:$0 sm:$0xff] }
 0xc51   :  { %vm814_vm1 = vmor %vm812_vm15, %vm813_vm14  ;;  %v806_v34 = vadd.f32 1.0, %v3006_v31 }
 0xc52   :  { %v809_v26 = vsub.f32 1.0, %v808_v25 }
 0xc53   :  { %3007 = vrcp.f32 %v806_v34  ;;  %v833_v43 = vand.u32 2147483648, %v806_v34  ;;  %vm827_vm4 = vweird.f32 %v806_v34  ;;  %v831_v46 = vand.u32 2147483647, %v806_v34 }
 0xc54   :  { %v810_v28 = vmul.f32 %v3004_v24, %v809_v26 }
 0xc55   :  { %v834_v52 = vor.u32 1.1754944e-38, %v833_v43  ;;  %vm832_vm6 = vcmp.eq.f32.partialorder %v831_v46, 8.507059e+37 }
 0xc56   :  { %v811_v5 = vadd.f32 %v3004_v24, %v810_v28  ;;  %v172_v28 = vadd.f32 %v3237_v23, %v171_v27 }
 0xc58   :  { %v815_v32 = vsel %vm814_vm1, %v3004_v24, %v811_v5  ;;  %v170_v24 = vadd.f32 %v3237_v23, %v169_v22 }
 0xc59   :  { %v820_v36 = vsel %vm817_vm2, %v819_v33, %v815_v32  ;;  %v3008_v38 = vpop.eup %3007 }
 0xc5a   :  { %v823_v39 = vmul.f32 %v3008_v38, %v806_v34  ;;  %vm828_vm3 = vweird.f32 %v3008_v38  ;;  %v839_v48 = vmul.f32 %v820_v36, %v3454_v61  ;;  %v2895_v61 = vld [vmem:[%s4036_s4] sm:$0xff] }
 0xc5b   :  { %vm829_vm5 = vmor %vm827_vm4, %vm828_vm3 }
 0xc5c   :  { %v824_v40 = vsub.f32 1.0, %v823_v39 }
 0xc5e   :  { %v825_v41 = vmul.f32 %v3008_v38, %v824_v40 }
 0xc60   :  { %v826_v42 = vadd.f32 %v3008_v38, %v825_v41 }
 0xc62   :  { %v830_v49 = vsel %vm829_vm5, %v3008_v38, %v826_v42 }
 0xc63   :  { %v835_v44 = vsel %vm832_vm6, %v834_v52, %v830_v49 }
 0xc64   :  { %v840_v0 = vmul.f32 %v835_v44, %v3449_v54  ;;  %v2896_v54 = vld [vmem:[%s4036_s4 + $0x8] sm:$0xff] }
 0xc65   :  { %1224 = vmatpush.bf16.msra.mxu3 %v2896_v54 }
 0xc69   :  { %1225 = vmatpush.bf16.msra.mxu3 %v2895_v61 }
 0xc98   :  { %v844_v35 = vpop.permute.xlu2 %843 }
 0xc99   :  { %v849_v37 = vmul.f32 %v844_v35, %v820_v36 }
 0xc9b   :  { %853 = vrot.lane.b32.xlu1 %v849_v37, %s3241_s17 }
 0xcb8   :  { %v846_v50 = vpop.permute.xlu0 %845 }
 0xcb9   :  { %v850_v45 = vmul.f32 %v846_v50, %v835_v44 }
 0xcbb   :  { %855 = vrot.lane.b32.xlu2 %v850_v45, %s3241_s17 }
 0xcc3   :  { %307 = vrot.lane.b32.xlu2 %v3348_v58, %s3242_s20 }
 0xd0d   :  { %v854_v51 = vpop.permute.xlu1 %853 }
 0xd0e   :  { %v3479_v53 = vadd.f32 %v854_v51, %v839_v48 }
 0xd10   :  { %3009 = vtanh.f32 %v3479_v53 }
 0xd15   :  { %v856_v2 = vpop.permute.xlu2 %855 }
 0xd16   :  { %v3010_v6 = vpop.eup %3009  ;;  %v3483_v47 = vadd.f32 %v856_v2, %v840_v0 }
 0xd17   :  { %865 = vrot.lane.b32.xlu0 %v3010_v6, %s3241_s17 }
 0xd18   :  { %3011 = vtanh.f32 %v3483_v47 }
 0xd1d   :  { %v308_v9 = vpop.permute.xlu2 %307 }
 0xd1e   :  { %v3012_v58 = vpop.eup %3011  ;;  %314 = vst.msk [vmem:[#allocation2] sm:$0xf] %vm313_vm7, %v308_v9 }
 0xd1f   :  { %309 = vrot.lane.b32.xlu0 %v3350_v60, %s3242_s20  ;;  %867 = vrot.lane.b32.xlu1 %v3012_v58, %s3241_s17 }
 0xd89   :  { %v866_v11 = vpop.permute.xlu0 %865 }
 0xd8a   :  { %v871_v60 = vmul.f32 %v866_v11, %v820_v36 }
 0xd8c   :  { %v3501_v14 = vpack.c.bf16 %v871_v60, %v871_v60 }
 0xd8e   :  { %v889_v15 = vunpack.c.l.b16 %v3501_v14 }
 0xd91   :  { %v310_v12 = vpop.permute.xlu0 %309  ;;  %v868_v13 = vpop.permute.xlu1 %867 }
 0xd92   :  { %315 = vst.msk [vmem:[#allocation2 + $0x4] sm:$0xf] %vm313_vm7, %v310_v12  ;;  %v872_v1 = vmul.f32 %v868_v13, %v835_v44 }
 0xd94   :  { %v3504_v3 = vpack.c.bf16 %v872_v1, %v872_v1 }
 0xd96   :  { %v890_v16 = vunpack.c.l.b16 %v3504_v3 }
 0xd98   :  { %v891_v17 = vpack.c.b16 %v890_v16, %v889_v15 }
 0xd99   :  { %v2887_v18 = vld [vmem:[#allocation2] sm:$0xff] }
 0xd9a   :  { %892 = vrot.lane.b32.xlu1 %v891_v17, %s3242_s20  ;;  %2771 = vmatmul.msk.bf16.vlgmr.msra.gmra.mxu3 %vm209_vm9, %v2887_v18 }
 0xe0c   :  { %v893_v21 = vpop.permute.xlu1 %892 }
 0xe0d   :  { %2725 = vmatmul.msk.bf16.vlgmr.msra.gmra.mxu1 %vm209_vm9, %v893_v21 }
 0xe0e   :  { %1527 = vmatpush.bf16.msra.mxu1 %v3513_v19 }
 0xe12   :  { %1528 = vmatpush.bf16.msra.mxu1 %v3519_v20 }
 0xe1d   :  { %1305 = vmatmul.bf16.vlgmr.msrb.gmra.mxu1 %v3240_v4  ;;  %v1227_v31 = vpop.f32.mrf.mxu3  ;;  %v3537_v4 = vld [vmem:[%s4037_s6] ss:$0 sm:$0xff] }
 0xe1e   :  { %1751 = vmatpush.bf16.msrb.mxu1 %v3513_v19  ;;  %v1228_v32 = vadd.f32 %v3537_v4, %v1227_v31 }
 0xe22   :  { %1752 = vmatpush.bf16.msrb.mxu1 %v3519_v20 }
 0xe25   :  { %v1229_v36 = vpop.f32.mrf.mxu3 }
 0xe26   :  { %v1230_v37 = vadd.f32 %v3537_v4, %v1229_v36 }
 0xe8a   :  { %v906_v25 = vpop.f32.mrf.mxu1 }
 0xe8b   :  { %v911_v26 = vadd.f32 %v906_v25, %v170_v24 }
 0xe8d   :  { %3013 = vtanh.f32 %v911_v26  ;;  %v2726_v42 = vmul.f32 -1.442695, %v911_v26 }
 0xe92   :  { %v908_v5 = vpop.f32.mrf.mxu1 }
 0xe93   :  { %v3014_v29 = vpop.eup %3013  ;;  %v912_v30 = vadd.f32 %v908_v5, %v172_v28 }
 0xe94   :  { %957 = vrot.lane.b32.xlu2 %v3014_v29, %s3241_s17 }
 0xe95   :  { %3015 = vtanh.f32 %v912_v30  ;;  %v2727_v45 = vmul.f32 -1.442695, %v912_v30 }
 0xe9a   :  { %v1306_v33 = vpop.f32.mrf.mxu1 }
 0xe9b   :  { %v3016_v34 = vpop.eup %3015  ;;  %v1311_v35 = vadd.f32 %v1306_v33, %v1228_v32 }
 0xe9c   :  { %959 = vrot.lane.b32.xlu0 %v3016_v34, %s3241_s17 }
 0xe9d   :  { %3017 = vtanh.f32 %v1311_v35  ;;  %v2787_v9 = vmul.f32 -1.442695, %v1311_v35 }
 0xea2   :  { %v1308_v38 = vpop.f32.mrf.mxu1 }
 0xea3   :  { %v3018_v39 = vpop.eup %3017  ;;  %v1312_v40 = vadd.f32 %v1308_v38, %v1230_v37 }
 0xea4   :  { %1357 = vrot.lane.b32.xlu1 %v3018_v39, %s3241_s17 }
 0xea5   :  { %3019 = vtanh.f32 %v1312_v40  ;;  %v2788_v52 = vmul.f32 -1.442695, %v1312_v40 }
 0xea6   :  { %3021 = vpow2.f32 %v2726_v42 }
 0xeab   :  { %v3020_v41 = vpop.eup %3019 }
 0xeac   :  { %1359 = vrot.lane.b32.xlu2 %v3020_v41, %s3241_s17  ;;  %v3022_v43 = vpop.eup %3021 }
 0xead   :  { %v919_v46 = vadd.f32 1.0, %v3022_v43 }
 0xeaf   :  { %3023 = vrcp.f32 %v919_v46  ;;  %v932_v6 = vand.u32 2147483648, %v919_v46  ;;  %vm926_vm10 = vweird.f32 %v919_v46  ;;  %v930_v58 = vand.u32 2147483647, %v919_v46 }
 0xeb0   :  { %3025 = vpow2.f32 %v2788_v52 }
 0xeb1   :  { %3027 = vpow2.f32 %v2727_v45  ;;  %v933_v10 = vor.u32 1.1754944e-38, %v932_v6  ;;  %vm931_vm12 = vcmp.eq.f32.partialorder %v930_v58, 8.507059e+37 }
 0xeb5   :  { %v3024_v49 = vpop.eup %3023 }
 0xeb6   :  { %v922_v50 = vmul.f32 %v3024_v49, %v919_v46  ;;  %v3026_v48 = vpop.eup %3025  ;;  %vm927_vm8 = vweird.f32 %v3024_v49 }
 0xeb7   :  { %v1320_v0 = vadd.f32 1.0, %v3026_v48  ;;  %vm928_vm11 = vmor %vm926_vm10, %vm927_vm8  ;;  %v3028_v54 = vpop.eup %3027 }
 0xeb8   :  { %v923_v44 = vsub.f32 1.0, %v922_v50  ;;  %v920_v11 = vadd.f32 1.0, %v3028_v54 }
 0xeb9   :  { %3029 = vrcp.f32 %v1320_v0  ;;  %v1347_v27 = vand.u32 2147483648, %v1320_v0  ;;  %vm1341_vm14 = vweird.f32 %v1320_v0  ;;  %v1345_v28 = vand.u32 2147483647, %v1320_v0 }
 0xeba   :  { %v924_v51 = vmul.f32 %v3024_v49, %v923_v44  ;;  %3031 = vpow2.f32 %v2787_v9  ;;  %v947_v37 = vand.u32 2147483648, %v920_v11  ;;  %vm941_vm3 = vweird.f32 %v920_v11 }
 0xebb   :  { %3033 = vrcp.f32 %v920_v11  ;;  %v1348_v31 = vor.u32 1.1754944e-38, %v1347_v27  ;;  %vm1346_vm1 = vcmp.eq.f32.partialorder %v1345_v28, 8.507059e+37  ;;  %v945_v38 = vand.u32 2147483647, %v920_v11 }
 0xebc   :  { %v925_v2 = vadd.f32 %v3024_v49, %v924_v51  ;;  %v948_v41 = vor.u32 1.1754944e-38, %v947_v37 }
 0xebd   :  { %vm946_vm5 = vcmp.eq.f32.partialorder %v945_v38, 8.507059e+37  ;;  %v2883_v38 = vld [vmem:[%s4034_s0 + $0x38] sm:$0xff] }
 0xebe   :  { %v929_v61 = vsel %vm928_vm11, %v3024_v49, %v925_v2  ;;  %2699 = vmatmul.msk.bf16.gmra.mxu0 %vm105_vm0, %v2883_v38 }
 0xebf   :  { %v3544_v12 = vsel %vm931_vm12, %v933_v10, %v929_v61  ;;  %v3030_v1 = vpop.eup %3029 }
 0xec0   :  { %v3032_v15 = vpop.eup %3031  ;;  %v1337_v16 = vmul.f32 %v3030_v1, %v1320_v0  ;;  %vm1342_vm13 = vweird.f32 %v3030_v1  ;;  %v953_v2 = vmul.f32 %v3544_v12, %v3479_v53 }
 0xec1   :  { %v1319_v17 = vadd.f32 1.0, %v3032_v15  ;;  %v3034_v21 = vpop.eup %3033  ;;  %vm1343_vm15 = vmor %vm1341_vm14, %vm1342_vm13 }
 0xec2   :  { %v1338_v18 = vsub.f32 1.0, %v1337_v16  ;;  %v937_v23 = vmul.f32 %v3034_v21, %v920_v11  ;;  %vm942_vm2 = vweird.f32 %v3034_v21 }
 0xec3   :  { %3035 = vrcp.f32 %v1319_v17  ;;  %vm943_vm4 = vmor %vm941_vm3, %vm942_vm2  ;;  %v1332_v52 = vand.u32 2147483648, %v1319_v17  ;;  %vm1326_vm8 = vweird.f32 %v1319_v17  ;;  %v1330_v50 = vand.u32 2147483647, %v1319_v17 }
 0xec4   :  { %v1339_v22 = vmul.f32 %v3030_v1, %v1338_v18  ;;  %v938_v25 = vsub.f32 1.0, %v937_v23 }
 0xec5   :  { %v1333_v45 = vor.u32 1.1754944e-38, %v1332_v52  ;;  %vm1331_vm11 = vcmp.eq.f32.partialorder %v1330_v50, 8.507059e+37 }
 0xec6   :  { %v1340_v24 = vadd.f32 %v3030_v1, %v1339_v22  ;;  %v939_v29 = vmul.f32 %v3034_v21, %v938_v25 }
 0xec8   :  { %v1344_v5 = vsel %vm1343_vm15, %v3030_v1, %v1340_v24  ;;  %v940_v35 = vadd.f32 %v3034_v21, %v939_v29 }
 0xec9   :  { %v3036_v26 = vpop.eup %3035  ;;  %v3548_v33 = vsel %vm1346_vm1, %v1348_v31, %v1344_v5 }
 0xeca   :  { %v1322_v30 = vmul.f32 %v3036_v26, %v1319_v17  ;;  %v944_v39 = vsel %vm943_vm4, %v3034_v21, %v940_v35  ;;  %vm1327_vm6 = vweird.f32 %v3036_v26  ;;  %v1354_v11 = vmul.f32 0.0, %v3548_v33 }
 0xecb   :  { %v949_v43 = vsel %vm946_vm5, %v948_v41, %v944_v39  ;;  %vm1328_vm10 = vmor %vm1326_vm8, %vm1327_vm6 }
 0xecc   :  { %v1323_v36 = vsub.f32 1.0, %v1322_v30  ;;  %v954_v53 = vmul.f32 %v949_v43, %v3483_v47 }
 0xece   :  { %v1324_v40 = vmul.f32 %v3036_v26, %v1323_v36 }
 0xed0   :  { %v1325_v49 = vadd.f32 %v3036_v26, %v1324_v40 }
 0xed2   :  { %v1329_v44 = vsel %vm1328_vm10, %v3036_v26, %v1325_v49 }
 0xed3   :  { %v1334_v51 = vsel %vm1331_vm11, %v1333_v45, %v1329_v44 }
 0xed4   :  { %v1353_v54 = vmul.f32 0.0, %v1334_v51 }
 0xeee   :  { %v958_v60 = vpop.permute.xlu2 %957 }
 0xeef   :  { %v963_v13 = vmul.f32 %v958_v60, %v3544_v12 }
 0xef1   :  { %967 = vrot.lane.b32.xlu0 %v963_v13, %s3241_s17 }
 0xf06   :  { %v1360_v32 = vpop.permute.xlu2 %1359 }
 0xf07   :  { %v1364_v34 = vmul.f32 %v1360_v32, %v3548_v33 }
 0xf09   :  { %1369 = vrot.lane.b32.xlu0 %v1364_v34, %s3241_s17 }
 0xf0e   :  { %v960_v42 = vpop.permute.xlu0 %959 }
 0xf0f   :  { %v964_v46 = vmul.f32 %v960_v42, %v949_v43 }
 0xf11   :  { %969 = vrot.lane.b32.xlu1 %v964_v46, %s3241_s17 }
 0xf16   :  { %v1358_v48 = vpop.permute.xlu1 %1357 }
 0xf17   :  { %v1363_v0 = vmul.f32 %v1358_v48, %v1334_v51 }
 0xf19   :  { %1367 = vrot.lane.b32.xlu2 %v1363_v0, %s3241_s17 }
 0xf63   :  { %v968_v6 = vpop.permute.xlu0 %967 }
 0xf64   :  { %v3556_v9 = vadd.f32 %v968_v6, %v953_v2 }
 0xf66   :  { %3037 = vtanh.f32 %v3556_v9 }
 0xf6c   :  { %v3038_v58 = vpop.eup %3037 }
 0xf6d   :  { %979 = vrot.lane.b32.xlu1 %v3038_v58, %s3241_s17 }
 0xf73   :  { %v1368_v61 = vpop.permute.xlu2 %1367 }
 0xf74   :  { %v3560_v10 = vadd.f32 %v1368_v61, %v1353_v54 }
 0xf76   :  { %3039 = vtanh.f32 %v3560_v10 }
 0xf7b   :  { %v1370_v60 = vpop.permute.xlu0 %1369 }
 0xf7c   :  { %v3040_v13 = vpop.eup %3039  ;;  %v3564_v1 = vadd.f32 %v1370_v60, %v1354_v11 }
 0xf7d   :  { %1379 = vrot.lane.b32.xlu0 %v3040_v13, %s3241_s17 }
 0xf7e   :  { %3041 = vtanh.f32 %v3564_v1 }
 0xf83   :  { %v970_v15 = vpop.permute.xlu1 %969 }
 0xf84   :  { %v3042_v16 = vpop.eup %3041  ;;  %v3569_v17 = vadd.f32 %v970_v15, %v954_v53 }
 0xf85   :  { %421 = vrot.lane.b32.xlu0 %v3378_v56, %s3242_s20  ;;  %1381 = vrot.lane.b32.xlu1 %v3042_v16, %s3241_s17 }
 0xf86   :  { %3043 = vtanh.f32 %v3569_v17 }
 0xf8c   :  { %v3044_v18 = vpop.eup %3043 }
 0xf8d   :  { %423 = vrot.lane.b32.xlu1 %v3380_v57, %s3242_s20  ;;  %981 = vrot.lane.b32.xlu2 %v3044_v18, %s3241_s17 }
 0xfdf   :  { %v980_v21 = vpop.permute.xlu1 %979 }
 0xfe0   :  { %v985_v47 = vmul.f32 %v980_v21, %v3544_v12 }
 0xfe2   :  { %v3579_v23 = vpack.c.bf16 %v985_v47, %v985_v47 }
 0xfe4   :  { %v1003_v56 = vunpack.c.l.b16 %v3579_v23 }
 0xfe7   :  { %v982_v22 = vpop.permute.xlu2 %981 }
 0xfe8   :  { %v986_v24 = vmul.f32 %v982_v22, %v949_v43 }
 0xfea   :  { %v3581_v25 = vpack.c.bf16 %v986_v24, %v986_v24 }
 0xfec   :  { %v1004_v26 = vunpack.c.l.b16 %v3581_v25 }
 0xfee   :  { %v1005_v27 = vpack.c.b16 %v1004_v26, %v1003_v56 }
 0xfef   :  { %v1380_v28 = vpop.permute.xlu0 %1379 }
 0xff0   :  { %1006 = vrot.lane.b32.xlu2 %v1005_v27, %s3242_s20  ;;  %v1385_v57 = vmul.f32 %v1380_v28, %v1334_v51 }
 0xff2   :  { %v3586_v30 = vpack.c.bf16 %v1385_v57, %v1385_v57 }
 0xff4   :  { %v1401_v32 = vunpack.c.l.b16 %v3586_v30 }
 0xff7   :  { %v422_v5 = vpop.permute.xlu0 %421  ;;  %v1382_v29 = vpop.permute.xlu1 %1381 }
 0xff8   :  { %428 = vst.msk [vmem:[#allocation2 + $0x8] sm:$0xf] %vm313_vm7, %v422_v5  ;;  %v1386_v12 = vmul.f32 %v1382_v29, %v3548_v33 }
 0xffa   :  { %v3590_v31 = vpack.c.bf16 %v1386_v12, %v1386_v12 }
 0xffc   :  { %v1402_v34 = vunpack.c.l.b16 %v3590_v31 }
 0xffe   :  { %v1403_v35 = vpack.c.b16 %v1402_v34, %v1401_v32 }
 0xfff   :  { %v424_v36 = vpop.permute.xlu1 %423 }
0x1000   :  { %429 = vst.msk [vmem:[#allocation2 + $0xc] sm:$0xf] %vm313_vm7, %v424_v36  ;;  %1404 = vrot.lane.b32.xlu2 %v1403_v35, %s3242_s20 }
0x1007   :  { %v2888_v37 = vld [vmem:[#allocation2 + $0x8] sm:$0xff] }
0x1008   :  { %2772 = vmatmul.msk.bf16.gmra.mxu3 %vm209_vm9, %v2888_v37 }
0x104a   :  { %v1007_v33 = vpop.permute.xlu2 %1006 }
0x104b   :  { %2728 = vmatmul.msk.bf16.vlgmr.msra.gmra.mxu2 %vm209_vm9, %v1007_v33 }
0x104c   :  { %1639 = vmatpush.bf16.msra.mxu2 %v3513_v19 }
0x1050   :  { %1640 = vmatpush.bf16.msra.mxu2 %v3519_v20 }
0x105a   :  { %v1405_v39 = vpop.permute.xlu2 %1404 }
0x105b   :  { %2789 = vmatmul.msk.bf16.vlgmr.msrb.gmra.mxu2 %vm209_vm9, %v1405_v39 }
0x105c   :  { %1863 = vmatpush.bf16.msrb.mxu2 %v3513_v19 }
0x1060   :  { %1864 = vmatpush.bf16.msrb.mxu2 %v3519_v20 }
0x108b   :  { %v1232_v42 = vpop.f32.mrf.mxu3 }
0x108c   :  { %v1233_v43 = vadd.f32 %v3537_v4, %v1232_v42 }
0x1093   :  { %v1234_v52 = vpop.f32.mrf.mxu3 }
0x1094   :  { %v1235_v50 = vadd.f32 %v3537_v4, %v1234_v52 }
0x10ce   :  { %v3607_v40 = vpop.f32.mrf.mxu2 }
0x10d6   :  { %v3609_v41 = vpop.f32.mrf.mxu2 }
0x10de   :  { %v1418_v46 = vpop.f32.mrf.mxu2 }
0x10df   :  { %v1423_v49 = vadd.f32 %v1418_v46, %v1233_v43 }
0x10e1   :  { %3045 = vtanh.f32 %v1423_v49  ;;  %v2790_v0 = vmul.f32 -1.442695, %v1423_v49 }
0x10e6   :  { %v1420_v44 = vpop.f32.mrf.mxu2 }
0x10e7   :  { %v3046_v45 = vpop.eup %3045  ;;  %v1424_v48 = vadd.f32 %v1420_v44, %v1235_v50 }
0x10e8   :  { %1469 = vrot.lane.b32.xlu0 %v3046_v45, %s3241_s17 }
0x10e9   :  { %3047 = vtanh.f32 %v1424_v48  ;;  %v2791_v2 = vmul.f32 -1.442695, %v1424_v48 }
0x10ea   :  { %3049 = vpow2.f32 %v2790_v0 }
0x10eb   :  { %3051 = vpow2.f32 %v2791_v2 }
0x10ef   :  { %v3048_v51 = vpop.eup %3047 }
0x10f0   :  { %1471 = vrot.lane.b32.xlu1 %v3048_v51, %s3241_s17  ;;  %v3050_v6 = vpop.eup %3049 }
0x10f1   :  { %v1431_v58 = vadd.f32 1.0, %v3050_v6  ;;  %v3052_v54 = vpop.eup %3051 }
0x10f2   :  { %v1432_v61 = vadd.f32 1.0, %v3052_v54 }
0x10f3   :  { %3053 = vrcp.f32 %v1431_v58  ;;  %v1444_v47 = vand.u32 2147483648, %v1431_v58  ;;  %vm1438_vm12 = vweird.f32 %v1431_v58  ;;  %v1442_v22 = vand.u32 2147483647, %v1431_v58 }
0x10f4   :  { %3055 = vrcp.f32 %v1432_v61  ;;  %v1459_v29 = vand.u32 2147483648, %v1432_v61  ;;  %vm1453_vm1 = vweird.f32 %v1432_v61  ;;  %v1457_v12 = vand.u32 2147483647, %v1432_v61 }
0x10f5   :  { %v1445_v26 = vor.u32 1.1754944e-38, %v1444_v47  ;;  %vm1443_vm14 = vcmp.eq.f32.partialorder %v1442_v22, 8.507059e+37 }
0x10f6   :  { %v1460_v34 = vor.u32 1.1754944e-38, %v1459_v29  ;;  %vm1458_vm3 = vcmp.eq.f32.partialorder %v1457_v12, 8.507059e+37 }
0x10f9   :  { %v3054_v11 = vpop.eup %3053 }
0x10fa   :  { %v1434_v60 = vmul.f32 %v3054_v11, %v1431_v58  ;;  %v3056_v53 = vpop.eup %3055  ;;  %vm1439_vm0 = vweird.f32 %v3054_v11 }
0x10fb   :  { %v1449_v16 = vmul.f32 %v3056_v53, %v1432_v61  ;;  %vm1440_vm13 = vmor %vm1438_vm12, %vm1439_vm0  ;;  %vm1454_vm15 = vweird.f32 %v3056_v53 }
0x10fc   :  { %v1435_v13 = vsub.f32 1.0, %v1434_v60  ;;  %vm1455_vm2 = vmor %vm1453_vm1, %vm1454_vm15 }
0x10fd   :  { %v1450_v21 = vsub.f32 1.0, %v1449_v16 }
0x10fe   :  { %v1436_v15 = vmul.f32 %v3054_v11, %v1435_v13 }
0x10ff   :  { %v1451_v56 = vmul.f32 %v3056_v53, %v1450_v21 }
0x1100   :  { %v1437_v18 = vadd.f32 %v3054_v11, %v1436_v15 }
0x1101   :  { %v1452_v5 = vadd.f32 %v3056_v53, %v1451_v56 }
0x1102   :  { %v1441_v24 = vsel %vm1440_vm13, %v3054_v11, %v1437_v18 }
0x1103   :  { %v1446_v28 = vsel %vm1443_vm14, %v1445_v26, %v1441_v24  ;;  %v1456_v32 = vsel %vm1455_vm2, %v3056_v53, %v1452_v5 }
0x1104   :  { %v1461_v36 = vsel %vm1458_vm3, %v1460_v34, %v1456_v32  ;;  %v1465_v38 = vmul.f32 %v1446_v28, %v3560_v10 }
0x1105   :  { %v1466_v43 = vmul.f32 %v1461_v36, %v3564_v1 }
0x115a   :  { %v1470_v27 = vpop.permute.xlu0 %1469 }
0x115b   :  { %v1475_v57 = vmul.f32 %v1470_v27, %v1446_v28 }
0x115d   :  { %1479 = vrot.lane.b32.xlu2 %v1475_v57, %s3241_s17 }
0x1162   :  { %v1472_v35 = vpop.permute.xlu1 %1471 }
0x1163   :  { %v1476_v37 = vmul.f32 %v1472_v35, %v1461_v36 }
0x1165   :  { %1481 = vrot.lane.b32.xlu0 %v1476_v37, %s3241_s17 }
0x116d   :  { %535 = vrot.lane.b32.xlu0 %v3406_v55, %s3242_s20 }
0x11b7   :  { %v1480_v33 = vpop.permute.xlu2 %1479 }
0x11b8   :  { %v3620_v39 = vadd.f32 %v1480_v33, %v1465_v38 }
0x11ba   :  { %3057 = vtanh.f32 %v3620_v39 }
0x11c0   :  { %v3058_v42 = vpop.eup %3057 }
0x11c1   :  { %1491 = vrot.lane.b32.xlu1 %v3058_v42, %s3241_s17 }
0x11c9   :  { %537 = vrot.lane.b32.xlu1 %v3408_v59, %s3242_s20 }
0x11d7   :  { %v1482_v46 = vpop.permute.xlu0 %1481 }
0x11d8   :  { %v3627_v49 = vadd.f32 %v1482_v46, %v1466_v43 }
0x11da   :  { %3059 = vtanh.f32 %v3627_v49 }
0x11df   :  { %v536_v55 = vpop.permute.xlu0 %535 }
0x11e0   :  { %v3060_v10 = vpop.eup %3059  ;;  %542 = vst.msk [vmem:[#allocation2 + $0x10] sm:$0xf] %vm313_vm7, %v536_v55 }
0x11e1   :  { %1493 = vrot.lane.b32.xlu2 %v3060_v10, %s3241_s17 }
0x1233   :  { %v1492_v52 = vpop.permute.xlu1 %1491 }
0x1234   :  { %v1497_v50 = vmul.f32 %v1492_v52, %v1446_v28 }
0x1236   :  { %v3632_v48 = vpack.c.bf16 %v1497_v50, %v1497_v50 }
0x1238   :  { %v1513_v51 = vunpack.c.l.b16 %v3632_v48 }
0x123b   :  { %v538_v44 = vpop.permute.xlu1 %537  ;;  %v1494_v45 = vpop.permute.xlu2 %1493 }
0x123c   :  { %543 = vst.msk [vmem:[#allocation2 + $0x14] sm:$0xf] %vm313_vm7, %v538_v44  ;;  %v1498_v59 = vmul.f32 %v1494_v45, %v1461_v36 }
0x123e   :  { %v3635_v1 = vpack.c.bf16 %v1498_v59, %v1498_v59 }
0x1240   :  { %v1514_v0 = vunpack.c.l.b16 %v3635_v1 }
0x1242   :  { %v1515_v2 = vpack.c.b16 %v1514_v0, %v1513_v51 }
0x1243   :  { %v2889_v6 = vld [vmem:[#allocation2 + $0x10] sm:$0xff] }
0x1244   :  { %1516 = vrot.lane.b32.xlu2 %v1515_v2, %s3242_s20  ;;  %2773 = vmatmul.msk.bf16.gmra.mxu3 %vm209_vm9, %v2889_v6 }
0x129e   :  { %v1517_v58 = vpop.permute.xlu2 %1516 }
0x129f   :  { %2792 = vmatmul.msk.bf16.vlgmr.msra.gmra.mxu1 %vm209_vm9, %v1517_v58 }
0x12a0   :  { %1975 = vmatpush.bf16.msra.mxu1 %v3513_v19 }
0x12a4   :  { %1976 = vmatpush.bf16.msra.mxu1 %v3519_v20 }
0x12c7   :  { %v1237_v54 = vpop.f32.mrf.mxu3 }
0x12c8   :  { %v1238_v61 = vadd.f32 %v3537_v4, %v1237_v54 }
0x12cf   :  { %v1239_v13 = vpop.f32.mrf.mxu3 }
0x12d0   :  { %v1240_v53 = vadd.f32 %v3537_v4, %v1239_v13 }
0x131c   :  { %v1530_v11 = vpop.f32.mrf.mxu1 }
0x131d   :  { %v1535_v60 = vadd.f32 %v1530_v11, %v1238_v61 }
0x131f   :  { %3061 = vtanh.f32 %v1535_v60  ;;  %v2793_v47 = vmul.f32 -1.442695, %v1535_v60 }
0x1324   :  { %v1532_v15 = vpop.f32.mrf.mxu1 }
0x1325   :  { %v3062_v16 = vpop.eup %3061  ;;  %v1536_v18 = vadd.f32 %v1532_v15, %v1240_v53 }
0x1326   :  { %1581 = vrot.lane.b32.xlu0 %v3062_v16, %s3241_s17 }
0x1327   :  { %3063 = vtanh.f32 %v1536_v18  ;;  %v2794_v22 = vmul.f32 -1.442695, %v1536_v18 }
0x1328   :  { %3065 = vpow2.f32 %v2793_v47 }
0x1329   :  { %3067 = vpow2.f32 %v2794_v22 }
0x132d   :  { %v3064_v21 = vpop.eup %3063 }
0x132e   :  { %1583 = vrot.lane.b32.xlu1 %v3064_v21, %s3241_s17  ;;  %v3066_v24 = vpop.eup %3065 }
0x132f   :  { %v1543_v56 = vadd.f32 1.0, %v3066_v24  ;;  %v3068_v26 = vpop.eup %3067 }
0x1330   :  { %v1544_v27 = vadd.f32 1.0, %v3068_v26 }
0x1331   :  { %3069 = vrcp.f32 %v1543_v56  ;;  %v1556_v36 = vand.u32 2147483648, %v1543_v56  ;;  %vm1550_vm5 = vweird.f32 %v1543_v56  ;;  %v1554_v37 = vand.u32 2147483647, %v1543_v56 }
0x1332   :  { %3071 = vrcp.f32 %v1544_v27  ;;  %v1571_v52 = vand.u32 2147483648, %v1544_v27  ;;  %vm1565_vm11 = vweird.f32 %v1544_v27  ;;  %v1569_v50 = vand.u32 2147483647, %v1544_v27 }
0x1333   :  { %v1557_v42 = vor.u32 1.1754944e-38, %v1556_v36  ;;  %vm1555_vm8 = vcmp.eq.f32.partialorder %v1554_v37, 8.507059e+37 }
0x1334   :  { %v1572_v45 = vor.u32 1.1754944e-38, %v1571_v52  ;;  %vm1570_vm12 = vcmp.eq.f32.partialorder %v1569_v50, 8.507059e+37 }
0x1337   :  { %v3070_v28 = vpop.eup %3069 }
0x1338   :  { %v1546_v57 = vmul.f32 %v3070_v28, %v1543_v56  ;;  %v3072_v29 = vpop.eup %3071  ;;  %vm1551_vm4 = vweird.f32 %v3070_v28 }
0x1339   :  { %v1561_v32 = vmul.f32 %v3072_v29, %v1544_v27  ;;  %vm1552_vm6 = vmor %vm1550_vm5, %vm1551_vm4  ;;  %vm1566_vm10 = vweird.f32 %v3072_v29 }
0x133a   :  { %v1547_v5 = vsub.f32 1.0, %v1546_v57  ;;  %vm1567_vm0 = vmor %vm1565_vm11, %vm1566_vm10 }
0x133b   :  { %v1562_v35 = vsub.f32 1.0, %v1561_v32 }
0x133c   :  { %v1548_v12 = vmul.f32 %v3070_v28, %v1547_v5 }
0x133d   :  { %v1563_v33 = vmul.f32 %v3072_v29, %v1562_v35 }
0x133e   :  { %v1549_v34 = vadd.f32 %v3070_v28, %v1548_v12 }
0x133f   :  { %v1564_v10 = vadd.f32 %v3072_v29, %v1563_v33 }
0x1340   :  { %v1553_v38 = vsel %vm1552_vm6, %v3070_v28, %v1549_v34 }
0x1341   :  { %v1558_v46 = vsel %vm1555_vm8, %v1557_v42, %v1553_v38  ;;  %v1568_v44 = vsel %vm1567_vm0, %v3072_v29, %v1564_v10 }
0x1342   :  { %v1573_v51 = vsel %vm1570_vm12, %v1572_v45, %v1568_v44  ;;  %v1577_v2 = vmul.f32 %v1558_v46, %v3620_v39 }
0x1343   :  { %v1578_v61 = vmul.f32 %v1573_v51, %v3627_v49 }
0x1398   :  { %v1582_v43 = vpop.permute.xlu0 %1581 }
0x1399   :  { %v1587_v55 = vmul.f32 %v1582_v43, %v1558_v46 }
0x139b   :  { %1591 = vrot.lane.b32.xlu2 %v1587_v55, %s3241_s17 }
0x13a0   :  { %v1584_v59 = vpop.permute.xlu1 %1583 }
0x13a1   :  { %v1588_v0 = vmul.f32 %v1584_v59, %v1573_v51 }
0x13a3   :  { %1593 = vrot.lane.b32.xlu0 %v1588_v0, %s3241_s17 }
0x13ab   :  { %649 = vrot.lane.b32.xlu0 %v3434_v62, %s3242_s20 }
0x13f5   :  { %v1592_v6 = vpop.permute.xlu2 %1591 }
0x13f6   :  { %v3653_v58 = vadd.f32 %v1592_v6, %v1577_v2 }
0x13f8   :  { %3073 = vtanh.f32 %v3653_v58 }
0x13fe   :  { %v3074_v54 = vpop.eup %3073 }
0x13ff   :  { %1603 = vrot.lane.b32.xlu1 %v3074_v54, %s3241_s17 }
0x1407   :  { %651 = vrot.lane.b32.xlu1 %v3436_v63, %s3242_s20 }
0x1415   :  { %v1594_v11 = vpop.permute.xlu0 %1593 }
0x1416   :  { %v3660_v60 = vadd.f32 %v1594_v11, %v1578_v61 }
0x1418   :  { %3075 = vtanh.f32 %v3660_v60 }
0x141d   :  { %v650_v62 = vpop.permute.xlu0 %649 }
0x141e   :  { %v3076_v39 = vpop.eup %3075  ;;  %656 = vst.msk [vmem:[#allocation2 + $0x18] sm:$0xf] %vm313_vm7, %v650_v62 }
0x141f   :  { %1605 = vrot.lane.b32.xlu2 %v3076_v39, %s3241_s17 }
0x1471   :  { %v1604_v13 = vpop.permute.xlu1 %1603 }
0x1472   :  { %v1609_v53 = vmul.f32 %v1604_v13, %v1558_v46 }
0x1474   :  { %v3665_v18 = vpack.c.bf16 %v1609_v53, %v1609_v53 }
0x1476   :  { %v1625_v21 = vunpack.c.l.b16 %v3665_v18 }
0x1479   :  { %v652_v15 = vpop.permute.xlu1 %651  ;;  %v1606_v16 = vpop.permute.xlu2 %1605 }
0x147a   :  { %657 = vst.msk [vmem:[#allocation2 + $0x1c] sm:$0xf] %vm313_vm7, %v652_v15  ;;  %v1610_v63 = vmul.f32 %v1606_v16, %v1573_v51 }
0x147c   :  { %v3668_v49 = vpack.c.bf16 %v1610_v63, %v1610_v63 }
0x147e   :  { %v1626_v47 = vunpack.c.l.b16 %v3668_v49 }
0x1480   :  { %v1627_v22 = vpack.c.b16 %v1626_v47, %v1625_v21 }
0x1481   :  { %v2890_v24 = vld [vmem:[#allocation2 + $0x18] sm:$0xff] }
0x1482   :  { %1628 = vrot.lane.b32.xlu2 %v1627_v22, %s3242_s20  ;;  %2774 = vmatmul.msk.bf16.gmra.mxu3 %vm209_vm9, %v2890_v24 }
0x14dc   :  { %v1629_v56 = vpop.permute.xlu2 %1628 }
0x14dd   :  { %2795 = vmatmul.msk.bf16.vlgmr.msra.gmra.mxu2 %vm209_vm9, %v1629_v56 }
0x14de   :  { %2087 = vmatpush.bf16.msra.mxu2 %v3513_v19 }
0x14e2   :  { %2088 = vmatpush.bf16.msra.mxu2 %v3519_v20 }
0x1505   :  { %v1242_v26 = vpop.f32.mrf.mxu3 }
0x1506   :  { %v1243_v27 = vadd.f32 %v3537_v4, %v1242_v26 }
0x150d   :  { %v1244_v5 = vpop.f32.mrf.mxu3 }
0x150e   :  { %v1245_v29 = vadd.f32 %v3537_v4, %v1244_v5 }
0x1560   :  { %v1642_v28 = vpop.f32.mrf.mxu2 }
0x1561   :  { %v1647_v57 = vadd.f32 %v1642_v28, %v1243_v27 }
0x1563   :  { %3077 = vtanh.f32 %v1647_v57  ;;  %v2796_v19 = vmul.f32 -1.442695, %v1647_v57 }
0x1568   :  { %v1644_v12 = vpop.f32.mrf.mxu2 }
0x1569   :  { %v3078_v32 = vpop.eup %3077  ;;  %v1648_v34 = vadd.f32 %v1644_v12, %v1245_v29 }
0x156a   :  { %1693 = vrot.lane.b32.xlu0 %v3078_v32, %s3241_s17 }
0x156b   :  { %3079 = vtanh.f32 %v1648_v34  ;;  %v2797_v20 = vmul.f32 -1.442695, %v1648_v34 }
0x156c   :  { %3081 = vpow2.f32 %v2796_v19 }
0x156d   :  { %3083 = vpow2.f32 %v2797_v20 }
0x1571   :  { %v3080_v35 = vpop.eup %3079 }
0x1572   :  { %1695 = vrot.lane.b32.xlu1 %v3080_v35, %s3241_s17  ;;  %v3082_v36 = vpop.eup %3081 }
0x1573   :  { %v1655_v37 = vadd.f32 1.0, %v3082_v36  ;;  %v3084_v38 = vpop.eup %3083 }
0x1574   :  { %v1656_v33 = vadd.f32 1.0, %v3084_v38 }
0x1575   :  { %3085 = vrcp.f32 %v1655_v37  ;;  %v1668_v45 = vand.u32 2147483648, %v1655_v37  ;;  %vm1662_vm14 = vweird.f32 %v1655_v37  ;;  %v1666_v59 = vand.u32 2147483647, %v1655_v37 }
0x1576   :  { %3087 = vrcp.f32 %v1656_v33  ;;  %v1683_v62 = vand.u32 2147483648, %v1656_v33  ;;  %vm1677_vm3 = vweird.f32 %v1656_v33  ;;  %v1681_v39 = vand.u32 2147483647, %v1656_v33 }
0x1577   :  { %v1669_v2 = vor.u32 1.1754944e-38, %v1668_v45  ;;  %vm1667_vm1 = vcmp.eq.f32.partialorder %v1666_v59, 8.507059e+37 }
0x1578   :  { %v1684_v53 = vor.u32 1.1754944e-38, %v1683_v62  ;;  %vm1682_vm5 = vcmp.eq.f32.partialorder %v1681_v39, 8.507059e+37 }
0x157b   :  { %v3086_v42 = vpop.eup %3085 }
0x157c   :  { %v1658_v43 = vmul.f32 %v3086_v42, %v1655_v37  ;;  %v3088_v55 = vpop.eup %3087  ;;  %vm1663_vm13 = vweird.f32 %v3086_v42 }
0x157d   :  { %v1673_v52 = vmul.f32 %v3088_v55, %v1656_v33  ;;  %vm1664_vm15 = vmor %vm1662_vm14, %vm1663_vm13  ;;  %vm1678_vm2 = vweird.f32 %v3088_v55 }
0x157e   :  { %v1659_v46 = vsub.f32 1.0, %v1658_v43  ;;  %vm1679_vm4 = vmor %vm1677_vm3, %vm1678_vm2 }
0x157f   :  { %v1674_v44 = vsub.f32 1.0, %v1673_v52 }
0x1580   :  { %v1660_v10 = vmul.f32 %v3086_v42, %v1659_v46 }
0x1581   :  { %v1675_v0 = vmul.f32 %v3088_v55, %v1674_v44 }
0x1582   :  { %v1661_v50 = vadd.f32 %v3086_v42, %v1660_v10 }
0x1583   :  { %v1676_v11 = vadd.f32 %v3088_v55, %v1675_v0 }
0x1584   :  { %v1665_v51 = vsel %vm1664_vm15, %v3086_v42, %v1661_v50 }
0x1585   :  { %v1670_v54 = vsel %vm1667_vm1, %v1669_v2, %v1665_v51  ;;  %v1680_v13 = vsel %vm1679_vm4, %v3088_v55, %v1676_v11 }
0x1586   :  { %v1685_v16 = vsel %vm1682_vm5, %v1684_v53, %v1680_v13  ;;  %v1689_v21 = vmul.f32 %v1670_v54, %v3653_v58 }
0x1587   :  { %v1690_v56 = vmul.f32 %v1685_v16, %v3660_v60 }
0x15dc   :  { %v1694_v6 = vpop.permute.xlu0 %1693 }
0x15dd   :  { %v1699_v61 = vmul.f32 %v1694_v6, %v1670_v54 }
0x15df   :  { %1703 = vrot.lane.b32.xlu2 %v1699_v61, %s3241_s17 }
0x15e4   :  { %v1696_v15 = vpop.permute.xlu1 %1695 }
0x15e5   :  { %v1700_v63 = vmul.f32 %v1696_v15, %v1685_v16 }
0x15e7   :  { %1705 = vrot.lane.b32.xlu0 %v1700_v63, %s3241_s17 }
0x15ef   :  { %763 = vrot.lane.b32.xlu0 %v3462_v7, %s3242_s20 }
0x1639   :  { %v1704_v47 = vpop.permute.xlu2 %1703 }
0x163a   :  { %v3686_v22 = vadd.f32 %v1704_v47, %v1689_v21 }
0x163c   :  { %3089 = vtanh.f32 %v3686_v22 }
0x1642   :  { %v3090_v24 = vpop.eup %3089 }
0x1643   :  { %1715 = vrot.lane.b32.xlu1 %v3090_v24, %s3241_s17 }
0x164b   :  { %765 = vrot.lane.b32.xlu1 %v3464_v8, %s3242_s20 }
0x1659   :  { %v1706_v26 = vpop.permute.xlu0 %1705 }
0x165a   :  { %v3693_v27 = vadd.f32 %v1706_v26, %v1690_v56 }
0x165c   :  { %3091 = vtanh.f32 %v3693_v27 }
0x1661   :  { %v764_v7 = vpop.permute.xlu0 %763 }
0x1662   :  { %v3092_v58 = vpop.eup %3091  ;;  %770 = vst.msk [vmem:[#allocation2 + $0x20] sm:$0xf] %vm313_vm7, %v764_v7 }
0x1663   :  { %1717 = vrot.lane.b32.xlu2 %v3092_v58, %s3241_s17 }
0x16b5   :  { %v1716_v28 = vpop.permute.xlu1 %1715 }
0x16b6   :  { %v1721_v57 = vmul.f32 %v1716_v28, %v1670_v54 }
0x16b8   :  { %v3698_v12 = vpack.c.bf16 %v1721_v57, %v1721_v57 }
0x16ba   :  { %v1737_v32 = vunpack.c.l.b16 %v3698_v12 }
0x16bd   :  { %v766_v5 = vpop.permute.xlu1 %765  ;;  %v1718_v29 = vpop.permute.xlu2 %1717 }
0x16be   :  { %771 = vst.msk [vmem:[#allocation2 + $0x24] sm:$0xf] %vm313_vm7, %v766_v5  ;;  %v1722_v8 = vmul.f32 %v1718_v29, %v1685_v16 }
0x16c0   :  { %v3701_v60 = vpack.c.bf16 %v1722_v8, %v1722_v8 }
0x16c2   :  { %v1738_v34 = vunpack.c.l.b16 %v3701_v60 }
0x16c4   :  { %v1739_v35 = vpack.c.b16 %v1738_v34, %v1737_v32 }
0x16c5   :  { %v2891_v19 = vld [vmem:[#allocation2 + $0x20] sm:$0xff] }
0x16c6   :  { %1740 = vrot.lane.b32.xlu2 %v1739_v35, %s3242_s20  ;;  %2775 = vmatmul.msk.bf16.gmra.mxu3 %vm209_vm9, %v2891_v19 }
0x1720   :  { %v1741_v20 = vpop.permute.xlu2 %1740 }
0x1721   :  { %2798 = vmatmul.msk.bf16.vlgmr.msrb.gmra.mxu1 %vm209_vm9, %v1741_v20 }
0x1749   :  { %v1247_v36 = vpop.f32.mrf.mxu3 }
0x174a   :  { %v1248_v37 = vadd.f32 %v3537_v4, %v1247_v36 }
0x1751   :  { %v1249_v42 = vpop.f32.mrf.mxu3 }
0x1752   :  { %v1250_v43 = vadd.f32 %v3537_v4, %v1249_v42 }
0x179e   :  { %v1754_v38 = vpop.f32.mrf.mxu1 }
0x179f   :  { %v1759_v33 = vadd.f32 %v1754_v38, %v1248_v37 }
0x17a1   :  { %3093 = vtanh.f32 %v1759_v33  ;;  %v2799_v50 = vmul.f32 -1.442695, %v1759_v33 }
0x17a6   :  { %v1756_v46 = vpop.f32.mrf.mxu1 }
0x17a7   :  { %v3094_v55 = vpop.eup %3093  ;;  %v1760_v10 = vadd.f32 %v1756_v46, %v1250_v43 }
0x17a8   :  { %1805 = vrot.lane.b32.xlu0 %v3094_v55, %s3241_s17 }
0x17a9   :  { %3095 = vtanh.f32 %v1760_v10  ;;  %v2800_v44 = vmul.f32 -1.442695, %v1760_v10 }
0x17aa   :  { %3097 = vpow2.f32 %v2799_v50 }
0x17ab   :  { %3099 = vpow2.f32 %v2800_v44 }
0x17af   :  { %v3096_v52 = vpop.eup %3095 }
0x17b0   :  { %1807 = vrot.lane.b32.xlu1 %v3096_v52, %s3241_s17  ;;  %v3098_v45 = vpop.eup %3097 }
0x17b1   :  { %v1767_v59 = vadd.f32 1.0, %v3098_v45  ;;  %v3100_v51 = vpop.eup %3099  ;;  %v3742_v45 = vld [vmem:[%s4037_s6] ss:$0 sm:$0xff] }
0x17b2   :  { %v1768_v0 = vadd.f32 1.0, %v3100_v51 }
0x17b3   :  { %3101 = vrcp.f32 %v1767_v59  ;;  %v1780_v13 = vand.u32 2147483648, %v1767_v59  ;;  %vm1774_vm8 = vweird.f32 %v1767_v59  ;;  %v1778_v53 = vand.u32 2147483647, %v1767_v59 }
0x17b4   :  { %3103 = vrcp.f32 %v1768_v0  ;;  %v1795_v26 = vand.u32 2147483648, %v1768_v0  ;;  %vm1789_vm12 = vweird.f32 %v1768_v0  ;;  %v1793_v7 = vand.u32 2147483647, %v1768_v0 }
0x17b5   :  { %v1781_v63 = vor.u32 1.1754944e-38, %v1780_v13  ;;  %vm1779_vm11 = vcmp.eq.f32.partialorder %v1778_v53, 8.507059e+37 }
0x17b6   :  { %v1796_v28 = vor.u32 1.1754944e-38, %v1795_v26  ;;  %vm1794_vm14 = vcmp.eq.f32.partialorder %v1793_v7, 8.507059e+37 }
0x17b9   :  { %v3102_v2 = vpop.eup %3101 }
0x17ba   :  { %v1770_v4 = vmul.f32 %v3102_v2, %v1767_v59  ;;  %v3104_v54 = vpop.eup %3103  ;;  %vm1775_vm6 = vweird.f32 %v3102_v2 }
0x17bb   :  { %v1785_v11 = vmul.f32 %v3104_v54, %v1768_v0  ;;  %vm1776_vm10 = vmor %vm1774_vm8, %vm1775_vm6  ;;  %vm1790_vm0 = vweird.f32 %v3104_v54 }
0x17bc   :  { %v1771_v6 = vsub.f32 1.0, %v1770_v4  ;;  %vm1791_vm13 = vmor %vm1789_vm12, %vm1790_vm0 }
0x17bd   :  { %v1786_v39 = vsub.f32 1.0, %v1785_v11 }
0x17be   :  { %v1772_v61 = vmul.f32 %v3102_v2, %v1771_v6 }
0x17bf   :  { %v1787_v16 = vmul.f32 %v3104_v54, %v1786_v39 }
0x17c0   :  { %v1773_v62 = vadd.f32 %v3102_v2, %v1772_v61 }
0x17c1   :  { %v1788_v56 = vadd.f32 %v3104_v54, %v1787_v16 }
0x17c2   :  { %v1777_v15 = vsel %vm1776_vm10, %v3102_v2, %v1773_v62 }
0x17c3   :  { %v1782_v47 = vsel %vm1779_vm11, %v1781_v63, %v1777_v15  ;;  %v1792_v58 = vsel %vm1791_vm13, %v3104_v54, %v1788_v56 }
0x17c4   :  { %v1797_v5 = vsel %vm1794_vm14, %v1796_v28, %v1792_v58  ;;  %v1801_v8 = vmul.f32 %v1782_v47, %v3686_v22 }
0x17c5   :  { %v1802_v19 = vmul.f32 %v1797_v5, %v3693_v27 }
0x181a   :  { %v1806_v21 = vpop.permute.xlu0 %1805 }
0x181b   :  { %v1811_v24 = vmul.f32 %v1806_v21, %v1782_v47 }
0x181d   :  { %1815 = vrot.lane.b32.xlu2 %v1811_v24, %s3241_s17 }
0x1822   :  { %v1808_v57 = vpop.permute.xlu1 %1807 }
0x1823   :  { %v1812_v29 = vmul.f32 %v1808_v57, %v1797_v5 }
0x1825   :  { %1817 = vrot.lane.b32.xlu0 %v1812_v29, %s3241_s17 }
0x182d   :  { %877 = vrot.lane.b32.xlu0 %v3501_v14, %s3242_s20 }
0x1877   :  { %v1816_v32 = vpop.permute.xlu2 %1815 }
0x1878   :  { %v3717_v34 = vadd.f32 %v1816_v32, %v1801_v8 }
0x187a   :  { %3105 = vtanh.f32 %v3717_v34 }
0x1880   :  { %v3106_v35 = vpop.eup %3105 }
0x1881   :  { %1827 = vrot.lane.b32.xlu1 %v3106_v35, %s3241_s17 }
0x1889   :  { %879 = vrot.lane.b32.xlu1 %v3504_v3, %s3242_s20 }
0x1897   :  { %v1818_v20 = vpop.permute.xlu0 %1817 }
0x1898   :  { %v3724_v36 = vadd.f32 %v1818_v20, %v1802_v19 }
0x189a   :  { %3107 = vtanh.f32 %v3724_v36 }
0x189f   :  { %v878_v14 = vpop.permute.xlu0 %877 }
0x18a0   :  { %v3108_v22 = vpop.eup %3107  ;;  %884 = vst.msk [vmem:[#allocation2 + $0x28] sm:$0xf] %vm313_vm7, %v878_v14 }
0x18a1   :  { %1829 = vrot.lane.b32.xlu2 %v3108_v22, %s3241_s17 }
0x18f3   :  { %v1828_v37 = vpop.permute.xlu1 %1827 }
0x18f4   :  { %v1833_v38 = vmul.f32 %v1828_v37, %v1782_v47 }
0x18f6   :  { %v3729_v43 = vpack.c.bf16 %v1833_v38, %v1833_v38 }
0x18f8   :  { %v1849_v46 = vunpack.c.l.b16 %v3729_v43 }
0x18fb   :  { %v880_v33 = vpop.permute.xlu1 %879  ;;  %v1830_v42 = vpop.permute.xlu2 %1829 }
0x18fc   :  { %885 = vst.msk [vmem:[#allocation2 + $0x2c] sm:$0xf] %vm313_vm7, %v880_v33  ;;  %v1834_v3 = vmul.f32 %v1830_v42, %v1797_v5 }
0x18fe   :  { %v3732_v27 = vpack.c.bf16 %v1834_v3, %v1834_v3  ;;  %v174_v3 = vpop.f32.mrf.mxu0 }
0x1900   :  { %v1850_v55 = vunpack.c.l.b16 %v3732_v27 }
0x1902   :  { %v1851_v10 = vpack.c.b16 %v1850_v55, %v1849_v46  ;;  %v3239_v55 = vld [vmem:[%s4035_s3] ss:$0 sm:$0xff] }
0x1903   :  { %v2892_v52 = vld [vmem:[#allocation2 + $0x28] sm:$0xff] }
0x1904   :  { %1852 = vrot.lane.b32.xlu2 %v1851_v10, %s3242_s20  ;;  %2776 = vmatmul.msk.bf16.gmra.mxu3 %vm209_vm9, %v2892_v52  ;;  %v175_v10 = vadd.f32 %v3239_v55, %v174_v3 }
0x1906   :  { %v1025_v52 = vadd.f32 %v3607_v40, %v175_v10 }
0x195e   :  { %v1853_v50 = vpop.permute.xlu2 %1852 }
0x195f   :  { %2801 = vmatmul.msk.bf16.vlgmr.msrb.gmra.mxu2 %vm209_vm9, %v1853_v50 }
0x1987   :  { %v1252_v44 = vpop.f32.mrf.mxu3 }
0x1988   :  { %v1253_v59 = vadd.f32 %v3742_v45, %v1252_v44 }
0x198f   :  { %v1254_v2 = vpop.f32.mrf.mxu3 }
0x1990   :  { %v1255_v4 = vadd.f32 %v3742_v45, %v1254_v2  ;;  %v176_v2 = vpop.f32.mrf.mxu0 }
0x1991   :  { %v177_v40 = vadd.f32 %v3239_v55, %v176_v2 }
0x19e2   :  { %v1866_v51 = vpop.f32.mrf.mxu2 }
0x19e3   :  { %v1871_v0 = vadd.f32 %v1866_v51, %v1253_v59 }
0x19e5   :  { %3109 = vtanh.f32 %v1871_v0  ;;  %v2802_v62 = vmul.f32 -1.442695, %v1871_v0  ;;  %v2729_v0 = vmul.f32 -1.442695, %v1025_v52 }
0x19ea   :  { %v1868_v6 = vpop.f32.mrf.mxu2 }
0x19eb   :  { %v3110_v54 = vpop.eup %3109  ;;  %v1872_v61 = vadd.f32 %v1868_v6, %v1255_v4  ;;  %v1026_v6 = vadd.f32 %v3609_v41, %v177_v40 }
0x19ec   :  { %1917 = vrot.lane.b32.xlu0 %v3110_v54, %s3241_s17 }
0x19ed   :  { %3111 = vtanh.f32 %v1872_v61  ;;  %v2803_v39 = vmul.f32 -1.442695, %v1872_v61 }
0x19ee   :  { %3113 = vpow2.f32 %v2802_v62 }
0x19ef   :  { %3115 = vpow2.f32 %v2803_v39 }
0x19f3   :  { %v3112_v11 = vpop.eup %3111 }
0x19f4   :  { %1919 = vrot.lane.b32.xlu1 %v3112_v11, %s3241_s17  ;;  %v3114_v13 = vpop.eup %3113 }
0x19f5   :  { %v1879_v53 = vadd.f32 1.0, %v3114_v13  ;;  %v3116_v15 = vpop.eup %3115 }
0x19f6   :  { %v1880_v16 = vadd.f32 1.0, %v3116_v15 }
0x19f7   :  { %3117 = vrcp.f32 %v1879_v53  ;;  %v1892_v28 = vand.u32 2147483648, %v1879_v53  ;;  %vm1886_vm1 = vweird.f32 %v1879_v53  ;;  %v1890_v57 = vand.u32 2147483647, %v1879_v53 }
0x19f8   :  { %3119 = vrcp.f32 %v1880_v16  ;;  %v1907_v14 = vand.u32 2147483648, %v1880_v16  ;;  %vm1901_vm5 = vweird.f32 %v1880_v16  ;;  %v1905_v22 = vand.u32 2147483647, %v1880_v16 }
0x19f9   :  { %v1893_v8 = vor.u32 1.1754944e-38, %v1892_v28  ;;  %vm1891_vm3 = vcmp.eq.f32.partialorder %v1890_v57, 8.507059e+37  ;;  %3121 = vtanh.f32 %v1025_v52 }
0x19fa   :  { %v1908_v38 = vor.u32 1.1754944e-38, %v1907_v14  ;;  %vm1906_vm8 = vcmp.eq.f32.partialorder %v1905_v22, 8.507059e+37  ;;  %v2730_v22 = vmul.f32 -1.442695, %v1026_v6 }
0x19fd   :  { %v3118_v63 = vpop.eup %3117 }
0x19fe   :  { %v1882_v21 = vmul.f32 %v3118_v63, %v1879_v53  ;;  %v3120_v24 = vpop.eup %3119  ;;  %vm1887_vm15 = vweird.f32 %v3118_v63 }
0x19ff   :  { %v1897_v26 = vmul.f32 %v3120_v24, %v1880_v16  ;;  %vm1888_vm2 = vmor %vm1886_vm1, %vm1887_vm15  ;;  %vm1902_vm4 = vweird.f32 %v3120_v24  ;;  %v3122_v50 = vpop.eup %3121 }
0x1a00   :  { %v1883_v47 = vsub.f32 1.0, %v1882_v21  ;;  %vm1903_vm6 = vmor %vm1901_vm5, %vm1902_vm4 }
0x1a01   :  { %v1898_v58 = vsub.f32 1.0, %v1897_v26 }
0x1a02   :  { %v1884_v56 = vmul.f32 %v3118_v63, %v1883_v47 }
0x1a03   :  { %v1899_v29 = vmul.f32 %v3120_v24, %v1898_v58 }
0x1a04   :  { %v1885_v7 = vadd.f32 %v3118_v63, %v1884_v56 }
0x1a05   :  { %v1900_v20 = vadd.f32 %v3120_v24, %v1899_v29 }
0x1a06   :  { %v1889_v5 = vsel %vm1888_vm2, %v3118_v63, %v1885_v7 }
0x1a07   :  { %v3748_v35 = vsel %vm1891_vm3, %v1893_v8, %v1889_v5  ;;  %v1904_v37 = vsel %vm1903_vm6, %v3120_v24, %v1900_v20 }
0x1a08   :  { %v1909_v42 = vsel %vm1906_vm8, %v1908_v38, %v1904_v37  ;;  %v1913_v44 = vmul.f32 %v3748_v35, %v3717_v34 }
0x1a09   :  { %v1914_v62 = vmul.f32 %v1909_v42, %v3724_v36 }
0x1a5e   :  { %v1918_v32 = vpop.permute.xlu0 %1917 }
0x1a5f   :  { %v1923_v19 = vmul.f32 %v1918_v32, %v3748_v35 }
0x1a61   :  { %1927 = vrot.lane.b32.xlu2 %v1923_v19, %s3241_s17 }
0x1a66   :  { %v1920_v33 = vpop.permute.xlu1 %1919 }
0x1a67   :  { %v1924_v46 = vmul.f32 %v1920_v33, %v1909_v42 }
0x1a69   :  { %1929 = vrot.lane.b32.xlu0 %v1924_v46, %s3241_s17 }
0x1a71   :  { %991 = vrot.lane.b32.xlu0 %v3579_v23, %s3242_s20 }
0x1a79   :  { %1071 = vrot.lane.b32.xlu0 %v3122_v50, %s3241_s17 }
0x1abb   :  { %v1928_v59 = vpop.permute.xlu2 %1927 }
0x1abc   :  { %v3762_v51 = vadd.f32 %v1928_v59, %v1913_v44 }
0x1abe   :  { %3123 = vtanh.f32 %v3762_v51 }
0x1abf   :  { %3125 = vpow2.f32 %v2729_v0 }
0x1ac0   :  { %3127 = vtanh.f32 %v1026_v6 }
0x1ac4   :  { %v3124_v4 = vpop.eup %3123 }
0x1ac5   :  { %1939 = vrot.lane.b32.xlu1 %v3124_v4, %s3241_s17  ;;  %v3126_v23 = vpop.eup %3125 }
0x1ac6   :  { %v1033_v54 = vadd.f32 1.0, %v3126_v23  ;;  %v3128_v34 = vpop.eup %3127 }
0x1ac8   :  { %3129 = vrcp.f32 %v1033_v54  ;;  %v1046_v63 = vand.u32 2147483648, %v1033_v54  ;;  %vm1040_vm11 = vweird.f32 %v1033_v54  ;;  %v1044_v21 = vand.u32 2147483647, %v1033_v54 }
0x1aca   :  { %v1047_v47 = vor.u32 1.1754944e-38, %v1046_v63  ;;  %vm1045_vm12 = vcmp.eq.f32.partialorder %v1044_v21, 8.507059e+37 }
0x1acd   :  { %993 = vrot.lane.b32.xlu1 %v3581_v25, %s3242_s20 }
0x1ace   :  { %v3130_v61 = vpop.eup %3129 }
0x1acf   :  { %v1036_v11 = vmul.f32 %v3130_v61, %v1033_v54  ;;  %vm1041_vm10 = vweird.f32 %v3130_v61 }
0x1ad0   :  { %vm1042_vm0 = vmor %vm1040_vm11, %vm1041_vm10 }
0x1ad1   :  { %v1037_v53 = vsub.f32 1.0, %v1036_v11 }
0x1ad3   :  { %v1038_v41 = vmul.f32 %v3130_v61, %v1037_v53 }
0x1ad5   :  { %1073 = vrot.lane.b32.xlu1 %v3128_v34, %s3241_s17  ;;  %v1039_v25 = vadd.f32 %v3130_v61, %v1038_v41 }
0x1ad7   :  { %v1043_v36 = vsel %vm1042_vm0, %v3130_v61, %v1039_v25 }
0x1ad8   :  { %v3776_v24 = vsel %vm1045_vm12, %v1047_v47, %v1043_v36 }
0x1adb   :  { %v1930_v39 = vpop.permute.xlu0 %1929 }
0x1adc   :  { %v3771_v13 = vadd.f32 %v1930_v39, %v1914_v62  ;;  %v1067_v62 = vmul.f32 %v3776_v24, %v3556_v9 }
0x1ade   :  { %3131 = vtanh.f32 %v3771_v13 }
0x1adf   :  { %3133 = vpow2.f32 %v2730_v22 }
0x1ae3   :  { %v992_v15 = vpop.permute.xlu0 %991 }
0x1ae4   :  { %v3132_v16 = vpop.eup %3131  ;;  %998 = vst.msk [vmem:[#allocation2 + $0x30] sm:$0xf] %vm313_vm7, %v992_v15 }
0x1ae5   :  { %1941 = vrot.lane.b32.xlu2 %v3132_v16, %s3241_s17  ;;  %v3134_v37 = vpop.eup %3133 }
0x1ae6   :  { %v1034_v38 = vadd.f32 1.0, %v3134_v37 }
0x1ae8   :  { %3135 = vrcp.f32 %v1034_v38  ;;  %v1061_v23 = vand.u32 2147483648, %v1034_v38  ;;  %vm1055_vm14 = vweird.f32 %v1034_v38  ;;  %v1059_v54 = vand.u32 2147483647, %v1034_v38 }
0x1aea   :  { %v1062_v11 = vor.u32 1.1754944e-38, %v1061_v23  ;;  %vm1060_vm1 = vcmp.eq.f32.partialorder %v1059_v54, 8.507059e+37 }
0x1aeb   :  { %v1072_v56 = vpop.permute.xlu0 %1071 }
0x1aec   :  { %v1077_v26 = vmul.f32 %v1072_v56, %v3776_v24 }
0x1aee   :  { %1081 = vrot.lane.b32.xlu1 %v1077_v26, %s3241_s17  ;;  %v3136_v33 = vpop.eup %3135 }
0x1aef   :  { %v1051_v3 = vmul.f32 %v3136_v33, %v1034_v38  ;;  %vm1056_vm13 = vweird.f32 %v3136_v33 }
0x1af0   :  { %vm1057_vm15 = vmor %vm1055_vm14, %vm1056_vm13 }
0x1af1   :  { %v1052_v55 = vsub.f32 1.0, %v1051_v3 }
0x1af3   :  { %v1053_v50 = vmul.f32 %v3136_v33, %v1052_v55 }
0x1af5   :  { %v1054_v2 = vadd.f32 %v3136_v33, %v1053_v50 }
0x1af7   :  { %v1058_v34 = vsel %vm1057_vm15, %v3136_v33, %v1054_v2 }
0x1af8   :  { %v3796_v39 = vsel %vm1060_vm1, %v1062_v11, %v1058_v34 }
0x1af9   :  { %v1068_v22 = vmul.f32 %v3796_v39, %v3569_v17 }
0x1b37   :  { %v1940_v7 = vpop.permute.xlu1 %1939 }
0x1b38   :  { %v1945_v58 = vmul.f32 %v1940_v7, %v3748_v35 }
0x1b3a   :  { %v3781_v5 = vpack.c.bf16 %v1945_v58, %v1945_v58 }
0x1b3c   :  { %v1961_v32 = vunpack.c.l.b16 %v3781_v5 }
0x1b3f   :  { %v994_v28 = vpop.permute.xlu1 %993  ;;  %v1942_v57 = vpop.permute.xlu2 %1941 }
0x1b40   :  { %999 = vst.msk [vmem:[#allocation2 + $0x34] sm:$0xf] %vm313_vm7, %v994_v28  ;;  %v1946_v29 = vmul.f32 %v1942_v57, %v1909_v42 }
0x1b42   :  { %v3784_v8 = vpack.c.bf16 %v1946_v29, %v1946_v29 }
0x1b44   :  { %v1962_v19 = vunpack.c.l.b16 %v3784_v8 }
0x1b46   :  { %v1963_v20 = vpack.c.b16 %v1962_v19, %v1961_v32 }
0x1b47   :  { %v2893_v14 = vld [vmem:[#allocation2 + $0x30] sm:$0xff]  ;;  %v1074_v44 = vpop.permute.xlu1 %1073 }
0x1b48   :  { %1964 = vrot.lane.b32.xlu2 %v1963_v20, %s3242_s20  ;;  %2777 = vmatmul.msk.bf16.gmra.mxu3 %vm209_vm9, %v2893_v14  ;;  %v1078_v41 = vmul.f32 %v1074_v44, %v3796_v39 }
0x1b60   :  { %v1082_v61 = vpop.permute.xlu1 %1081 }
0x1b61   :  { %v1087_v53 = vadd.f32 %v1082_v61, %v1067_v62 }
0x1ba2   :  { %v1965_v35 = vpop.permute.xlu2 %1964 }
0x1ba3   :  { %2804 = vmatmul.msk.bf16.vlgmr.msra.gmra.mxu1 %vm209_vm9, %v1965_v35 }
0x1bcb   :  { %v1257_v42 = vpop.f32.mrf.mxu3 }
0x1bcc   :  { %v1258_v46 = vadd.f32 %v3742_v45, %v1257_v42 }
0x1bd3   :  { %v1259_v59 = vpop.f32.mrf.mxu3 }
0x1bd4   :  { %v1260_v0 = vadd.f32 %v3742_v45, %v1259_v59 }
0x1c20   :  { %v1978_v10 = vpop.f32.mrf.mxu1 }
0x1c21   :  { %v1983_v52 = vadd.f32 %v1978_v10, %v1258_v46 }
0x1c23   :  { %3137 = vtanh.f32 %v1983_v52  ;;  %v2805_v25 = vmul.f32 -1.442695, %v1983_v52 }
0x1c28   :  { %v1980_v4 = vpop.f32.mrf.mxu1 }
0x1c29   :  { %v3138_v40 = vpop.eup %3137  ;;  %v1984_v6 = vadd.f32 %v1980_v4, %v1260_v0 }
0x1c2a   :  { %2029 = vrot.lane.b32.xlu2 %v3138_v40, %s3241_s17 }
0x1c2b   :  { %3139 = vtanh.f32 %v1984_v6  ;;  %v2806_v56 = vmul.f32 -1.442695, %v1984_v6 }
0x1c2c   :  { %3141 = vtanh.f32 %v1087_v53 }
0x1c2d   :  { %3143 = vpow2.f32 %v2805_v25 }
0x1c31   :  { %v3140_v15 = vpop.eup %3139 }
0x1c32   :  { %1083 = vrot.lane.b32.xlu2 %v1078_v41, %s3241_s17  ;;  %2031 = vrot.lane.b32.xlu0 %v3140_v15, %s3241_s17  ;;  %v3142_v16 = vpop.eup %3141 }
0x1c33   :  { %v3144_v63 = vpop.eup %3143 }
0x1c34   :  { %v1991_v21 = vadd.f32 1.0, %v3144_v63 }
0x1c36   :  { %3145 = vrcp.f32 %v1991_v21  ;;  %v2004_v58 = vand.u32 2147483648, %v1991_v21  ;;  %vm1998_vm3 = vweird.f32 %v1991_v21  ;;  %v2002_v28 = vand.u32 2147483647, %v1991_v21 }
0x1c37   :  { %3147 = vpow2.f32 %v2806_v56 }
0x1c38   :  { %v2005_v32 = vor.u32 1.1754944e-38, %v2004_v58  ;;  %vm2003_vm5 = vcmp.eq.f32.partialorder %v2002_v28, 8.507059e+37 }
0x1c3a   :  { %1093 = vrot.lane.b32.xlu2 %v3142_v16, %s3241_s17 }
0x1c3c   :  { %v3146_v9 = vpop.eup %3145 }
0x1c3d   :  { %v1994_v36 = vmul.f32 %v3146_v9, %v1991_v21  ;;  %vm1999_vm2 = vweird.f32 %v3146_v9  ;;  %v3148_v57 = vpop.eup %3147 }
0x1c3e   :  { %vm2000_vm4 = vmor %vm1998_vm3, %vm1999_vm2  ;;  %v1992_v19 = vadd.f32 1.0, %v3148_v57 }
0x1c3f   :  { %v1995_v47 = vsub.f32 1.0, %v1994_v36 }
0x1c40   :  { %3149 = vrcp.f32 %v1992_v19  ;;  %v2019_v59 = vand.u32 2147483648, %v1992_v19  ;;  %vm2013_vm8 = vweird.f32 %v1992_v19  ;;  %v2017_v17 = vand.u32 2147483647, %v1992_v19 }
0x1c41   :  { %v1996_v26 = vmul.f32 %v3146_v9, %v1995_v47 }
0x1c42   :  { %v2020_v2 = vor.u32 1.1754944e-38, %v2019_v59  ;;  %vm2018_vm11 = vcmp.eq.f32.partialorder %v2017_v17, 8.507059e+37 }
0x1c43   :  { %v1997_v7 = vadd.f32 %v3146_v9, %v1996_v26 }
0x1c45   :  { %v2001_v29 = vsel %vm2000_vm4, %v3146_v9, %v1997_v7 }
0x1c46   :  { %v2006_v14 = vsel %vm2003_vm5, %v2005_v32, %v2001_v29  ;;  %v3150_v33 = vpop.eup %3149 }
0x1c47   :  { %v2009_v42 = vmul.f32 %v3150_v33, %v1992_v19  ;;  %vm2014_vm6 = vweird.f32 %v3150_v33 }
0x1c48   :  { %vm2015_vm10 = vmor %vm2013_vm8, %vm2014_vm6 }
0x1c49   :  { %v2010_v55 = vsub.f32 1.0, %v2009_v42 }
0x1c4b   :  { %v2011_v52 = vmul.f32 %v3150_v33, %v2010_v55 }
0x1c4d   :  { %v2012_v44 = vadd.f32 %v3150_v33, %v2011_v52 }
0x1c4f   :  { %v2016_v0 = vsel %vm2015_vm10, %v3150_v33, %v2012_v44 }
0x1c50   :  { %v2021_v40 = vsel %vm2018_vm11, %v2020_v2, %v2016_v0 }
0x1c51   :  { %v2026_v41 = vmul.f32 %v2021_v40, %v3771_v13 }
0x1c84   :  { %v2030_v20 = vpop.permute.xlu2 %2029 }
0x1c85   :  { %v2035_v35 = vmul.f32 %v2030_v20, %v2006_v14 }
0x1c87   :  { %2039 = vrot.lane.b32.xlu0 %v2035_v35, %s3241_s17 }
0x1c8c   :  { %v1084_v37 = vpop.permute.xlu2 %1083 }
0x1c8d   :  { %v1088_v38 = vadd.f32 %v1084_v37, %v1068_v22 }
0x1c8f   :  { %3151 = vtanh.f32 %v1088_v38 }
0x1c94   :  { %v1094_v46 = vpop.permute.xlu2 %1093 }
0x1c95   :  { %v3152_v3 = vpop.eup %3151  ;;  %v1099_v10 = vmul.f32 %v1094_v46, %v3776_v24  ;;  %v2025_v24 = vmul.f32 %v2006_v14, %v3762_v51 }
0x1c96   :  { %1095 = vrot.lane.b32.xlu0 %v3152_v3, %s3241_s17 }
0x1c97   :  { %v1101_v50 = vpack.c.bf16 %v1099_v10, %v1099_v10 }
0x1c9e   :  { %1105 = vrot.lane.b32.xlu0 %v1101_v50, %s3242_s20 }
0x1ca4   :  { %v2032_v4 = vpop.permute.xlu0 %2031 }
0x1ca5   :  { %v2036_v23 = vmul.f32 %v2032_v4, %v2021_v40 }
0x1ca7   :  { %2041 = vrot.lane.b32.xlu1 %v2036_v23, %s3241_s17 }
0x1cf9   :  { %v2040_v6 = vpop.permute.xlu0 %2039 }
0x1cfa   :  { %v3810_v54 = vadd.f32 %v2040_v6, %v2025_v24 }
0x1cfc   :  { %3153 = vtanh.f32 %v3810_v54 }
0x1d02   :  { %v3154_v34 = vpop.eup %3153 }
0x1d03   :  { %2051 = vrot.lane.b32.xlu1 %v3154_v34, %s3241_s17 }
0x1d08   :  { %v1096_v61 = vpop.permute.xlu0 %1095 }
0x1d09   :  { %v1100_v11 = vmul.f32 %v1096_v61, %v3796_v39 }
0x1d0b   :  { %v1102_v62 = vpack.c.bf16 %v1100_v11, %v1100_v11 }
0x1d0d   :  { %1107 = vrot.lane.b32.xlu1 %v1102_v62, %s3242_s20 }
0x1d10   :  { %v1106_v53 = vpop.permute.xlu0 %1105 }
0x1d11   :  { %1112 = vst.msk [vmem:[#allocation2 + $0x38] sm:$0xf] %vm313_vm7, %v1106_v53 }
0x1d19   :  { %v2042_v51 = vpop.permute.xlu1 %2041 }
0x1d1a   :  { %v3818_v15 = vadd.f32 %v2042_v51, %v2026_v41 }
0x1d1c   :  { %3155 = vtanh.f32 %v3818_v15 }
0x1d22   :  { %v3156_v16 = vpop.eup %3155 }
0x1d23   :  { %2053 = vrot.lane.b32.xlu2 %v3156_v16, %s3241_s17 }
0x1d75   :  { %v2052_v25 = vpop.permute.xlu1 %2051 }
0x1d76   :  { %v2057_v63 = vmul.f32 %v2052_v25, %v2006_v14 }
0x1d78   :  { %v3822_v39 = vpack.c.bf16 %v2057_v63, %v2057_v63 }
0x1d7a   :  { %v2073_v13 = vunpack.c.l.b16 %v3822_v39 }
0x1d7d   :  { %v2054_v21 = vpop.permute.xlu2 %2053 }
0x1d7e   :  { %v2058_v9 = vmul.f32 %v2054_v21, %v2021_v40 }
0x1d7f   :  { %v1108_v36 = vpop.permute.xlu1 %1107 }
0x1d80   :  { %v3824_v47 = vpack.c.bf16 %v2058_v9, %v2058_v9  ;;  %1113 = vst.msk [vmem:[#allocation2 + $0x3c] sm:$0xf] %vm313_vm7, %v1108_v36 }
0x1d82   :  { %v2074_v56 = vunpack.c.l.b16 %v3824_v47 }
0x1d84   :  { %v2075_v26 = vpack.c.b16 %v2074_v56, %v2073_v13 }
0x1d86   :  { %2076 = vrot.lane.b32.xlu2 %v2075_v26, %s3242_s20 }
0x1d87   :  { %v2894_v7 = vld [vmem:[#allocation2 + $0x38] sm:$0xff] }
0x1d88   :  { %2778 = vmatmul.msk.bf16.gmra.mxu3 %vm209_vm9, %v2894_v7 }
0x1de0   :  { %v2077_v58 = vpop.permute.xlu2 %2076 }
0x1de1   :  { %2807 = vmatmul.msk.bf16.vlgmr.msra.gmra.mxu2 %vm209_vm9, %v2077_v58 }
0x1e0b   :  { %v1262_v28 = vpop.f32.mrf.mxu3 }
0x1e0c   :  { %v1263_v57 = vadd.f32 %v3742_v45, %v1262_v28 }
0x1e13   :  { %v1264_v19 = vpop.f32.mrf.mxu3 }
0x1e14   :  { %v1265_v20 = vadd.f32 %v3742_v45, %v1264_v19 }
0x1e64   :  { %v2090_v29 = vpop.f32.mrf.mxu2 }
0x1e65   :  { %v2095_v32 = vadd.f32 %v2090_v29, %v1263_v57 }
0x1e67   :  { %3157 = vtanh.f32 %v2095_v32  ;;  %v2808_v38 = vmul.f32 -1.442695, %v2095_v32 }
0x1e6c   :  { %v2092_v14 = vpop.f32.mrf.mxu2 }
0x1e6d   :  { %v3158_v35 = vpop.eup %3157  ;;  %v2096_v22 = vadd.f32 %v2092_v14, %v1265_v20 }
0x1e6e   :  { %2141 = vrot.lane.b32.xlu0 %v3158_v35, %s3241_s17 }
0x1e6f   :  { %3159 = vtanh.f32 %v2096_v22  ;;  %v2809_v33 = vmul.f32 -1.442695, %v2096_v22 }
0x1e70   :  { %3161 = vpow2.f32 %v2808_v38 }
0x1e71   :  { %3163 = vpow2.f32 %v2809_v33 }
0x1e75   :  { %v3160_v37 = vpop.eup %3159 }
0x1e76   :  { %2143 = vrot.lane.b32.xlu1 %v3160_v37, %s3241_s17  ;;  %v3162_v42 = vpop.eup %3161 }
0x1e77   :  { %v2103_v3 = vadd.f32 1.0, %v3162_v42  ;;  %v3164_v46 = vpop.eup %3163 }
0x1e78   :  { %v2104_v55 = vadd.f32 1.0, %v3164_v46 }
0x1e79   :  { %3165 = vrcp.f32 %v2103_v3  ;;  %v2116_v2 = vand.u32 2147483648, %v2103_v3  ;;  %vm2110_vm12 = vweird.f32 %v2103_v3  ;;  %v2114_v4 = vand.u32 2147483647, %v2103_v3 }
0x1e7a   :  { %3167 = vrcp.f32 %v2104_v55  ;;  %v2131_v62 = vand.u32 2147483648, %v2104_v55  ;;  %vm2125_vm1 = vweird.f32 %v2104_v55  ;;  %v2129_v53 = vand.u32 2147483647, %v2104_v55 }
0x1e7b   :  { %v2117_v24 = vor.u32 1.1754944e-38, %v2116_v2  ;;  %vm2115_vm14 = vcmp.eq.f32.partialorder %v2114_v4, 8.507059e+37 }
0x1e7c   :  { %v2132_v51 = vor.u32 1.1754944e-38, %v2131_v62  ;;  %vm2130_vm3 = vcmp.eq.f32.partialorder %v2129_v53, 8.507059e+37 }
0x1e7f   :  { %v3166_v10 = vpop.eup %3165 }
0x1e80   :  { %v2106_v45 = vmul.f32 %v3166_v10, %v2103_v3  ;;  %v3168_v50 = vpop.eup %3167  ;;  %vm2111_vm0 = vweird.f32 %v3166_v10 }
0x1e81   :  { %v2121_v59 = vmul.f32 %v3168_v50, %v2104_v55  ;;  %vm2112_vm13 = vmor %vm2110_vm12, %vm2111_vm0  ;;  %vm2126_vm15 = vweird.f32 %v3168_v50 }
0x1e82   :  { %v2107_v52 = vsub.f32 1.0, %v2106_v45  ;;  %vm2127_vm2 = vmor %vm2125_vm1, %vm2126_vm15 }
0x1e83   :  { %v2122_v0 = vsub.f32 1.0, %v2121_v59 }
0x1e84   :  { %v2108_v44 = vmul.f32 %v3166_v10, %v2107_v52 }
0x1e85   :  { %v2123_v23 = vmul.f32 %v3168_v50, %v2122_v0 }
0x1e86   :  { %v2109_v17 = vadd.f32 %v3166_v10, %v2108_v44 }
0x1e87   :  { %v2124_v11 = vadd.f32 %v3168_v50, %v2123_v23 }
0x1e88   :  { %v2113_v40 = vsel %vm2112_vm13, %v3166_v10, %v2109_v17  ;;  %v3905_v10 = vld [vmem:[%s4040_s8] ss:$0 sm:$0xff] }
0x1e89   :  { %v2118_v34 = vsel %vm2115_vm14, %v2117_v24, %v2113_v40  ;;  %v2128_v41 = vsel %vm2127_vm2, %v3168_v50, %v2124_v11 }
0x1e8a   :  { %v2133_v25 = vsel %vm2130_vm3, %v2132_v51, %v2128_v41  ;;  %v2137_v21 = vmul.f32 %v2118_v34, %v3810_v54 }
0x1ee0   :  { %v2142_v6 = vpop.permute.xlu0 %2141 }
0x1ee1   :  { %v2147_v61 = vmul.f32 %v2142_v6, %v2118_v34 }
0x1ee3   :  { %2151 = vrot.lane.b32.xlu2 %v2147_v61, %s3241_s17 }
0x1ee8   :  { %v2144_v16 = vpop.permute.xlu1 %2143 }
0x1ee9   :  { %v2148_v63 = vmul.f32 %v2144_v16, %v2133_v25 }
0x1eeb   :  { %2153 = vrot.lane.b32.xlu0 %v2148_v63, %s3241_s17 }
0x1ef3   :  { %1951 = vrot.lane.b32.xlu0 %v3781_v5, %s3242_s20 }
0x1efb   :  { %1617 = vrot.lane.b32.xlu0 %v3668_v49, %s3242_s20 }
0x1f03   :  { %1391 = vrot.lane.b32.xlu0 %v3586_v30, %s3242_s20  ;;  %v2138_v30 = vmul.f32 %v2133_v25, %v3818_v15 }
0x1f0b   :  { %1729 = vrot.lane.b32.xlu0 %v3701_v60, %s3242_s20 }
0x1f13   :  { %1503 = vrot.lane.b32.xlu0 %v3632_v48, %s3242_s20 }
0x1f1b   :  { %1841 = vrot.lane.b32.xlu0 %v3732_v27, %s3242_s20 }
0x1f3d   :  { %v2152_v9 = vpop.permute.xlu2 %2151 }
0x1f3e   :  { %v2157_v36 = vadd.f32 %v2152_v9, %v2137_v21 }
0x1f40   :  { %3169 = vtanh.f32 %v2157_v36 }
0x1f46   :  { %v3170_v5 = vpop.eup %3169 }
0x1f47   :  { %2163 = vrot.lane.b32.xlu1 %v3170_v5, %s3241_s17 }
0x1f4f   :  { %1953 = vrot.lane.b32.xlu1 %v3784_v8, %s3242_s20  ;;  %v2906_v8 = vld [vmem:[%s4039_s7 + $0x8] sm:$0xff] }
0x1f50   :  { %2289 = vmatpush.bf16.msrb.mxu0 %v2906_v8  ;;  %2908 = vmatpush.bf16.msrb.mxu2 %v2906_v8 }
0x1f51   :  { %2907 = vmatpush.bf16.msrb.mxu1 %v2906_v8 }
0x1f57   :  { %2063 = vrot.lane.b32.xlu1 %v3822_v39, %s3242_s20 }
0x1f5d   :  { %v2154_v48 = vpop.permute.xlu0 %2153 }
0x1f5e   :  { %v2158_v49 = vadd.f32 %v2154_v48, %v2138_v30 }
0x1f5f   :  { %1393 = vrot.lane.b32.xlu1 %v3590_v31, %s3242_s20 }
0x1f60   :  { %3171 = vtanh.f32 %v2158_v49 }
0x1f65   :  { %v1952_v60 = vpop.permute.xlu0 %1951 }
0x1f66   :  { %v3172_v27 = vpop.eup %3171  ;;  %1957 = vst.msk [vmem:[#allocation2 + $0x28] sm:$0xf] %vm313_vm7, %v1952_v60 }
0x1f67   :  { %2165 = vrot.lane.b32.xlu2 %v3172_v27, %s3241_s17 }
0x1f6d   :  { %v1618_v54 = vpop.permute.xlu0 %1617 }
0x1f6e   :  { %1622 = vst.msk [vmem:[#allocation2 + $0x14] sm:$0xf] %vm313_vm7, %v1618_v54 }
0x1f6f   :  { %1615 = vrot.lane.b32.xlu2 %v3665_v18, %s3242_s20  ;;  %v2905_v18 = vld [vmem:[%s4039_s7] sm:$0xff] }
0x1f70   :  { %2910 = vmatpush.bf16.msrb.mxu2 %v2905_v18  ;;  %2909 = vmatpush.bf16.msrb.mxu1 %v2905_v18 }
0x1f71   :  { %2290 = vmatpush.bf16.msrb.mxu0 %v2905_v18 }
0x1f75   :  { %v1392_v31 = vpop.permute.xlu0 %1391 }
0x1f76   :  { %1397 = vst.msk [vmem:[#allocation2] sm:$0xf] %vm313_vm7, %v1392_v31 }
0x1f77   :  { %2065 = vrot.lane.b32.xlu2 %v3824_v47, %s3242_s20 }
0x1f7d   :  { %v1730_v15 = vpop.permute.xlu0 %1729 }
0x1f7e   :  { %1734 = vst.msk [vmem:[#allocation2 + $0x1c] sm:$0xf] %vm313_vm7, %v1730_v15 }
0x1f7f   :  { %1727 = vrot.lane.b32.xlu2 %v3698_v12, %s3242_s20 }
0x1f85   :  { %v1504_v39 = vpop.permute.xlu0 %1503 }
0x1f86   :  { %1509 = vst.msk [vmem:[#allocation2 + $0x8] sm:$0xf] %vm313_vm7, %v1504_v39 }
0x1f8d   :  { %v1842_v13 = vpop.permute.xlu0 %1841 }
0x1f8e   :  { %1846 = vst.msk [vmem:[#allocation2 + $0x24] sm:$0xf] %vm313_vm7, %v1842_v13 }
0x1fb9   :  { %v2164_v47 = vpop.permute.xlu1 %2163 }
0x1fba   :  { %v2169_v56 = vmul.f32 %v2164_v47, %v2118_v34 }
0x1fbc   :  { %v2171_v26 = vpack.c.bf16 %v2169_v56, %v2169_v56 }
0x1fbe   :  { %2175 = vrot.lane.b32.xlu1 %v2171_v26, %s3242_s20 }
0x1fc1   :  { %v1954_v7 = vpop.permute.xlu1 %1953  ;;  %v2166_v12 = vpop.permute.xlu2 %2165 }
0x1fc2   :  { %1958 = vst.msk [vmem:[#allocation2 + $0x2c] sm:$0xf] %vm313_vm7, %v1954_v7  ;;  %v2170_v58 = vmul.f32 %v2166_v12, %v2133_v25 }
0x1fc4   :  { %v2172_v28 = vpack.c.bf16 %v2170_v58, %v2170_v58 }
0x1fc6   :  { %1505 = vrot.lane.b32.xlu1 %v3635_v1, %s3242_s20  ;;  %2177 = vrot.lane.b32.xlu2 %v2172_v28, %s3242_s20 }
0x1fc9   :  { %v2064_v57 = vpop.permute.xlu1 %2063  ;;  %v1616_v29 = vpop.permute.xlu2 %1615  ;;  %v2902_v32 = vld [vmem:[#allocation2 + $0x28] sm:$0xff] }
0x1fca   :  { %2069 = vst.msk [vmem:[#allocation2 + $0x30] sm:$0xf] %vm313_vm7, %v2064_v57  ;;  %2855 = vmatmul.msk.bf16.vlgmr.msrb.gmra.mxu2 %vm209_vm9, %v2902_v32 }
0x1fcb   :  { %1621 = vst.msk [vmem:[#allocation2 + $0x10] sm:$0xf] %vm313_vm7, %v1616_v29 }
0x1fce   :  { %1839 = vrot.lane.b32.xlu2 %v3729_v43, %s3242_s20 }
0x1fd1   :  { %v1394_v19 = vpop.permute.xlu1 %1393  ;;  %v2066_v20 = vpop.permute.xlu2 %2065 }
0x1fd2   :  { %1398 = vst.msk [vmem:[#allocation2 + $0x4] sm:$0xf] %vm313_vm7, %v1394_v19  ;;  %v2899_v14 = vld [vmem:[#allocation2 + $0x10] sm:$0xff] }
0x1fd3   :  { %2070 = vst.msk [vmem:[#allocation2 + $0x34] sm:$0xf] %vm313_vm7, %v2066_v20  ;;  %2852 = vmatmul.msk.bf16.vlgmr.msrb.gmra.mxu1 %vm209_vm9, %v2899_v14 }
0x1fd9   :  { %v1728_v1 = vpop.permute.xlu2 %1727  ;;  %v2897_v35 = vld [vmem:[#allocation2] sm:$0xff] }
0x1fda   :  { %1733 = vst.msk [vmem:[#allocation2 + $0x18] sm:$0xf] %vm313_vm7, %v1728_v1  ;;  %v2903_v22 = vld [vmem:[#allocation2 + $0x30] sm:$0xff]  ;;  %2850 = vmatmul.msk.bf16.vlgmr.msrb.gmra.mxu0 %vm209_vm9, %v2897_v35 }
0x1fdb   :  { %2856 = vmatmul.msk.bf16.gmra.mxu2 %vm209_vm9, %v2903_v22 }
0x1fe1   :  { %v2900_v37 = vld [vmem:[#allocation2 + $0x18] sm:$0xff] }
0x1fe3   :  { %2853 = vmatmul.msk.bf16.gmra.mxu1 %vm209_vm9, %v2900_v37 }
0x2020   :  { %v2178_v43 = vpop.permute.xlu2 %2177 }
0x2021   :  { %2182 = vst.msk [vmem:[#allocation2 + $0x3c] sm:$0xf] %vm313_vm7, %v2178_v43 }
0x2028   :  { %v1840_v38 = vpop.permute.xlu2 %1839 }
0x2029   :  { %1845 = vst.msk [vmem:[#allocation2 + $0x20] sm:$0xf] %vm313_vm7, %v1840_v38 }
0x2030   :  { %v2176_v33 = vpop.permute.xlu1 %2175  ;;  %v2901_v42 = vld [vmem:[#allocation2 + $0x20] sm:$0xff] }
0x2031   :  { %2181 = vst.msk [vmem:[#allocation2 + $0x38] sm:$0xf] %vm313_vm7, %v2176_v33  ;;  %2854 = vmatmul.msk.bf16.gmra.mxu1 %vm209_vm9, %v2901_v42 }
0x2038   :  { %v1506_v3 = vpop.permute.xlu1 %1505  ;;  %v2904_v46 = vld [vmem:[#allocation2 + $0x38] sm:$0xff] }
0x2039   :  { %1510 = vst.msk [vmem:[#allocation2 + $0xc] sm:$0xf] %vm313_vm7, %v1506_v3  ;;  %2857 = vmatmul.msk.bf16.gmra.mxu2 %vm209_vm9, %v2904_v46 }
0x2040   :  { %v2898_v55 = vld [vmem:[#allocation2 + $0x8] sm:$0xff] }
0x2041   :  { %2851 = vmatmul.msk.bf16.gmra.mxu0 %vm209_vm9, %v2898_v55 }
0x204d   :  { %v2317_v45 = vpop.f32.mrf.mxu2 }
0x204e   :  { %v2318_v52 = vadd.f32 %v3905_v10, %v2317_v45 }
0x2050   :  { %v2868_v50 = vmul.f32 -1.442695, %v2318_v52  ;;  %v2302_v44 = vpop.f32.mrf.mxu1 }
0x2051   :  { %v2303_v59 = vadd.f32 %v3905_v10, %v2302_v44 }
0x2052   :  { %3173 = vpow2.f32 %v2868_v50 }
0x2053   :  { %v2862_v17 = vmul.f32 -1.442695, %v2303_v59 }
0x2055   :  { %3175 = vpow2.f32 %v2862_v17  ;;  %v2319_v0 = vpop.f32.mrf.mxu2 }
0x2056   :  { %v2320_v2 = vadd.f32 %v3905_v10, %v2319_v0 }
0x2057   :  { %v2292_v4 = vpop.f32.mrf.mxu0 }
0x2058   :  { %v3174_v40 = vpop.eup %3173  ;;  %v2869_v23 = vmul.f32 -1.442695, %v2320_v2  ;;  %v2293_v24 = vadd.f32 %v3905_v10, %v2292_v4  ;;  %v2304_v6 = vpop.f32.mrf.mxu1 }
0x2059   :  { %v2390_v34 = vadd.f32 1.0, %v3174_v40  ;;  %v2305_v61 = vadd.f32 %v3905_v10, %v2304_v6 }
0x205a   :  { %3177 = vpow2.f32 %v2869_v23  ;;  %v2858_v11 = vmul.f32 -1.442695, %v2293_v24 }
0x205b   :  { %v3176_v62 = vpop.eup %3175  ;;  %3179 = vrcp.f32 %v2390_v34  ;;  %v2863_v41 = vmul.f32 -1.442695, %v2305_v61  ;;  %v2557_v27 = vand.u32 2147483648, %v2390_v34  ;;  %vm2551_vm9 = vweird.f32 %v2390_v34 }
0x205c   :  { %v2384_v53 = vadd.f32 1.0, %v3176_v62  ;;  %3181 = vpow2.f32 %v2858_v11  ;;  %v2555_v56 = vand.u32 2147483647, %v2390_v34 }
0x205d   :  { %v2558_v26 = vor.u32 1.1754944e-38, %v2557_v27 }
0x205e   :  { %3183 = vrcp.f32 %v2384_v53  ;;  %v2322_v51 = vpop.f32.mrf.mxu2  ;;  %v2465_v28 = vand.u32 2147483647, %v2384_v53  ;;  %v2467_v57 = vand.u32 2147483648, %v2384_v53  ;;  %vm2556_vm6 = vcmp.eq.f32.partialorder %v2555_v56, 8.507059e+37 }
0x205f   :  { %3185 = vpow2.f32 %v2863_v41  ;;  %v2323_v16 = vadd.f32 %v3905_v10, %v2322_v51  ;;  %v2294_v25 = vpop.f32.mrf.mxu0  ;;  %vm2461_vm8 = vweird.f32 %v2384_v53 }
0x2060   :  { %v3178_v63 = vpop.eup %3177  ;;  %v2295_v21 = vadd.f32 %v3905_v10, %v2294_v25  ;;  %v2307_v9 = vpop.f32.mrf.mxu1  ;;  %vm2466_vm11 = vcmp.eq.f32.partialorder %v2465_v28, 8.507059e+37  ;;  %v2468_v42 = vor.u32 1.1754944e-38, %v2467_v57 }
0x2061   :  { %v3180_v36 = vpop.eup %3179  ;;  %v3914_v5 = vadd.f32 1.0, %v3178_v63  ;;  %v2870_v30 = vmul.f32 -1.442695, %v2323_v16  ;;  %v2308_v48 = vadd.f32 %v3905_v10, %v2307_v9 }
0x2062   :  { %v3182_v49 = vpop.eup %3181  ;;  %v2547_v60 = vmul.f32 %v3180_v36, %v2390_v34  ;;  %v2859_v54 = vmul.f32 -1.442695, %v2295_v21  ;;  %vm2552_vm7 = vweird.f32 %v3180_v36 }
0x2063   :  { %3187 = vrcp.f32 %v3914_v5  ;;  %v3918_v15 = vadd.f32 1.0, %v3182_v49  ;;  %v2864_v39 = vmul.f32 -1.442695, %v2308_v48  ;;  %vm2553_vm4 = vmor %vm2551_vm9, %vm2552_vm7  ;;  %v2570_v19 = vand.u32 2147483647, %v3914_v5 }
0x2064   :  { %v3184_v8 = vpop.eup %3183  ;;  %v2548_v31 = vsub.f32 1.0, %v2547_v60  ;;  %3189 = vpow2.f32 %v2870_v30  ;;  %v2572_v43 = vand.u32 2147483648, %v3914_v5  ;;  %vm2566_vm0 = vweird.f32 %v3914_v5 }
0x2065   :  { %v3186_v13 = vpop.eup %3185  ;;  %v2457_v18 = vmul.f32 %v3184_v8, %v2384_v53  ;;  %3191 = vrcp.f32 %v3918_v15  ;;  %vm2462_vm5 = vweird.f32 %v3184_v8  ;;  %vm3935_vm12 = vcmp.eq.f32.partialorder %v2570_v19, 8.507059e+37 }
0x2066   :  { %v2549_v47 = vmul.f32 %v3180_v36, %v2548_v31  ;;  %v3921_v12 = vadd.f32 1.0, %v3186_v13  ;;  %3193 = vpow2.f32 %v2859_v54  ;;  %v2324_v35 = vpop.f32.mrf.mxu2  ;;  %vm2463_vm10 = vmor %vm2461_vm8, %vm2462_vm5  ;;  %v2573_v2 = vor.u32 1.1754944e-38, %v2572_v43 }
0x2067   :  { %v2458_v7 = vsub.f32 1.0, %v2457_v18  ;;  %3195 = vpow2.f32 %v2864_v39  ;;  %v2325_v50 = vadd.f32 %v3905_v10, %v2324_v35  ;;  %vm2401_vm14 = vweird.f32 %v3918_v15 }
0x2068   :  { %v2550_v58 = vadd.f32 %v3180_v36, %v2549_v47  ;;  %3197 = vrcp.f32 %v3921_v12  ;;  %v2407_v24 = vand.u32 2147483648, %v3918_v15  ;;  %v2309_v61 = vpop.f32.mrf.mxu1  ;;  %v2405_v62 = vand.u32 2147483647, %v3918_v15 }
0x2069   :  { %v3188_v29 = vpop.eup %3187  ;;  %v2459_v32 = vmul.f32 %v3184_v8, %v2458_v7  ;;  %v2482_v51 = vand.u32 2147483648, %v3921_v12  ;;  %v2871_v16 = vmul.f32 -1.442695, %v2325_v50  ;;  %v2310_v21 = vadd.f32 %v3905_v10, %v2309_v61 }
0x206a   :  { %v3190_v20 = vpop.eup %3189  ;;  %v2554_v14 = vsel %vm2553_vm4, %v3180_v36, %v2550_v58  ;;  %v2562_v1 = vmul.f32 %v3188_v29, %v3914_v5  ;;  %vm2567_vm13 = vweird.f32 %v3188_v29  ;;  %v2408_v36 = vor.u32 1.1754944e-38, %v2407_v24 }
0x206b   :  { %v2559_v22 = vsel %vm2556_vm6, %v2558_v26, %v2554_v14  ;;  %v2460_v37 = vadd.f32 %v3184_v8, %v2459_v32  ;;  %v3928_v38 = vadd.f32 1.0, %v3190_v20  ;;  %v3192_v33 = vpop.eup %3191  ;;  %vm2568_vm15 = vmor %vm2566_vm0, %vm2567_vm13  ;;  %v2480_v30 = vand.u32 2147483647, %v3921_v12 }
0x206c   :  { %2646 = vst [vmem:[%s4041_s9 + $0x50] sm:$0xff] %v2559_v22  ;;  %v2563_v3 = vsub.f32 1.0, %v2562_v1  ;;  %v3194_v46 = vpop.eup %3193  ;;  %v2397_v52 = vmul.f32 %v3192_v33, %v3918_v15  ;;  %vm2402_vm1 = vweird.f32 %v3192_v33  ;;  %vm2406_vm9 = vcmp.eq.f32.partialorder %v2405_v62, 8.507059e+37 }
0x206d   :  { %v2464_v55 = vsel %vm2463_vm10, %v3184_v8, %v2460_v37  ;;  %v3196_v44 = vpop.eup %3195  ;;  %3199 = vrcp.f32 %v3928_v38  ;;  %v3946_v40 = vadd.f32 1.0, %v3194_v46  ;;  %vm2403_vm2 = vmor %vm2401_vm14, %vm2402_vm1  ;;  %vm2476_vm7 = vweird.f32 %v3921_v12 }
0x206e   :  { %v2469_v59 = vsel %vm2466_vm11, %v2468_v42, %v2464_v55  ;;  %v2564_v17 = vmul.f32 %v3188_v29, %v2563_v3  ;;  %v3198_v0 = vpop.eup %3197  ;;  %v2398_v4 = vsub.f32 1.0, %v2397_v52  ;;  %v3950_v34 = vadd.f32 1.0, %v3196_v44 }
0x206f   :  { %2640 = vst [vmem:[%s4041_s9 + $0x20] sm:$0xff] %v2469_v59  ;;  %v2472_v6 = vmul.f32 %v3198_v0, %v3921_v12  ;;  %3201 = vrcp.f32 %v3946_v40  ;;  %vm2477_vm3 = vweird.f32 %v3198_v0  ;;  %v2483_v54 = vor.u32 1.1754944e-38, %v2482_v51 }
0x2070   :  { %v2565_v23 = vadd.f32 %v3188_v29, %v2564_v17  ;;  %v2399_v11 = vmul.f32 %v3192_v33, %v2398_v4  ;;  %3203 = vrcp.f32 %v3950_v34  ;;  %v2585_v8 = vand.u32 2147483647, %v3928_v38  ;;  %vm2478_vm4 = vmor %vm2476_vm7, %vm2477_vm3 }
0x2071   :  { %v2473_v41 = vsub.f32 1.0, %v2472_v6  ;;  %v2587_v39 = vand.u32 2147483648, %v3928_v38  ;;  %3205 = vpow2.f32 %v2871_v16  ;;  %v2865_v13 = vmul.f32 -1.442695, %v2310_v21 }
0x2072   :  { %v2569_v53 = vsel %vm2568_vm15, %v3188_v29, %v2565_v23  ;;  %v2400_v63 = vadd.f32 %v3192_v33, %v2399_v11  ;;  %vm2481_vm5 = vcmp.eq.f32.partialorder %v2480_v30, 8.507059e+37  ;;  %vm2581_vm8 = vweird.f32 %v3928_v38 }
0x2073   :  { %v2574_v25 = vsel %vm3935_vm12, %v2573_v2, %v2569_v53  ;;  %v3200_v9 = vpop.eup %3199  ;;  %v2474_v5 = vmul.f32 %v3198_v0, %v2473_v41  ;;  %3207 = vpow2.f32 %v2865_v13  ;;  %vm3979_vm10 = vcmp.eq.f32.partialorder %v2585_v8, 8.507059e+37 }
0x2074   :  { %2647 = vst [vmem:[%s4041_s9 + $0x58] sm:$0xff] %v2574_v25  ;;  %v2404_v48 = vsel %vm2403_vm2, %v3192_v33, %v2400_v63  ;;  %v2577_v49 = vmul.f32 %v3200_v9, %v3928_v38  ;;  %vm2582_vm6 = vweird.f32 %v3200_v9  ;;  %v2588_v29 = vor.u32 1.1754944e-38, %v2587_v39 }
0x2075   :  { %v2409_v60 = vsel %vm2406_vm9, %v2408_v36, %v2404_v48  ;;  %v2475_v27 = vadd.f32 %v3198_v0, %v2474_v5  ;;  %v3202_v31 = vpop.eup %3201  ;;  %v2420_v32 = vand.u32 2147483647, %v3946_v40  ;;  %v2422_v19 = vand.u32 2147483648, %v3946_v40  ;;  %vm2583_vm11 = vmor %vm2581_vm8, %vm2582_vm6 }
0x2076   :  { %2636 = vst [vmem:[%s4041_s9] sm:$0xff] %v2409_v60  ;;  %v2578_v15 = vsub.f32 1.0, %v2577_v49  ;;  %v2412_v47 = vmul.f32 %v3202_v31, %v3946_v40  ;;  %v3204_v56 = vpop.eup %3203  ;;  %vm2416_vm0 = vweird.f32 %v3946_v40  ;;  %vm2417_vm12 = vweird.f32 %v3202_v31 }
0x2077   :  { %v2479_v18 = vsel %vm2478_vm4, %v3198_v0, %v2475_v27  ;;  %v2487_v28 = vmul.f32 %v3204_v56, %v3950_v34  ;;  %v3206_v1 = vpop.eup %3205  ;;  %vm2492_vm13 = vweird.f32 %v3204_v56  ;;  %v2495_v22 = vand.u32 2147483647, %v3950_v34  ;;  %vm2418_vm14 = vmor %vm2416_vm0, %vm2417_vm12 }
0x2078   :  { %v2484_v26 = vsel %vm2481_vm5, %v2483_v54, %v2479_v18  ;;  %v2579_v7 = vmul.f32 %v3200_v9, %v2578_v15  ;;  %v2413_v58 = vsub.f32 1.0, %v2412_v47  ;;  %v2497_v37 = vand.u32 2147483648, %v3950_v34 }
0x2079   :  { %2641 = vst [vmem:[%s4041_s9 + $0x28] sm:$0xff] %v2484_v26  ;;  %v2488_v14 = vsub.f32 1.0, %v2487_v28  ;;  %v2393_v42 = vadd.f32 1.0, %v3206_v1  ;;  %v3208_v3 = vpop.eup %3207  ;;  %vm2421_vm15 = vcmp.eq.f32.partialorder %v2420_v32, 8.507059e+37  ;;  %v2423_v46 = vor.u32 1.1754944e-38, %v2422_v19 }
0x207a   :  { %v2580_v57 = vadd.f32 %v3200_v9, %v2579_v7  ;;  %v2414_v20 = vmul.f32 %v3202_v31, %v2413_v58  ;;  %vm2491_vm1 = vweird.f32 %v3950_v34  ;;  %v2498_v50 = vor.u32 1.1754944e-38, %v2497_v37 }
0x207b   :  { %v2489_v33 = vmul.f32 %v3204_v56, %v2488_v14  ;;  %3209 = vrcp.f32 %v2393_v42  ;;  %vm2493_vm2 = vmor %vm2491_vm1, %vm2492_vm13  ;;  %v2387_v44 = vadd.f32 1.0, %v3208_v3  ;;  %vm2496_vm3 = vcmp.eq.f32.partialorder %v2495_v22, 8.507059e+37 }
0x207c   :  { %v2584_v35 = vsel %vm2583_vm11, %v3200_v9, %v2580_v57  ;;  %v2415_v38 = vadd.f32 %v3202_v31, %v2414_v20  ;;  %v2602_v23 = vand.u32 2147483648, %v2393_v42  ;;  %v2600_v34 = vand.u32 2147483647, %v2393_v42 }
0x207d   :  { %v2589_v43 = vsel %vm3979_vm10, %v2588_v29, %v2584_v35  ;;  %v2490_v45 = vadd.f32 %v3204_v56, %v2489_v33  ;;  %3211 = vrcp.f32 %v2387_v44  ;;  %vm2596_vm7 = vweird.f32 %v2393_v42 }
0x207e   :  { %2648 = vst [vmem:[%s4041_s9 + $0x60] sm:$0xff] %v2589_v43  ;;  %v2419_v55 = vsel %vm2418_vm14, %v3202_v31, %v2415_v38  ;;  %v2512_v62 = vand.u32 2147483648, %v2387_v44  ;;  %v2603_v53 = vor.u32 1.1754944e-38, %v2602_v23  ;;  %v2510_v51 = vand.u32 2147483647, %v2387_v44 }
0x207f   :  { %v2424_v52 = vsel %vm2421_vm15, %v2423_v46, %v2419_v55  ;;  %v2494_v59 = vsel %vm2493_vm2, %v3204_v56, %v2490_v45  ;;  %vm2601_vm6 = vcmp.eq.f32.partialorder %v2600_v34, 8.507059e+37  ;;  %vm2506_vm8 = vweird.f32 %v2387_v44 }
0x2080   :  { %2637 = vst [vmem:[%s4041_s9 + $0x8] sm:$0xff] %v2424_v52  ;;  %v2499_v17 = vsel %vm2496_vm3, %v2498_v50, %v2494_v59  ;;  %v2513_v21 = vor.u32 1.1754944e-38, %v2512_v62  ;;  %vm2511_vm11 = vcmp.eq.f32.partialorder %v2510_v51, 8.507059e+37 }
0x2081   :  { %2642 = vst [vmem:[%s4041_s9 + $0x30] sm:$0xff] %v2499_v17  ;;  %v3210_v0 = vpop.eup %3209 }
0x2082   :  { %v2592_v2 = vmul.f32 %v3210_v0, %v2393_v42  ;;  %vm2597_vm9 = vweird.f32 %v3210_v0 }
0x2083   :  { %v3212_v4 = vpop.eup %3211  ;;  %vm2598_vm4 = vmor %vm2596_vm7, %vm2597_vm9 }
0x2084   :  { %v2593_v40 = vsub.f32 1.0, %v2592_v2  ;;  %v2502_v24 = vmul.f32 %v3212_v4, %v2387_v44  ;;  %vm2507_vm5 = vweird.f32 %v3212_v4 }
0x2085   :  { %vm2508_vm10 = vmor %vm2506_vm8, %vm2507_vm5 }
0x2086   :  { %v2594_v6 = vmul.f32 %v3210_v0, %v2593_v40  ;;  %v2503_v61 = vsub.f32 1.0, %v2502_v24 }
0x2088   :  { %v2595_v11 = vadd.f32 %v3210_v0, %v2594_v6  ;;  %v2504_v41 = vmul.f32 %v3212_v4, %v2503_v61 }
0x208a   :  { %v2599_v16 = vsel %vm2598_vm4, %v3210_v0, %v2595_v11  ;;  %v2505_v63 = vadd.f32 %v3212_v4, %v2504_v41 }
0x208b   :  { %v2604_v25 = vsel %vm2601_vm6, %v2603_v53, %v2599_v16 }
0x208c   :  { %2649 = vst [vmem:[%s4041_s9 + $0x68] sm:$0xff] %v2604_v25  ;;  %v2509_v9 = vsel %vm2508_vm10, %v3212_v4, %v2505_v63 }
0x208d   :  { %v2514_v36 = vsel %vm2511_vm11, %v2513_v21, %v2509_v9 }
0x208e   :  { %2643 = vst [vmem:[%s4041_s9 + $0x38] sm:$0xff] %v2514_v36 }
0x20ae   :  { %v2312_v5 = vpop.f32.mrf.mxu1 }
0x20af   :  { %v2313_v30 = vadd.f32 %v3905_v10, %v2312_v5 }
0x20b1   :  { %v2866_v48 = vmul.f32 -1.442695, %v2313_v30 }
0x20b3   :  { %3213 = vpow2.f32 %v2866_v48 }
0x20b6   :  { %v2314_v49 = vpop.f32.mrf.mxu1 }
0x20b7   :  { %v2315_v60 = vadd.f32 %v3905_v10, %v2314_v49 }
0x20b9   :  { %v3214_v27 = vpop.eup %3213  ;;  %v2867_v54 = vmul.f32 -1.442695, %v2315_v60 }
0x20ba   :  { %v2388_v8 = vadd.f32 1.0, %v3214_v27 }
0x20bb   :  { %3215 = vpow2.f32 %v2867_v54 }
0x20bc   :  { %3217 = vrcp.f32 %v2388_v8  ;;  %v2327_v31 = vpop.f32.mrf.mxu2  ;;  %v2525_v29 = vand.u32 2147483647, %v2388_v8  ;;  %v2527_v32 = vand.u32 2147483648, %v2388_v8  ;;  %vm2521_vm12 = vweird.f32 %v2388_v8 }
0x20bd   :  { %v2328_v15 = vadd.f32 %v3905_v10, %v2327_v31 }
0x20be   :  { %v2297_v39 = vpop.f32.mrf.mxu0  ;;  %v2528_v42 = vor.u32 1.1754944e-38, %v2527_v32  ;;  %vm2526_vm14 = vcmp.eq.f32.partialorder %v2525_v29, 8.507059e+37 }
0x20bf   :  { %v2872_v13 = vmul.f32 -1.442695, %v2328_v15  ;;  %v2298_v18 = vadd.f32 %v3905_v10, %v2297_v39 }
0x20c1   :  { %v3216_v47 = vpop.eup %3215  ;;  %3219 = vpow2.f32 %v2872_v13  ;;  %v2860_v56 = vmul.f32 -1.442695, %v2298_v18 }
0x20c2   :  { %v3218_v26 = vpop.eup %3217  ;;  %v2389_v7 = vadd.f32 1.0, %v3216_v47 }
0x20c3   :  { %v2517_v12 = vmul.f32 %v3218_v26, %v2388_v8  ;;  %3221 = vpow2.f32 %v2860_v56  ;;  %vm2522_vm0 = vweird.f32 %v3218_v26 }
0x20c4   :  { %3223 = vrcp.f32 %v2389_v7  ;;  %v2329_v58 = vpop.f32.mrf.mxu2  ;;  %vm2523_vm13 = vmor %vm2521_vm12, %vm2522_vm0  ;;  %v2542_v52 = vand.u32 2147483648, %v2389_v7  ;;  %v2540_v59 = vand.u32 2147483647, %v2389_v7  ;;  %vm2536_vm1 = vweird.f32 %v2389_v7 }
0x20c5   :  { %v2518_v28 = vsub.f32 1.0, %v2517_v12  ;;  %v2330_v57 = vadd.f32 %v3905_v10, %v2329_v58 }
0x20c6   :  { %v2299_v19 = vpop.f32.mrf.mxu0  ;;  %v2543_v23 = vor.u32 1.1754944e-38, %v2542_v52  ;;  %vm2541_vm3 = vcmp.eq.f32.partialorder %v2540_v59, 8.507059e+37 }
0x20c7   :  { %v3220_v20 = vpop.eup %3219  ;;  %v2519_v14 = vmul.f32 %v3218_v26, %v2518_v28  ;;  %v2873_v1 = vmul.f32 -1.442695, %v2330_v57  ;;  %v2300_v35 = vadd.f32 %v3905_v10, %v2299_v19 }
0x20c8   :  { %v2394_v22 = vadd.f32 1.0, %v3220_v20 }
0x20c9   :  { %v3222_v37 = vpop.eup %3221  ;;  %v2520_v43 = vadd.f32 %v3218_v26, %v2519_v14  ;;  %3225 = vpow2.f32 %v2873_v1  ;;  %v2861_v38 = vmul.f32 -1.442695, %v2300_v35 }
0x20ca   :  { %v3224_v33 = vpop.eup %3223  ;;  %3227 = vrcp.f32 %v2394_v22  ;;  %v2382_v55 = vadd.f32 1.0, %v3222_v37  ;;  %v2617_v62 = vand.u32 2147483648, %v2394_v22  ;;  %v2615_v51 = vand.u32 2147483647, %v2394_v22 }
0x20cb   :  { %v2524_v3 = vsel %vm2523_vm13, %v3218_v26, %v2520_v43  ;;  %v2532_v46 = vmul.f32 %v3224_v33, %v2389_v7  ;;  %3229 = vpow2.f32 %v2861_v38  ;;  %vm2537_vm15 = vweird.f32 %v3224_v33 }
0x20cc   :  { %v2529_v45 = vsel %vm2526_vm14, %v2528_v42, %v2524_v3  ;;  %3231 = vrcp.f32 %v2382_v55  ;;  %vm2538_vm2 = vmor %vm2536_vm1, %vm2537_vm15  ;;  %vm2611_vm7 = vweird.f32 %v2394_v22  ;;  %v2437_v63 = vand.u32 2147483648, %v2382_v55 }
0x20cd   :  { %2644 = vst [vmem:[%s4041_s9 + $0x40] sm:$0xff] %v2529_v45  ;;  %v2533_v10 = vsub.f32 1.0, %v2532_v46  ;;  %v2618_v9 = vor.u32 1.1754944e-38, %v2617_v62  ;;  %v2435_v5 = vand.u32 2147483647, %v2382_v55  ;;  %vm2616_vm6 = vcmp.eq.f32.partialorder %v2615_v51, 8.507059e+37 }
0x20ce   :  { %vm2431_vm8 = vweird.f32 %v2382_v55  ;;  %v2438_v54 = vor.u32 1.1754944e-38, %v2437_v63 }
0x20cf   :  { %v3226_v50 = vpop.eup %3225  ;;  %v2534_v44 = vmul.f32 %v3224_v33, %v2533_v10  ;;  %vm2436_vm11 = vcmp.eq.f32.partialorder %v2435_v5, 8.507059e+37 }
0x20d0   :  { %v3228_v17 = vpop.eup %3227  ;;  %v2395_v0 = vadd.f32 1.0, %v3226_v50 }
0x20d1   :  { %v2535_v2 = vadd.f32 %v3224_v33, %v2534_v44  ;;  %v2607_v4 = vmul.f32 %v3228_v17, %v2394_v22  ;;  %v3230_v40 = vpop.eup %3229  ;;  %vm2612_vm9 = vweird.f32 %v3228_v17 }
0x20d2   :  { %3233 = vrcp.f32 %v2395_v0  ;;  %v3232_v24 = vpop.eup %3231  ;;  %v2383_v61 = vadd.f32 1.0, %v3230_v40  ;;  %vm2613_vm4 = vmor %vm2611_vm7, %vm2612_vm9  ;;  %v2632_v15 = vand.u32 2147483648, %v2395_v0  ;;  %v2630_v47 = vand.u32 2147483647, %v2395_v0 }
0x20d3   :  { %v2539_v6 = vsel %vm2538_vm2, %v3224_v33, %v2535_v2  ;;  %v2608_v34 = vsub.f32 1.0, %v2607_v4  ;;  %v2427_v53 = vmul.f32 %v3232_v24, %v2382_v55  ;;  %vm2432_vm5 = vweird.f32 %v3232_v24 }
0x20d4   :  { %v2544_v11 = vsel %vm2541_vm3, %v2543_v23, %v2539_v6  ;;  %3235 = vrcp.f32 %v2383_v61  ;;  %vm2433_vm10 = vmor %vm2431_vm8, %vm2432_vm5  ;;  %vm2626_vm12 = vweird.f32 %v2395_v0  ;;  %v2452_v7 = vand.u32 2147483648, %v2383_v61 }
0x20d5   :  { %2645 = vst [vmem:[%s4041_s9 + $0x48] sm:$0xff] %v2544_v11  ;;  %v2609_v41 = vmul.f32 %v3228_v17, %v2608_v34  ;;  %v2428_v16 = vsub.f32 1.0, %v2427_v53  ;;  %v2633_v12 = vor.u32 1.1754944e-38, %v2632_v15  ;;  %v2450_v28 = vand.u32 2147483647, %v2383_v61 }
0x20d6   :  { %vm2631_vm15 = vcmp.eq.f32.partialorder %v2630_v47, 8.507059e+37  ;;  %vm2446_vm1 = vweird.f32 %v2383_v61  ;;  %v2453_v19 = vor.u32 1.1754944e-38, %v2452_v7 }
0x20d7   :  { %v2610_v25 = vadd.f32 %v3228_v17, %v2609_v41  ;;  %v2429_v36 = vmul.f32 %v3232_v24, %v2428_v16  ;;  %vm2451_vm3 = vcmp.eq.f32.partialorder %v2450_v28, 8.507059e+37 }
0x20d8   :  { %v3234_v21 = vpop.eup %3233 }
0x20d9   :  { %v2614_v30 = vsel %vm2613_vm4, %v3228_v17, %v2610_v25  ;;  %v2622_v48 = vmul.f32 %v3234_v21, %v2395_v0  ;;  %v2430_v60 = vadd.f32 %v3232_v24, %v2429_v36  ;;  %vm2627_vm0 = vweird.f32 %v3234_v21 }
0x20da   :  { %v2619_v49 = vsel %vm2616_vm6, %v2618_v9, %v2614_v30  ;;  %v3236_v27 = vpop.eup %3235  ;;  %vm2628_vm13 = vmor %vm2626_vm12, %vm2627_vm0 }
0x20db   :  { %2650 = vst [vmem:[%s4041_s9 + $0x70] sm:$0xff] %v2619_v49  ;;  %v2623_v8 = vsub.f32 1.0, %v2622_v48  ;;  %v2434_v31 = vsel %vm2433_vm10, %v3232_v24, %v2430_v60  ;;  %v2442_v39 = vmul.f32 %v3236_v27, %v2383_v61  ;;  %vm2447_vm14 = vweird.f32 %v3236_v27 }
0x20dc   :  { %v2439_v13 = vsel %vm2436_vm11, %v2438_v54, %v2434_v31  ;;  %vm2448_vm2 = vmor %vm2446_vm1, %vm2447_vm14 }
0x20dd   :  { %v2624_v18 = vmul.f32 %v3234_v21, %v2623_v8  ;;  %2638 = vst [vmem:[%s4041_s9 + $0x10] sm:$0xff] %v2439_v13  ;;  %v2443_v56 = vsub.f32 1.0, %v2442_v39 }
0x20df   :  { %v2625_v26 = vadd.f32 %v3234_v21, %v2624_v18  ;;  %v2444_v58 = vmul.f32 %v3236_v27, %v2443_v56 }
0x20e1   :  { %v2629_v57 = vsel %vm2628_vm13, %v3234_v21, %v2625_v26  ;;  %v2445_v32 = vadd.f32 %v3236_v27, %v2444_v58 }
0x20e2   :  { %v2634_v29 = vsel %vm2631_vm15, %v2633_v12, %v2629_v57 }
0x20e3   :  { %2651 = vst [vmem:[%s4041_s9 + $0x78] sm:$0xff] %v2634_v29  ;;  %v2449_v20 = vsel %vm2448_vm2, %v3236_v27, %v2445_v32 }
0x20e4   :  { %v2454_v14 = vsel %vm2451_vm3, %v2453_v19, %v2449_v20 }
0x20e5   :  { %2639 = vst [vmem:[%s4041_s9 + $0x18] sm:$0xff] %v2454_v14 }

</bundles_post_ra>
